<compile_context>
chip_gen: v7x
topology: tpu7x:2x2x1
jax: 0.10.0
libtpu: 0.0.40
codegen_flags: <defaults>
</compile_context>

<pallas_src>
import functools

import numpy as np
import jax
import jax.numpy as jnp
from jax.experimental import pallas as pl
from jax.experimental.pallas import tpu as pltpu


# ----------------------------- anchor helpers (plain numpy glue) ------------

def generate_anchor_base(base_size=16, ratios=(0.5, 1, 2), anchor_scales=(8, 16, 32)):
    py = base_size / 2.0
    px = base_size / 2.0
    anchor_base = np.zeros((len(ratios) * len(anchor_scales), 4), dtype=np.float32)
    for i in range(len(ratios)):
        for j in range(len(anchor_scales)):
            h = base_size * anchor_scales[j] * np.sqrt(ratios[i])
            w = base_size * anchor_scales[j] * np.sqrt(1.0 / ratios[i])
            index = i * len(anchor_scales) + j
            anchor_base[index, 0] = py - h / 2.0
            anchor_base[index, 1] = px - w / 2.0
            anchor_base[index, 2] = py + h / 2.0
            anchor_base[index, 3] = px + w / 2.0
    return anchor_base


def _enumerate_shifted_anchor(anchor_base, feat_stride, height, width):
    shift_y = np.arange(0, height * feat_stride, feat_stride)
    shift_x = np.arange(0, width * feat_stride, feat_stride)
    shift_x, shift_y = np.meshgrid(shift_x, shift_y)
    shift = np.stack(
        (shift_y.ravel(), shift_x.ravel(), shift_y.ravel(), shift_x.ravel()), axis=1
    )
    A = anchor_base.shape[0]
    K = shift.shape[0]
    anchor = anchor_base.reshape((1, A, 4)) + shift.reshape((1, K, 4)).transpose((1, 0, 2))
    anchor = anchor.reshape((K * A, 4)).astype(np.float32)
    return anchor


# ----------------------------- Pallas kernel --------------------------------

def _rpn_kernel(TH, Wp, Cin, fold_k, fg_lo, fg_hi,
                xf_ref, w1_ref, b1_ref, wh_ref, bh_ref, out_ref, acc_ref):
    """One (batch, row-tile) pair per grid step.

    xf_ref : (1, Lin, Cin_eff) bf16  flat, padded, channels-last input
                                      (full image, resident across row tiles;
                                       Cin_eff = 3*Cin when fold_k)
    w1_ref : (3, 3*Cin, Cmid)  bf16  3x3 conv weights, dy-major, dx folded in K
    b1_ref : (1, Cmid)         f32
    wh_ref : (Cmid, NHEAD)     bf16  fused [loc | score | fg-delta | 0-pad]
    bh_ref : (1, NHEAD)        f32
    out_ref: (1, TH*Wp, NHEAD)       lane-dense fused output slab (one row tile)
    acc_ref: (TH*Wp, Cmid)     f32   conv accumulator scratch
    """
    M = TH * Wp                    # output rows per tile (junk cols kept)
    Mext = (TH + 2) * Wp           # input rows covering the dy = 0..2 taps
    nhead = wh_ref.shape[1]

    j = pl.program_id(1)
    base = pl.multiple_of(j * M, 8)    # M % 8 == 0 because Wp % 8 == 0

    # ---- 3x3 conv (pad=1) accumulated into a VMEM f32 scratch tile ----
    acc_ref[...] = jnp.zeros_like(acc_ref)
    if fold_k:
        # dx taps pre-folded into channels by the wrapper: 3 matmuls, K = 3*Cin
        # (fills the MXU depth when Cin is small).  All slices are aligned.
        xwin = xf_ref[0, pl.ds(base, Mext), :]                 # (Mext, 3*Cin)
        for dy in range(3):
            acc_ref[...] += jnp.dot(
                xwin[dy * Wp: dy * Wp + M, :], w1_ref[dy],
                preferred_element_type=jnp.float32)
    else:
        # K = Cin is already MXU-deep: 9 matmuls.  Hoist the dx = 0/1/2 shifted
        # windows ONCE per tile and reuse them across the 3 dy offsets, so only
        # two sublane-shifted copies are materialized (not up to 9).
        xwin = xf_ref[0, pl.ds(base, Mext + 8), :]             # aligned dyn start
        xs = (xwin[0:Mext], xwin[1:Mext + 1], xwin[2:Mext + 2])
        for dy in range(3):
            for dx in range(3):
                acc_ref[...] += jnp.dot(
                    xs[dx][dy * Wp: dy * Wp + M, :],
                    w1_ref[dy, dx * Cin:(dx + 1) * Cin, :],
                    preferred_element_type=jnp.float32)

    # ReLU, then back to bf16 for the fused head matmul (f32 MXU accumulation).
    h = jnp.maximum(acc_ref[...] + b1_ref[...], 0.0).astype(wh_ref.dtype)

    # ---- single fused head matmul: [loc(4A) | score(2A) | fg-delta(A) | pad]
    heads = jnp.dot(h, wh_ref[...], preferred_element_type=jnp.float32) + bh_ref[...]

    # fg probability = softmax(bg, fg)[fg] = sigmoid(fg - bg).  Non-fg lanes are
    # masked to 0 *before* the exp so large loc/score logits can never produce
    # inf/NaN in lanes that are subsequently discarded.
    col = jax.lax.broadcasted_iota(jnp.int32, (1, nhead), 1)
    is_fg = jnp.logical_and(col >= fg_lo, col < fg_hi)
    fg_prob = 1.0 / (1.0 + jnp.exp(-jnp.where(is_fg, heads, 0.0)))
    out_ref[0] = jnp.where(is_fg, fg_prob, heads).astype(out_ref.dtype)


# ----------------------------- compute wrapper -------------------------------

@functools.partial(jax.jit,
                   static_argnames=("tile_h", "single_buffer_consts", "out_dtype"))
def _rpn_compute(x_nchw, conv1_w, conv1_b, score_w, score_b, loc_w, loc_b,
                 *, tile_h=8, single_buffer_consts=True, out_dtype=jnp.float32):
    N, Cin, H, W = x_nchw.shape
    Cmid = conv1_w.shape[0]
    A = score_w.shape[0] // 2

    # ---- tiling geometry ----
    TH = max(1, min(tile_h, H))            # output rows per grid step
    nT = -(-H // TH)
    if N == 1 and nT == 1 and H > 1:
        # Make sure v7x's second TensorCore gets a parallel tile at batch 1.
        TH = (H + 1) // 2
        nT = 2
    H_t = nT * TH                          # padded output height (junk rows sliced off)
    Wp = ((W + 2 + 7) // 8) * 8            # padded width, multiple of 8 (sublane aligned)
    Hp = H_t + 3                           # 1 top zero row + data + >=2 bottom zero rows
    M = TH * Wp
    Mext = (TH + 2) * Wp

    n_loc, n_sc, n_fg = 4 * A, 2 * A, A
    n_used = n_loc + n_sc + n_fg                       # 7*A (= 63 for A=9)
    nhead = ((n_used + 127) // 128) * 128              # lane-dense head width

    # Fold the 3 dx taps into the contraction when the MXU would be depth-starved.
    fold_k = Cin < 128

    # ---- fused prep pass: NCHW -> NHWC, zero-pad, flatten, bf16 cast ----
    x = jnp.transpose(x_nchw, (0, 2, 3, 1))
    xpad = jnp.pad(x, ((0, 0), (1, Hp - 1 - H), (1, Wp - 1 - W), (0, 0)))
    xflat = xpad.reshape(N, Hp * Wp, Cin).astype(jnp.bfloat16)
    if fold_k:
        Lin = (H_t + 2) * Wp
        # (p, dx*Cin + c) = xflat[p + dx, c]: dx shifts built once by XLA so the
        # kernel only performs aligned slices.
        xin = jnp.concatenate(
            [xflat[:, 0:Lin], xflat[:, 1:Lin + 1], xflat[:, 2:Lin + 2]], axis=-1)
        Cin_eff = 3 * Cin
    else:
        xin = xflat
        Cin_eff = Cin
        Lin = Hp * Wp

    # ---- weight re-layout (parameter glue, done once) ----
    # w1[dy, dx*Cin + c, m] = conv1_w[m, c, dy, dx]
    w1 = jnp.transpose(conv1_w, (2, 3, 1, 0)).reshape(3, 3 * Cin, Cmid).astype(jnp.bfloat16)
    b1 = conv1_b.reshape(1, Cmid).astype(jnp.float32)

    wloc = jnp.transpose(loc_w[:, :, 0, 0], (1, 0))            # (Cmid, 4A)
    wsc = jnp.transpose(score_w[:, :, 0, 0], (1, 0))           # (Cmid, 2A)
    # score channels are (bg, fg) interleaved per anchor (torch's view(..., A, 2));
    # fg softmax == sigmoid of the (fg - bg) delta.
    wdelta = wsc[:, 1::2] - wsc[:, 0::2]                       # (Cmid, A)
    bdelta = score_b[1::2] - score_b[0::2]
    whead = jnp.concatenate(
        [wloc, wsc, wdelta, jnp.zeros((Cmid, nhead - n_used), jnp.float32)],
        axis=1).astype(jnp.bfloat16)                           # (Cmid, nhead)
    bhead = jnp.concatenate(
        [loc_b, score_b, bdelta, jnp.zeros((nhead - n_used,), jnp.float32)]
    ).reshape(1, nhead).astype(jnp.float32)

    # ---- VMEM budget (computed, capped below v7x's 64 MiB physical VMEM) ----
    out_isz = np.dtype(out_dtype).itemsize
    in_block = Lin * Cin_eff * 2
    out_block = M * nhead * out_isz
    w_bytes = w1.size * 2 + whead.size * 2 + (b1.size + bhead.size) * 4
    acc_bytes = M * Cmid * 4
    interm = 3 * (Mext + 8) * Cin_eff * 2 + M * Cmid * 2 + 2 * M * nhead * 4
    need = 2 * in_block + 2 * out_block + 2 * w_bytes + acc_bytes + interm
    vmem_limit = int(min(max(int(need * 1.5) + (4 << 20), 16 << 20), 48 << 20))

    total_pix = N * H_t * Wp
    cost = pl.CostEstimate(
        flops=int(2 * total_pix * Cmid * (9 * Cin + nhead)),
        transcendentals=int(total_pix * nhead),
        bytes_accessed=int(N * in_block + N * nT * out_block + w_bytes),
    )

    const_kwargs = {}
    if single_buffer_consts:
        # Weight/bias blocks never change across the grid -> single-buffer them.
        const_kwargs = dict(pipeline_mode=pl.Buffered(1))

    kernel = functools.partial(_rpn_kernel, TH, Wp, Cin, fold_k,
                               n_loc + n_sc, n_used)

    out = pl.pallas_call(
        kernel,
        out_shape=jax.ShapeDtypeStruct((N, H_t * Wp, nhead), out_dtype),
        grid=(N, nT),
        in_specs=[
            # full padded image: resident in VMEM across the row-tile axis
            pl.BlockSpec((1, Lin, Cin_eff), lambda i, j: (i, 0, 0)),
            pl.BlockSpec((3, 3 * Cin, Cmid), lambda i, j: (0, 0, 0), **const_kwargs),
            pl.BlockSpec((1, Cmid), lambda i, j: (0, 0), **const_kwargs),
            pl.BlockSpec((Cmid, nhead), lambda i, j: (0, 0), **const_kwargs),
            pl.BlockSpec((1, nhead), lambda i, j: (0, 0), **const_kwargs),
        ],
        out_specs=pl.BlockSpec((1, M, nhead), lambda i, j: (i, j, 0)),
        scratch_shapes=[pltpu.VMEM((M, Cmid), jnp.float32)],
        compiler_params=pltpu.CompilerParams(
            dimension_semantics=("parallel", "parallel"),
            vmem_limit_bytes=vmem_limit,
        ),
        cost_estimate=cost,
    )(xin, w1, b1, whead, bhead)

    # Drop junk rows/cols and split the fused head slab.
    # Matches torch: permute(0,2,3,1).contiguous().view(...).
    out = out.reshape(N, H_t, Wp, nhead)[:, :H, :W, :]
    rpn_locs = out[..., :n_loc].reshape(N, H * W * A, 4).astype(jnp.float32)
    rpn_scores = out[..., n_loc:n_loc + n_sc].reshape(N, H * W * A, 2).astype(jnp.float32)
    rpn_fg_scores = out[..., n_loc + n_sc:n_used].reshape(N, H * W * A).astype(jnp.float32)
    return rpn_locs, rpn_scores, rpn_fg_scores


# ----------------------------- public forward --------------------------------

def rpn_forward(x_nchw, params, anchor_base, feat_stride=16, img_size=None,
                scale=1.0, tile_h=8, out_dtype=jnp.float32):
    """Returns (rpn_locs, rpn_scores, rpn_fg_scores, anchor)."""
    _, _, H, W = x_nchw.shape
    args = (x_nchw, params["conv1_w"], params["conv1_b"], params["score_w"],
            params["score_b"], params["loc_w"], params["loc_b"])
    try:
        outs = _rpn_compute(*args, tile_h=tile_h, single_buffer_consts=True,
                            out_dtype=out_dtype)
        outs = jax.block_until_ready(outs)
    except Exception:
        # Compatibility fallback: drop the single-buffered-constant request
        # (pipeline_mode=pl.Buffered(1)) if this JAX/Mosaic build rejects it.
        outs = _rpn_compute(*args, tile_h=tile_h, single_buffer_consts=False,
                            out_dtype=out_dtype)
        outs = jax.block_until_ready(outs)
    rpn_locs, rpn_scores, rpn_fg_scores = outs

    anchor = _enumerate_shifted_anchor(np.array(anchor_base), feat_stride, H, W)

    # TODO(synk): ProposalCreator (bbox decode + clip + NMS -> rois / roi_indices)
    # is not defined in the provided reference module, so it is not reproduced.
    return rpn_locs, rpn_scores, rpn_fg_scores, anchor


# ----------------------------- pure-JAX reference ----------------------------

def _rpn_reference(x_nchw, params):
    dn = ("NCHW", "OIHW", "NCHW")
    h = jax.lax.conv_general_dilated(x_nchw, params["conv1_w"], (1, 1), "SAME",
                                     dimension_numbers=dn)
    h = jnp.maximum(h + params["conv1_b"][None, :, None, None], 0.0)
    loc = jax.lax.conv_general_dilated(h, params["loc_w"], (1, 1), "SAME",
                                       dimension_numbers=dn)
    loc = loc + params["loc_b"][None, :, None, None]
    sc = jax.lax.conv_general_dilated(h, params["score_w"], (1, 1), "SAME",
                                      dimension_numbers=dn)
    sc = sc + params["score_b"][None, :, None, None]
    N, _, H, W = x_nchw.shape
    A = params["score_w"].shape[0] // 2
    loc = jnp.transpose(loc, (0, 2, 3, 1)).reshape(N, -1, 4)
    scr = jnp.transpose(sc, (0, 2, 3, 1))
    fg = jax.nn.softmax(scr.reshape(N, H, W, A, 2), axis=4)[..., 1].reshape(N, -1)
    scr = scr.reshape(N, -1, 2)
    return loc, scr, fg


# ----------------------------- parameter init --------------------------------

def init_params(key, in_channels, mid_channels, n_anchor, stddev=0.01):
    k1, k2, k3 = jax.random.split(key, 3)
    return {
        # PyTorch conv weight layouts (Cout, Cin, kh, kw); normal_init(0, 0.01), bias=0.
        "conv1_w": stddev * jax.random.normal(k1, (mid_channels, in_channels, 3, 3), jnp.float32),
        "conv1_b": jnp.zeros((mid_channels,), jnp.float32),
        "score_w": stddev * jax.random.normal(k2, (n_anchor * 2, mid_channels, 1, 1), jnp.float32),
        "score_b": jnp.zeros((n_anchor * 2,), jnp.float32),
        "loc_w": stddev * jax.random.normal(k3, (n_anchor * 4, mid_channels, 1, 1), jnp.float32),
        "loc_b": jnp.zeros((n_anchor * 4,), jnp.float32),
    }


# ----------------------------- demo ------------------------------------------

if __name__ == "__main__":
    key = jax.random.PRNGKey(0)

    anchor_base = generate_anchor_base(ratios=(0.5, 1, 2), anchor_scales=(8, 16, 32))
    A = anchor_base.shape[0]  # 9 anchors
    feat_stride = 16

    # Config 1 exercises the folded-K (K = 3*Cin) conv path and the
    # (batch, row-tile) grid = (2, 2).  Config 2 exercises the 9-tap path
    # (Cin >= 128) with hoisted dx-shifted windows, grid = (1, 2).
    configs = [
        dict(N=2, Cin=16, Cmid=32, H=16, W=16),
        dict(N=1, Cin=128, Cmid=32, H=16, W=8),
    ]

    for cfg in configs:
        key, kx, kp = jax.random.split(key, 3)
        N, Cin, Cmid, H, W = cfg["N"], cfg["Cin"], cfg["Cmid"], cfg["H"], cfg["W"]
        params = init_params(kp, Cin, Cmid, A)
        x = jax.random.normal(kx, (N, Cin, H, W), jnp.float32)  # NCHW, like PyTorch
        img_size = (H * feat_stride, W * feat_stride)

        rpn_locs, rpn_scores, rpn_fg, anchor = rpn_forward(
            x, params, anchor_base, feat_stride=feat_stride,
            img_size=img_size, scale=1.0, tile_h=8)
        jax.block_until_ready((rpn_locs, rpn_scores, rpn_fg))

        assert rpn_locs.shape == (N, H * W * A, 4)
        assert rpn_scores.shape == (N, H * W * A, 2)
        assert rpn_fg.shape == (N, H * W * A)
        assert anchor.shape == (H * W * A, 4)
        assert bool(jnp.all((rpn_fg >= 0.0) & (rpn_fg <= 1.0)))

        # Correctness check against a pure-JAX f32 reference (bf16 tolerances).
        ref_locs, ref_scores, ref_fg = _rpn_reference(x, params)
        np.testing.assert_allclose(np.asarray(rpn_locs), np.asarray(ref_locs),
                                   atol=3e-3, rtol=0.1)
        np.testing.assert_allclose(np.asarray(rpn_scores), np.asarray(ref_scores),
                                   atol=3e-3, rtol=0.1)
        np.testing.assert_allclose(np.asarray(rpn_fg), np.asarray(ref_fg),
                                   atol=3e-3, rtol=0.1)

    print("KERNEL_OK")
</pallas_src>

<mosaic_0001>
module attributes {stable_mosaic.version = 11 : i64} {
  func.func @_rpn_kernel(%arg0: i32, %arg1: i32, %arg2: memref<1x432x48xbf16, #tpu.memory_space<vmem>>, %arg3: memref<3x48x32xbf16, #tpu.memory_space<vmem>>, %arg4: memref<1x32xf32, #tpu.memory_space<vmem>>, %arg5: memref<32x128xbf16, #tpu.memory_space<vmem>>, %arg6: memref<1x128xf32, #tpu.memory_space<vmem>>, %arg7: memref<1x192x128xf32, #tpu.memory_space<vmem>>, %arg8: memref<192x32xf32, #tpu.memory_space<vmem>>) attributes {dimension_semantics = [#tpu.dimension_semantics<parallel>, #tpu.dimension_semantics<parallel>], iteration_bounds = array<i64: 2, 2>, scalar_prefetch = 0 : i64, scratch_operands = 1 : i64, tpu.core_type = #tpu.core_type<tc>, window_params = [{transform_indices = @transform_0, window_bounds = array<i64: 1, 432, 48>}, {pipeline_mode = #tpu.pipeline_mode<synchronous>, transform_indices = @transform_1, window_bounds = array<i64: 3, 48, 32>}, {pipeline_mode = #tpu.pipeline_mode<synchronous>, transform_indices = @transform_2, window_bounds = array<i64: 1, 32>}, {pipeline_mode = #tpu.pipeline_mode<synchronous>, transform_indices = @transform_3, window_bounds = array<i64: 32, 128>}, {pipeline_mode = #tpu.pipeline_mode<synchronous>, transform_indices = @transform_4, window_bounds = array<i64: 1, 128>}, {transform_indices = @transform_5, window_bounds = array<i64: 1, 192, 128>}]} {
    %c192_i32 = arith.constant 192 : i32
    %0 = arith.muli %arg1, %c192_i32 : i32
    %1 = tpu.assume_multiple %0, 8 : i32
    %cst = arith.constant 0.000000e+00 : f32
    %2 = vector.broadcast %cst : f32 to vector<192x32xf32>
    %c0 = arith.constant 0 : index
    %c0_0 = arith.constant 0 : index
    %3 = vector.load %arg8[%c0, %c0_0] : memref<192x32xf32, #tpu.memory_space<vmem>>, vector<192x32xf32>
    tpu.vector_store %arg8[%c0, %c0_0], %2 {strides = array<i32>} : memref<192x32xf32, #tpu.memory_space<vmem>>, vector<192x32xf32>,
    %c0_1 = arith.constant 0 : index
    %4 = arith.index_cast %1 : i32 to index
    %c0_2 = arith.constant 0 : index
    %5 = vector.load %arg2[%c0_1, %4, %c0_2] : memref<1x432x48xbf16, #tpu.memory_space<vmem>>, vector<1x240x48xbf16>
    %6 = vector.shape_cast %5 : vector<1x240x48xbf16> to vector<240x48xbf16>
    %c0_3 = arith.constant 0 : index
    %c0_4 = arith.constant 0 : index
    %7 = vector.load %arg8[%c0_3, %c0_4] : memref<192x32xf32, #tpu.memory_space<vmem>>, vector<192x32xf32>
    %8 = vector.extract_strided_slice %6 {offsets = [0, 0], sizes = [192, 48], strides = [1, 1]} : vector<240x48xbf16> to vector<192x48xbf16>
    %c0_5 = arith.constant 0 : index
    %c0_6 = arith.constant 0 : index
    %c0_7 = arith.constant 0 : index
    %9 = vector.load %arg3[%c0_5, %c0_6, %c0_7] : memref<3x48x32xbf16, #tpu.memory_space<vmem>>, vector<1x48x32xbf16>
    %10 = vector.shape_cast %9 : vector<1x48x32xbf16> to vector<48x32xbf16>
    %cst_8 = arith.constant dense<0.000000e+00> : vector<192x32xf32>
    %11 = tpu.matmul %8, %10, %cst_8 {dimension_numbers = #tpu.dot_dimension_numbers<[1], [0], [0], [1], [0, 0, 1, 1], [], []>} : vector<192x48xbf16>, vector<48x32xbf16>, vector<192x32xf32> -> vector<192x32xf32>
    %12 = arith.addf %7, %11 : vector<192x32xf32>
    %c0_9 = arith.constant 0 : index
    %c0_10 = arith.constant 0 : index
    %13 = vector.load %arg8[%c0_9, %c0_10] : memref<192x32xf32, #tpu.memory_space<vmem>>, vector<192x32xf32>
    tpu.vector_store %arg8[%c0_9, %c0_10], %12 {strides = array<i32>} : memref<192x32xf32, #tpu.memory_space<vmem>>, vector<192x32xf32>,
    %c0_11 = arith.constant 0 : index
    %c0_12 = arith.constant 0 : index
    %14 = vector.load %arg8[%c0_11, %c0_12] : memref<192x32xf32, #tpu.memory_space<vmem>>, vector<192x32xf32>
    %15 = vector.extract_strided_slice %6 {offsets = [24, 0], sizes = [192, 48], strides = [1, 1]} : vector<240x48xbf16> to vector<192x48xbf16>
    %c1 = arith.constant 1 : index
    %c0_13 = arith.constant 0 : index
    %c0_14 = arith.constant 0 : index
    %16 = vector.load %arg3[%c1, %c0_13, %c0_14] : memref<3x48x32xbf16, #tpu.memory_space<vmem>>, vector<1x48x32xbf16>
    %17 = vector.shape_cast %16 : vector<1x48x32xbf16> to vector<48x32xbf16>
    %cst_15 = arith.constant dense<0.000000e+00> : vector<192x32xf32>
    %18 = tpu.matmul %15, %17, %cst_15 {dimension_numbers = #tpu.dot_dimension_numbers<[1], [0], [0], [1], [0, 0, 1, 1], [], []>} : vector<192x48xbf16>, vector<48x32xbf16>, vector<192x32xf32> -> vector<192x32xf32>
    %19 = arith.addf %14, %18 : vector<192x32xf32>
    %c0_16 = arith.constant 0 : index
    %c0_17 = arith.constant 0 : index
    %20 = vector.load %arg8[%c0_16, %c0_17] : memref<192x32xf32, #tpu.memory_space<vmem>>, vector<192x32xf32>
    tpu.vector_store %arg8[%c0_16, %c0_17], %19 {strides = array<i32>} : memref<192x32xf32, #tpu.memory_space<vmem>>, vector<192x32xf32>,
    %c0_18 = arith.constant 0 : index
    %c0_19 = arith.constant 0 : index
    %21 = vector.load %arg8[%c0_18, %c0_19] : memref<192x32xf32, #tpu.memory_space<vmem>>, vector<192x32xf32>
    %22 = vector.extract_strided_slice %6 {offsets = [48, 0], sizes = [192, 48], strides = [1, 1]} : vector<240x48xbf16> to vector<192x48xbf16>
    %c2 = arith.constant 2 : index
    %c0_20 = arith.constant 0 : index
    %c0_21 = arith.constant 0 : index
    %23 = vector.load %arg3[%c2, %c0_20, %c0_21] : memref<3x48x32xbf16, #tpu.memory_space<vmem>>, vector<1x48x32xbf16>
    %24 = vector.shape_cast %23 : vector<1x48x32xbf16> to vector<48x32xbf16>
    %cst_22 = arith.constant dense<0.000000e+00> : vector<192x32xf32>
    %25 = tpu.matmul %22, %24, %cst_22 {dimension_numbers = #tpu.dot_dimension_numbers<[1], [0], [0], [1], [0, 0, 1, 1], [], []>} : vector<192x48xbf16>, vector<48x32xbf16>, vector<192x32xf32> -> vector<192x32xf32>
    %26 = arith.addf %21, %25 : vector<192x32xf32>
    %c0_23 = arith.constant 0 : index
    %c0_24 = arith.constant 0 : index
    %27 = vector.load %arg8[%c0_23, %c0_24] : memref<192x32xf32, #tpu.memory_space<vmem>>, vector<192x32xf32>
    tpu.vector_store %arg8[%c0_23, %c0_24], %26 {strides = array<i32>} : memref<192x32xf32, #tpu.memory_space<vmem>>, vector<192x32xf32>,
    %c0_25 = arith.constant 0 : index
    %c0_26 = arith.constant 0 : index
    %28 = vector.load %arg8[%c0_25, %c0_26] : memref<192x32xf32, #tpu.memory_space<vmem>>, vector<192x32xf32>
    %c0_27 = arith.constant 0 : index
    %c0_28 = arith.constant 0 : index
    %29 = vector.load %arg4[%c0_27, %c0_28] : memref<1x32xf32, #tpu.memory_space<vmem>>, vector<1x32xf32>
    %30 = vector.broadcast %29 : vector<1x32xf32> to vector<192x32xf32>
    %31 = arith.addf %28, %30 : vector<192x32xf32>
    %cst_29 = arith.constant 0.000000e+00 : f32
    %32 = vector.broadcast %cst_29 : f32 to vector<192x32xf32>
    %33 = arith.maximumf %31, %32 : vector<192x32xf32>
    %34 = arith.truncf %33 : vector<192x32xf32> to vector<192x32xbf16>
    %c0_30 = arith.constant 0 : index
    %c0_31 = arith.constant 0 : index
    %35 = vector.load %arg5[%c0_30, %c0_31] : memref<32x128xbf16, #tpu.memory_space<vmem>>, vector<32x128xbf16>
    %cst_32 = arith.constant dense<0.000000e+00> : vector<192x128xf32>
    %36 = tpu.matmul %34, %35, %cst_32 {dimension_numbers = #tpu.dot_dimension_numbers<[1], [0], [0], [1], [0, 0, 1, 1], [], []>} : vector<192x32xbf16>, vector<32x128xbf16>, vector<192x128xf32> -> vector<192x128xf32>
    %c0_33 = arith.constant 0 : index
    %c0_34 = arith.constant 0 : index
    %37 = vector.load %arg6[%c0_33, %c0_34] : memref<1x128xf32, #tpu.memory_space<vmem>>, vector<1x128xf32>
    %38 = vector.broadcast %37 : vector<1x128xf32> to vector<192x128xf32>
    %39 = arith.addf %36, %38 : vector<192x128xf32>
    %40 = tpu.iota {dimensions = array<i32: 1>} : vector<1x128xi32>
    %c54_i32 = arith.constant 54 : i32
    %41 = vector.broadcast %c54_i32 : i32 to vector<1x128xi32>
    %42 = arith.cmpi sge, %40, %41 : vector<1x128xi32>
    %c63_i32 = arith.constant 63 : i32
    %43 = vector.broadcast %c63_i32 : i32 to vector<1x128xi32>
    %44 = arith.cmpi slt, %40, %43 : vector<1x128xi32>
    %45 = arith.andi %42, %44 : vector<1x128xi1>
    %cst_35 = arith.constant 0.000000e+00 : f32
    %46 = vector.shape_cast %45 : vector<1x128xi1> to vector<1x128xi1>
    %47 = vector.broadcast %46 : vector<1x128xi1> to vector<192x128xi1>
    %48 = vector.broadcast %cst_35 : f32 to vector<192x128xf32>
    %49 = arith.select %47, %39, %48 : vector<192x128xi1>, vector<192x128xf32>
    %cst_36 = arith.constant 0.000000e+00 : f32
    %50 = vector.broadcast %cst_36 : f32 to vector<192x128xf32>
    %51 = arith.subf %50, %49 : vector<192x128xf32>
    %52 = math.exp %51 : vector<192x128xf32>
    %cst_37 = arith.constant 1.000000e+00 : f32
    %53 = vector.broadcast %cst_37 : f32 to vector<192x128xf32>
    %54 = arith.addf %53, %52 : vector<192x128xf32>
    %cst_38 = arith.constant 1.000000e+00 : f32
    %55 = vector.broadcast %cst_38 : f32 to vector<192x128xf32>
    %56 = arith.divf %55, %54 : vector<192x128xf32>
    %57 = vector.shape_cast %45 : vector<1x128xi1> to vector<1x128xi1>
    %58 = vector.broadcast %57 : vector<1x128xi1> to vector<192x128xi1>
    %59 = arith.select %58, %56, %39 : vector<192x128xi1>, vector<192x128xf32>
    %c0_39 = arith.constant 0 : index
    %c0_40 = arith.constant 0 : index
    %c0_41 = arith.constant 0 : index
    %60 = vector.load %arg7[%c0_39, %c0_40, %c0_41] : memref<1x192x128xf32, #tpu.memory_space<vmem>>, vector<1x192x128xf32>
    %61 = vector.shape_cast %60 : vector<1x192x128xf32> to vector<192x128xf32>
    %62 = vector.shape_cast %59 : vector<192x128xf32> to vector<1x192x128xf32>
    tpu.vector_store %arg7[%c0_39, %c0_40, %c0_41], %62 {strides = array<i32>} : memref<1x192x128xf32, #tpu.memory_space<vmem>>, vector<1x192x128xf32>,
    return
  }
  func.func @transform_0(%arg0: i32, %arg1: i32) -> (i32, i32, i32) {
    %c0_i32 = arith.constant 0 : i32
    %c0_i32_0 = arith.constant 0 : i32
    %c0_i32_1 = arith.constant 0 : i32
    return %arg0, %c0_i32, %c0_i32_0 : i32, i32, i32
  }
  func.func @transform_1(%arg0: i32, %arg1: i32) -> (i32, i32, i32) {
    %c0_i32 = arith.constant 0 : i32
    %c0_i32_0 = arith.constant 0 : i32
    %c0_i32_1 = arith.constant 0 : i32
    %c0_i32_2 = arith.constant 0 : i32
    return %c0_i32, %c0_i32_0, %c0_i32_1 : i32, i32, i32
  }
  func.func @transform_2(%arg0: i32, %arg1: i32) -> (i32, i32) {
    %c0_i32 = arith.constant 0 : i32
    %c0_i32_0 = arith.constant 0 : i32
    %c0_i32_1 = arith.constant 0 : i32
    return %c0_i32, %c0_i32_0 : i32, i32
  }
  func.func @transform_3(%arg0: i32, %arg1: i32) -> (i32, i32) {
    %c0_i32 = arith.constant 0 : i32
    %c0_i32_0 = arith.constant 0 : i32
    %c0_i32_1 = arith.constant 0 : i32
    return %c0_i32, %c0_i32_0 : i32, i32
  }
  func.func @transform_4(%arg0: i32, %arg1: i32) -> (i32, i32) {
    %c0_i32 = arith.constant 0 : i32
    %c0_i32_0 = arith.constant 0 : i32
    %c0_i32_1 = arith.constant 0 : i32
    return %c0_i32, %c0_i32_0 : i32, i32
  }
  func.func @transform_5(%arg0: i32, %arg1: i32) -> (i32, i32, i32) {
    %c0_i32 = arith.constant 0 : i32
    %c0_i32_0 = arith.constant 0 : i32
    return %arg0, %arg1, %c0_i32 : i32, i32, i32
  }
}

module attributes {stable_mosaic.version = 11 : i64} {
  func.func @_rpn_kernel(%arg0: i32, %arg1: i32, %arg2: memref<1x432x48xbf16, #tpu.memory_space<vmem>>, %arg3: memref<3x48x32xbf16, #tpu.memory_space<vmem>>, %arg4: memref<1x32xf32, #tpu.memory_space<vmem>>, %arg5: memref<32x128xbf16, #tpu.memory_space<vmem>>, %arg6: memref<1x128xf32, #tpu.memory_space<vmem>>, %arg7: memref<1x192x128xf32, #tpu.memory_space<vmem>>, %arg8: memref<192x32xf32, #tpu.memory_space<vmem>>) attributes {dimension_semantics = [#tpu.dimension_semantics<parallel>, #tpu.dimension_semantics<parallel>], iteration_bounds = array<i64: 2, 2>, scalar_prefetch = 0 : i64, scratch_operands = 1 : i64, tpu.core_type = #tpu.core_type<tc>, window_params = [{transform_indices = @transform_0, window_bounds = array<i64: 1, 432, 48>}, {pipeline_mode = #tpu.pipeline_mode<synchronous>, transform_indices = @transform_1, window_bounds = array<i64: 3, 48, 32>}, {pipeline_mode = #tpu.pipeline_mode<synchronous>, transform_indices = @transform_2, window_bounds = array<i64: 1, 32>}, {pipeline_mode = #tpu.pipeline_mode<synchronous>, transform_indices = @transform_3, window_bounds = array<i64: 32, 128>}, {pipeline_mode = #tpu.pipeline_mode<synchronous>, transform_indices = @transform_4, window_bounds = array<i64: 1, 128>}, {transform_indices = @transform_5, window_bounds = array<i64: 1, 192, 128>}]} {
    %c192_i32 = arith.constant 192 : i32
    %0 = arith.muli %arg1, %c192_i32 : i32
    %1 = tpu.assume_multiple %0, 8 : i32
    %cst = arith.constant 0.000000e+00 : f32
    %2 = vector.broadcast %cst : f32 to vector<192x32xf32>
    %c0 = arith.constant 0 : index
    %c0_0 = arith.constant 0 : index
    %3 = vector.load %arg8[%c0, %c0_0] : memref<192x32xf32, #tpu.memory_space<vmem>>, vector<192x32xf32>
    tpu.vector_store %arg8[%c0, %c0_0], %2 {strides = array<i32>} : memref<192x32xf32, #tpu.memory_space<vmem>>, vector<192x32xf32>,
    %c0_1 = arith.constant 0 : index
    %4 = arith.index_cast %1 : i32 to index
    %c0_2 = arith.constant 0 : index
    %5 = vector.load %arg2[%c0_1, %4, %c0_2] : memref<1x432x48xbf16, #tpu.memory_space<vmem>>, vector<1x240x48xbf16>
    %6 = vector.shape_cast %5 : vector<1x240x48xbf16> to vector<240x48xbf16>
    %c0_3 = arith.constant 0 : index
    %c0_4 = arith.constant 0 : index
    %7 = vector.load %arg8[%c0_3, %c0_4] : memref<192x32xf32, #tpu.memory_space<vmem>>, vector<192x32xf32>
    %8 = vector.extract_strided_slice %6 {offsets = [0, 0], sizes = [192, 48], strides = [1, 1]} : vector<240x48xbf16> to vector<192x48xbf16>
    %c0_5 = arith.constant 0 : index
    %c0_6 = arith.constant 0 : index
    %c0_7 = arith.constant 0 : index
    %9 = vector.load %arg3[%c0_5, %c0_6, %c0_7] : memref<3x48x32xbf16, #tpu.memory_space<vmem>>, vector<1x48x32xbf16>
    %10 = vector.shape_cast %9 : vector<1x48x32xbf16> to vector<48x32xbf16>
    %cst_8 = arith.constant dense<0.000000e+00> : vector<192x32xf32>
    %11 = tpu.matmul %8, %10, %cst_8 {dimension_numbers = #tpu.dot_dimension_numbers<[1], [0], [0], [1], [0, 0, 1, 1], [], []>} : vector<192x48xbf16>, vector<48x32xbf16>, vector<192x32xf32> -> vector<192x32xf32>
    %12 = arith.addf %7, %11 : vector<192x32xf32>
    %c0_9 = arith.constant 0 : index
    %c0_10 = arith.constant 0 : index
    %13 = vector.load %arg8[%c0_9, %c0_10] : memref<192x32xf32, #tpu.memory_space<vmem>>, vector<192x32xf32>
    tpu.vector_store %arg8[%c0_9, %c0_10], %12 {strides = array<i32>} : memref<192x32xf32, #tpu.memory_space<vmem>>, vector<192x32xf32>,
    %c0_11 = arith.constant 0 : index
    %c0_12 = arith.constant 0 : index
    %14 = vector.load %arg8[%c0_11, %c0_12] : memref<192x32xf32, #tpu.memory_space<vmem>>, vector<192x32xf32>
    %15 = vector.extract_strided_slice %6 {offsets = [24, 0], sizes = [192, 48], strides = [1, 1]} : vector<240x48xbf16> to vector<192x48xbf16>
    %c1 = arith.constant 1 : index
    %c0_13 = arith.constant 0 : index
    %c0_14 = arith.constant 0 : index
    %16 = vector.load %arg3[%c1, %c0_13, %c0_14] : memref<3x48x32xbf16, #tpu.memory_space<vmem>>, vector<1x48x32xbf16>
    %17 = vector.shape_cast %16 : vector<1x48x32xbf16> to vector<48x32xbf16>
    %cst_15 = arith.constant dense<0.000000e+00> : vector<192x32xf32>
    %18 = tpu.matmul %15, %17, %cst_15 {dimension_numbers = #tpu.dot_dimension_numbers<[1], [0], [0], [1], [0, 0, 1, 1], [], []>} : vector<192x48xbf16>, vector<48x32xbf16>, vector<192x32xf32> -> vector<192x32xf32>
    %19 = arith.addf %14, %18 : vector<192x32xf32>
    %c0_16 = arith.constant 0 : index
    %c0_17 = arith.constant 0 : index
    %20 = vector.load %arg8[%c0_16, %c0_17] : memref<192x32xf32, #tpu.memory_space<vmem>>, vector<192x32xf32>
    tpu.vector_store %arg8[%c0_16, %c0_17], %19 {strides = array<i32>} : memref<192x32xf32, #tpu.memory_space<vmem>>, vector<192x32xf32>,
    %c0_18 = arith.constant 0 : index
    %c0_19 = arith.constant 0 : index
    %21 = vector.load %arg8[%c0_18, %c0_19] : memref<192x32xf32, #tpu.memory_space<vmem>>, vector<192x32xf32>
    %22 = vector.extract_strided_slice %6 {offsets = [48, 0], sizes = [192, 48], strides = [1, 1]} : vector<240x48xbf16> to vector<192x48xbf16>
    %c2 = arith.constant 2 : index
    %c0_20 = arith.constant 0 : index
    %c0_21 = arith.constant 0 : index
    %23 = vector.load %arg3[%c2, %c0_20, %c0_21] : memref<3x48x32xbf16, #tpu.memory_space<vmem>>, vector<1x48x32xbf16>
    %24 = vector.shape_cast %23 : vector<1x48x32xbf16> to vector<48x32xbf16>
    %cst_22 = arith.constant dense<0.000000e+00> : vector<192x32xf32>
    %25 = tpu.matmul %22, %24, %cst_22 {dimension_numbers = #tpu.dot_dimension_numbers<[1], [0], [0], [1], [0, 0, 1, 1], [], []>} : vector<192x48xbf16>, vector<48x32xbf16>, vector<192x32xf32> -> vector<192x32xf32>
    %26 = arith.addf %21, %25 : vector<192x32xf32>
    %c0_23 = arith.constant 0 : index
    %c0_24 = arith.constant 0 : index
    %27 = vector.load %arg8[%c0_23, %c0_24] : memref<192x32xf32, #tpu.memory_space<vmem>>, vector<192x32xf32>
    tpu.vector_store %arg8[%c0_23, %c0_24], %26 {strides = array<i32>} : memref<192x32xf32, #tpu.memory_space<vmem>>, vector<192x32xf32>,
    %c0_25 = arith.constant 0 : index
    %c0_26 = arith.constant 0 : index
    %28 = vector.load %arg8[%c0_25, %c0_26] : memref<192x32xf32, #tpu.memory_space<vmem>>, vector<192x32xf32>
    %c0_27 = arith.constant 0 : index
    %c0_28 = arith.constant 0 : index
    %29 = vector.load %arg4[%c0_27, %c0_28] : memref<1x32xf32, #tpu.memory_space<vmem>>, vector<1x32xf32>
    %30 = vector.broadcast %29 : vector<1x32xf32> to vector<192x32xf32>
    %31 = arith.addf %28, %30 : vector<192x32xf32>
    %cst_29 = arith.constant 0.000000e+00 : f32
    %32 = vector.broadcast %cst_29 : f32 to vector<192x32xf32>
    %33 = arith.maximumf %31, %32 : vector<192x32xf32>
    %34 = arith.truncf %33 : vector<192x32xf32> to vector<192x32xbf16>
    %c0_30 = arith.constant 0 : index
    %c0_31 = arith.constant 0 : index
    %35 = vector.load %arg5[%c0_30, %c0_31] : memref<32x128xbf16, #tpu.memory_space<vmem>>, vector<32x128xbf16>
    %cst_32 = arith.constant dense<0.000000e+00> : vector<192x128xf32>
    %36 = tpu.matmul %34, %35, %cst_32 {dimension_numbers = #tpu.dot_dimension_numbers<[1], [0], [0], [1], [0, 0, 1, 1], [], []>} : vector<192x32xbf16>, vector<32x128xbf16>, vector<192x128xf32> -> vector<192x128xf32>
    %c0_33 = arith.constant 0 : index
    %c0_34 = arith.constant 0 : index
    %37 = vector.load %arg6[%c0_33, %c0_34] : memref<1x128xf32, #tpu.memory_space<vmem>>, vector<1x128xf32>
    %38 = vector.broadcast %37 : vector<1x128xf32> to vector<192x128xf32>
    %39 = arith.addf %36, %38 : vector<192x128xf32>
    %40 = tpu.iota {dimensions = array<i32: 1>} : vector<1x128xi32>
    %c54_i32 = arith.constant 54 : i32
    %41 = vector.broadcast %c54_i32 : i32 to vector<1x128xi32>
    %42 = arith.cmpi sge, %40, %41 : vector<1x128xi32>
    %c63_i32 = arith.constant 63 : i32
    %43 = vector.broadcast %c63_i32 : i32 to vector<1x128xi32>
    %44 = arith.cmpi slt, %40, %43 : vector<1x128xi32>
    %45 = arith.andi %42, %44 : vector<1x128xi1>
    %cst_35 = arith.constant 0.000000e+00 : f32
    %46 = vector.shape_cast %45 : vector<1x128xi1> to vector<1x128xi1>
    %47 = vector.broadcast %46 : vector<1x128xi1> to vector<192x128xi1>
    %48 = vector.broadcast %cst_35 : f32 to vector<192x128xf32>
    %49 = arith.select %47, %39, %48 : vector<192x128xi1>, vector<192x128xf32>
    %cst_36 = arith.constant 0.000000e+00 : f32
    %50 = vector.broadcast %cst_36 : f32 to vector<192x128xf32>
    %51 = arith.subf %50, %49 : vector<192x128xf32>
    %52 = math.exp %51 : vector<192x128xf32>
    %cst_37 = arith.constant 1.000000e+00 : f32
    %53 = vector.broadcast %cst_37 : f32 to vector<192x128xf32>
    %54 = arith.addf %53, %52 : vector<192x128xf32>
    %cst_38 = arith.constant 1.000000e+00 : f32
    %55 = vector.broadcast %cst_38 : f32 to vector<192x128xf32>
    %56 = arith.divf %55, %54 : vector<192x128xf32>
    %57 = vector.shape_cast %45 : vector<1x128xi1> to vector<1x128xi1>
    %58 = vector.broadcast %57 : vector<1x128xi1> to vector<192x128xi1>
    %59 = arith.select %58, %56, %39 : vector<192x128xi1>, vector<192x128xf32>
    %c0_39 = arith.constant 0 : index
    %c0_40 = arith.constant 0 : index
    %c0_41 = arith.constant 0 : index
    %60 = vector.load %arg7[%c0_39, %c0_40, %c0_41] : memref<1x192x128xf32, #tpu.memory_space<vmem>>, vector<1x192x128xf32>
    %61 = vector.shape_cast %60 : vector<1x192x128xf32> to vector<192x128xf32>
    %62 = vector.shape_cast %59 : vector<192x128xf32> to vector<1x192x128xf32>
    tpu.vector_store %arg7[%c0_39, %c0_40, %c0_41], %62 {strides = array<i32>} : memref<1x192x128xf32, #tpu.memory_space<vmem>>, vector<1x192x128xf32>,
    return
  }
  func.func @transform_0(%arg0: i32, %arg1: i32) -> (i32, i32, i32) {
    %c0_i32 = arith.constant 0 : i32
    %c0_i32_0 = arith.constant 0 : i32
    %c0_i32_1 = arith.constant 0 : i32
    return %arg0, %c0_i32, %c0_i32_0 : i32, i32, i32
  }
  func.func @transform_1(%arg0: i32, %arg1: i32) -> (i32, i32, i32) {
    %c0_i32 = arith.constant 0 : i32
    %c0_i32_0 = arith.constant 0 : i32
    %c0_i32_1 = arith.constant 0 : i32
    %c0_i32_2 = arith.constant 0 : i32
    return %c0_i32, %c0_i32_0, %c0_i32_1 : i32, i32, i32
  }
  func.func @transform_2(%arg0: i32, %arg1: i32) -> (i32, i32) {
    %c0_i32 = arith.constant 0 : i32
    %c0_i32_0 = arith.constant 0 : i32
    %c0_i32_1 = arith.constant 0 : i32
    return %c0_i32, %c0_i32_0 : i32, i32
  }
  func.func @transform_3(%arg0: i32, %arg1: i32) -> (i32, i32) {
    %c0_i32 = arith.constant 0 : i32
    %c0_i32_0 = arith.constant 0 : i32
    %c0_i32_1 = arith.constant 0 : i32
    return %c0_i32, %c0_i32_0 : i32, i32
  }
  func.func @transform_4(%arg0: i32, %arg1: i32) -> (i32, i32) {
    %c0_i32 = arith.constant 0 : i32
    %c0_i32_0 = arith.constant 0 : i32
    %c0_i32_1 = arith.constant 0 : i32
    return %c0_i32, %c0_i32_0 : i32, i32
  }
  func.func @transform_5(%arg0: i32, %arg1: i32) -> (i32, i32, i32) {
    %c0_i32 = arith.constant 0 : i32
    %c0_i32_0 = arith.constant 0 : i32
    return %arg0, %arg1, %c0_i32 : i32, i32, i32
  }
}

</mosaic_0001>

<bundles_post_ra>
// kernel: sub.3
= control target key start
LH: loop header
LB: loop body
LE: loop exit
PB: predicated region body
PF: predicated region fallthrough
CT: control target
= control target key end

     0   :  { %s34_s0 = inlined_call_operand.vmem [shape: f32[9], index: 0, kind: input, shape index: {}]   ;;  %s35_s1 = inlined_call_operand.vmem [shape: f32[9], index: 1, kind: input, shape index: {}]   ;;  %s36_s2 = inlined_call_operand.vmem [shape: f32[9], index: 2, kind: output, shape index: {}]  }
   0x1   :  { %v3_v0 = vld [vmem:[%s34_s0] sm:$0x1] }
   0x2   :  { %v4_v1 = vld [vmem:[%s35_s1] sm:$0x1] }
   0x3   :  { %v7_v2 = vsub.f32 %v3_v0, %v4_v1 }
   0x5   :  { %9 = vst [vmem:[%s36_s2] sm:$0x1] %v7_v2 }

// kernel: _rpn_compute.1
= control target key start
LH: loop header
LB: loop body
LE: loop exit
PB: predicated region body
PF: predicated region fallthrough
CT: control target
= control target key end

     0   :  { %10 = vsyncpa [#allocation4], 0  ;;  %s2349_s18 = smov 0   ;;  %s2351_s19 = smov 0   ;;  %s2948_s0 = inlined_call_operand.vmem [shape: bf16[2,432,48], index: 0, kind: input, shape index: {}]   ;;  %s2949_s1 = inlined_call_operand.vmem [shape: bf16[3,48,32], index: 1, kind: input, shape index: {}]   ;;  %s2950_s2 = inlined_call_operand.hbm [shape: f32[1,32], index: 2, kind: input, shape index: {}]   ;;  %s2951_s3 = inlined_call_operand.vmem [shape: bf16[32,128], index: 3, kind: input, shape index: {}]   ;;  %s2952_s4 = inlined_call_operand.vmem [shape: f32[1,128], index: 4, kind: input, shape index: {}]   ;;  %s2953_s5 = inlined_call_operand.vmem [shape: f32[2,384,128], index: 5, kind: output, shape index: {}]  }
   0x1   :  { %s2353_s20 = smov 0   ;;  %s2355_s21 = smov 0  }
   0x2   :  { %s2357_s22 = smov 0  }
   0x3 LB: > { %s1768_s23 = sadd.s32 4294967295, %s2315_s22   ;;  %s25_s24 = sadd.s32 1, %s2307_s20  ;;  %s2315_s22 = sphi %s2357_s22, %s16_s22   ;;  %s2311_s21 = sphi %s2355_s21, %s2968_s21   ;;  %s2307_s20 = sphi %s2353_s20, %s2967_s20   ;;  %s2303_s19 = sphi %s2351_s19, %s2966_s19   ;;  %s2299_s18 = sphi %s2349_s18, %s2965_s18  }
   0x4   : > { %p26_p0 = scmp.ge.s32.totalorder %s25_s24, 2  ;;  %s28_s25 = sadd.s32 1, %s2311_s21 }
   0x5   : > { %p1770_p1 = scmp.ge.s32.totalorder %s2315_s22, 1  ;;  %p171_p2 = scmp.lt.s32.totalorder %s2315_s22, 5 }
   0x6   : > { %s2970_s24 = smov (%p26_p0, %s25_s24), 0  ;;  %s2972_s25 = smov (!%p26_p0, %s28_s25), %s2311_s21 }
   0x7   : > { %p2382_p3 = pnand %p1770_p1, %p171_p2  ;;  %p30_p4 = scmp.ge.s32.totalorder %s2972_s25, 2 }
   0x8   : > { %p2386_p5 = scmp.eq.s32.totalorder %s1768_s23, 0  ;;  %s2317_s28 = smov [#allocation3]  }
   0x9   : > { %s2957_s26 = scalar_select %p2382_p3, 1, 0 }
   0xa   : > { %s2958_s27 = scalar_select %p2386_p5, 1, 0 }
   0xb   : > { %p2063_p6 = pneg %p2382_p3  ;;  %s2974_s25 = smov (%p30_p4, %s2972_s25), 0 }
   0xc   : > { %s187_s29 = sshll.u32 %s2317_s28, 4  ;;  %s2245_s8 = scalar_lea.hbm %s2950_s2, 16  ;;  %s188_s29 = int_to_ptr.vmem [resolvable:$true] %s187_s29 }
   0xd   : > { %p2396_p7 = pnand %p2386_p5, %p2063_p6  ;;  %p2246_p8 = scmp.ne.s32.totalorder %s2950_s2, %s2245_s8 }
   0xe   : > { %p2252_p12 = scmp.lt.u32.totalorder %s2245_s8, %s2950_s2 }
   0xf   : > { %p2247_p9 = pneg %p2396_p7 }
  0x11   : > { %p2248_p10 = pnand %p2247_p9, %p2246_p8 }
  0x13   : > { %p2249_p11 = pneg %p2248_p10 }
  0x15   : > { %p2254_p13 = pnand %p2252_p12, %p2249_p11 }
  0x17   : > { %2257 = shalt.err (!%p2254_p13)
}
  0x18   : > { %s2258_s13 = scalar_lea.vmem %s188_s29, 16  ;;  %s2265_s14 = scalar_lea.vmem %s188_s29, 32 }
  0x19   : > { %p2259_p0 = scmp.ne.s32.totalorder %s188_s29, %s2258_s13  ;;  %p2266_p4 = scmp.lt.s32.totalorder %s188_s29, %s188_s29 }
  0x1a   : > { %p2267_p6 = scmp.lt.s32.totalorder %s2265_s14, %s2258_s13 }
  0x1b   : > { %p2261_p1 = pnand %p2259_p0, %p2247_p9 }
  0x1c   : > { %p2268_p5 = por %p2267_p6, %p2266_p4 }
  0x1d   : > { %p2262_p2 = pneg %p2261_p1 }
  0x1f   : > { %p2269_p3 = pnand %p2268_p5, %p2262_p2 }
  0x21   : > { %2272 = shalt.err (!%p2269_p3)
}
  0x22   : > { %2066 = dma.hbm_to_vmem [thread:$0]  (!%p2396_p7), %s2950_s2, 16, %s188_s29, [#allocation4]  }
  0x23   : > { %p2960_p8 = scmp.ne.s32.totalorder %s2957_s26, 0 }
  0x24   : > { %p2961_p10 = scmp.ne.s32.totalorder (!%p2960_p8), %s2958_s27, 0 }
  0x25   : > { %214 = sbr.rel (%p2960_p8) target bundleno = 630 (0x276), region = 40 }
  0x2c   : > { %2294 = dma.done.wait (%p2961_p10), [#allocation4], 16  }
  0x2d   : > { %2296 = vsyncadd (%p2961_p10), [#allocation4], 4294967280  ;;  %p246_p5 = scmp.lt.s32.totalorder %s2303_s19, 1  ;;  %s262_s17 = smul.u32 192, %s2299_s18  ;;  %vm263_vm0 = vcmask 261120   ;;  %v2318_v0 = vmov 0.0  }
  0x2e   : > { %266 = vst.msk [vmem:[#allocation2 + $0x10] sm:$0xff] %vm263_vm0, %v2318_v0  ;;  %264 = vst.msk [vmem:[#allocation2] sm:$0xff] %vm263_vm0, %v2318_v0  ;;  %v2111_v1 = vld [vmem:[%s2949_s1] sm:$0xff]   ;;  %v2112_v2 = vld [vmem:[%s2949_s1 + $0x8] sm:$0xff]   ;;  %vm430_vm1 = vcmask 392192   ;;  %s251_s13 = smul.u32 24, %s2299_s18 }
  0x2f   : > { %s2976_s19 = smov (!%p246_p5, %s2303_s19), 1  ;;  %265 = vst.msk [vmem:[#allocation2 + $0x8] sm:$0xff] %vm263_vm0, %v2318_v0  ;;  %267 = vst.msk [vmem:[#allocation2 + $0x18] sm:$0xff] %vm263_vm0, %v2318_v0  ;;  %s288_s23 = sshra.s32 %s262_s17, 3  ;;  %1939 = vmatprep.subr.bf16.mxu0 %v2111_v1  ;;  %v2113_v3 = vld [vmem:[%s2949_s1 + $0x10] sm:$0xff]   ;;  %v2114_v4 = vld [vmem:[%s2949_s1 + $0x18] sm:$0xff]  }
  0x30   : > { %268 = vst.msk [vmem:[#allocation2 + $0x20] sm:$0xff] %vm263_vm0, %v2318_v0  ;;  %269 = vst.msk [vmem:[#allocation2 + $0x28] sm:$0xff] %vm263_vm0, %v2318_v0  ;;  %s2057_s26 = smul.u32 216, %s2976_s19  ;;  %s1777_s27 = sshll.u32 %s288_s23, 2  ;;  %1940 = vmatpush3.bf16.msra.mxu0 %v2111_v1  ;;  %1969 = vmatprep.subr.bf16.mxu1 %v2114_v4  ;;  %v2117_v8 = vld [vmem:[%s2949_s1 + $0x30] sm:$0xff]   ;;  %v2118_v9 = vld [vmem:[%s2949_s1 + $0x20] sm:$0xff]  }
  0x31   : > { %270 = vst.msk [vmem:[#allocation2 + $0x30] sm:$0xff] %vm263_vm0, %v2318_v0  ;;  %271 = vst.msk [vmem:[#allocation2 + $0x38] sm:$0xff] %vm263_vm0, %v2318_v0  ;;  %1941 = vmatprep.subr.bf16.mxu0 %v2112_v2  ;;  %1970 = vmatpush3.bf16.msra.mxu1 %v2114_v4  ;;  %v2119_v10 = vld [vmem:[%s2949_s1 + $0x28] sm:$0xff]   ;;  %v2126_v17 = vld [vmem:[%s2949_s1 + $0x38] sm:$0xff]   ;;  %p2724_p3 = scmp.lt.s32.totalorder %s251_s13, 47  ;;  %s2058_s15 = smul.u32 48, %s2976_s19 }
  0x32   : > { %272 = vst.msk [vmem:[#allocation2 + $0x40] sm:$0xff] %vm263_vm0, %v2318_v0  ;;  %273 = vst.msk [vmem:[#allocation2 + $0x48] sm:$0xff] %vm263_vm0, %v2318_v0  ;;  %s250_s30 = scalar_lea.vmem %s2948_s0, %s2057_s26  ;;  %1971 = vmatprep.subr.bf16.mxu1 %v2118_v9  ;;  %v2135_v23 = vld [vmem:[%s2949_s1 + $0x40] sm:$0xff]  }
  0x33   : > { %274 = vst.msk [vmem:[#allocation2 + $0x50] sm:$0xff] %vm263_vm0, %v2318_v0  ;;  %275 = vst.msk [vmem:[#allocation2 + $0x58] sm:$0xff] %vm263_vm0, %v2318_v0  ;;  %s2461_s10 = scalar_lea.vmem %s250_s30, %s1777_s27  ;;  %v2147_v63 = vld [vmem:[%s2951_s3] sm:$0xff]   ;;  %s2978_s13 = smov (!%p2724_p3, %s251_s13), 47 }
  0x34   : > { %276 = vst.msk [vmem:[#allocation2 + $0x60] sm:$0xff] %vm263_vm0, %v2318_v0  ;;  %277 = vst.msk [vmem:[#allocation2 + $0x68] sm:$0xff] %vm263_vm0, %v2318_v0  ;;  %v2115_v5 = vld [vmem:[%s2461_s10] sm:$0xff]   ;;  %v294_v6 = vld [vmem:[%s2461_s10 + $0x8] sm:$0xf]  ;;  %1942 = vmatpush3.bf16.msra.mxu0 %v2112_v2  ;;  %s2757_s18 = sadd.s32 %s2058_s15, %s2978_s13 }
  0x35   : > { %278 = vst.msk [vmem:[#allocation2 + $0x70] sm:$0xff] %vm263_vm0, %v2318_v0  ;;  %279 = vst.msk [vmem:[#allocation2 + $0x78] sm:$0xff] %vm263_vm0, %v2318_v0  ;;  %v295_v7 = vld [vmem:[%s2461_s10 + $0xc] sm:$0xf]  ;;  %1945 = vmatprep.mubr.msk.bf16.mxu0 %vm430_vm1, %v2115_v5  ;;  %1943 = vmatprep.subr.bf16.mxu0 %v2113_v3  ;;  %v296_v11 = vld [vmem:[%s2461_s10 + $0x10] sm:$0xf] }
  0x36   : > { %280 = vst.msk [vmem:[#allocation2 + $0x80] sm:$0xff] %vm263_vm0, %v2318_v0  ;;  %281 = vst.msk [vmem:[#allocation2 + $0x88] sm:$0xff] %vm263_vm0, %v2318_v0  ;;  %v297_v12 = vld [vmem:[%s2461_s10 + $0x14] sm:$0xf]  ;;  %v1811_v13 = vcombine.low %v295_v7, %v296_v11  ;;  %v1779_v14 = vcombine.low %v294_v6, %v295_v7  ;;  %1972 = vmatpush3.bf16.msra.mxu1 %v2118_v9  ;;  %v298_v16 = vld [vmem:[%s2461_s10 + $0x18] sm:$0xf] }
  0x37   : > { %282 = vst.msk [vmem:[#allocation2 + $0x90] sm:$0xff] %vm263_vm0, %v2318_v0  ;;  %283 = vst.msk [vmem:[#allocation2 + $0x98] sm:$0xff] %vm263_vm0, %v2318_v0  ;;  %1973 = vmatprep.subr.bf16.mxu1 %v2119_v10  ;;  %v1780_v15 = vcombine.low %v296_v11, %v297_v12  ;;  %v299_v18 = vld [vmem:[%s2461_s10 + $0x1c] sm:$0xf]  ;;  %v1812_v19 = vcombine.low %v297_v12, %v298_v16  ;;  %v300_v20 = vld [vmem:[%s2461_s10 + $0x20] sm:$0xf] }
  0x38   : > { %284 = vst.msk [vmem:[#allocation2 + $0xa0] sm:$0xff] %vm263_vm0, %v2318_v0  ;;  %285 = vst.msk [vmem:[#allocation2 + $0xa8] sm:$0xff] %vm263_vm0, %v2318_v0  ;;  %1944 = vmatpush3.bf16.msra.mxu0 %v2113_v3  ;;  %1975 = vmatprep.mubr.msk.bf16.mxu1 %vm430_vm1, %v1811_v13  ;;  %v1813_v21 = vcombine.low %v299_v18, %v300_v20  ;;  %v301_v22 = vld [vmem:[%s2461_s10 + $0x24] sm:$0xf]  ;;  %v1781_v24 = vcombine.low %v298_v16, %v299_v18  ;;  %v302_v26 = vld [vmem:[%s2461_s10 + $0x28] sm:$0xf] }
  0x39   : > { %286 = vst.msk [vmem:[#allocation2 + $0xb0] sm:$0xff] %vm263_vm0, %v2318_v0  ;;  %287 = vst.msk [vmem:[#allocation2 + $0xb8] sm:$0xff] %vm263_vm0, %v2318_v0  ;;  %1999 = vmatprep.subr.bf16.mxu0 %v2117_v8  ;;  %v1782_v25 = vcombine.low %v300_v20, %v301_v22  ;;  %v303_v27 = vld [vmem:[%s2461_s10 + $0x2c] sm:$0xf]  ;;  %v1814_v28 = vcombine.low %v301_v22, %v302_v26  ;;  %v304_v29 = vld [vmem:[%s2461_s10 + $0x30] sm:$0xf] }
  0x3a   : > { %1974 = vmatpush3.bf16.msra.mxu1 %v2119_v10  ;;  %v1815_v30 = vcombine.low %v303_v27, %v304_v29  ;;  %v305_v31 = vld [vmem:[%s2461_s10 + $0x34] sm:$0xf]  ;;  %v1783_v32 = vcombine.low %v302_v26, %v303_v27  ;;  %v306_v34 = vld [vmem:[%s2461_s10 + $0x38] sm:$0xf]  ;;  %v307_v35 = vld [vmem:[%s2461_s10 + $0x3c] sm:$0xf] }
  0x3b   : > { %1946 = vmatmul.mubr.msk.bf16.vlgmr.msra.gmra.mrb[0].mxu0 %vm430_vm1, %v1779_v14  ;;  %v1784_v33 = vcombine.low %v304_v29, %v305_v31  ;;  %v1816_v36 = vcombine.low %v305_v31, %v306_v34  ;;  %v308_v37 = vld [vmem:[%s2461_s10 + $0x40] sm:$0xf]  ;;  %v309_v39 = vld [vmem:[%s2461_s10 + $0x44] sm:$0xf]  ;;  %v1785_v40 = vcombine.low %v306_v34, %v307_v35  ;;  %v310_v42 = vld [vmem:[%s2461_s10 + $0x48] sm:$0xf]  ;;  %2029 = vmatprep.subr.bf16.mxu1 %v2147_v63 }
  0x3c   : > { %2000 = vmatpush3.bf16.msra.mxu0 %v2117_v8  ;;  %1949 = vmatprep.mubr.msk.bf16.mxu0 %vm430_vm1, %v1780_v15  ;;  %v1817_v38 = vcombine.low %v307_v35, %v308_v37  ;;  %v1786_v41 = vcombine.low %v308_v37, %v309_v39  ;;  %v311_v43 = vld [vmem:[%s2461_s10 + $0x4c] sm:$0xf]  ;;  %v1818_v44 = vcombine.low %v309_v39, %v310_v42  ;;  %v312_v45 = vld [vmem:[%s2461_s10 + $0x50] sm:$0xf]  ;;  %v313_v47 = vld [vmem:[%s2461_s10 + $0x54] sm:$0xf] }
  0x3d   : > { %2001 = vmatprep.subr.bf16.mxu0 %v2126_v17  ;;  %1976 = vmatmul.mubr.msk.bf16.vlgmr.msra.gmra.mrb[0].mxu1 %vm430_vm1, %v1812_v19  ;;  %v1819_v46 = vcombine.low %v311_v43, %v312_v45  ;;  %v1787_v48 = vcombine.low %v310_v42, %v311_v43  ;;  %v1788_v49 = vcombine.low %v312_v45, %v313_v47  ;;  %v316_v50 = vld [vmem:[%s2461_s10 + $0x60] sm:$0xf]  ;;  %v314_v51 = vld [vmem:[%s2461_s10 + $0x58] sm:$0xf]  ;;  %v315_v52 = vld [vmem:[%s2461_s10 + $0x5c] sm:$0xf] }
  0x3e   : > { %1979 = vmatprep.mubr.msk.bf16.mxu1 %vm430_vm1, %v1813_v21  ;;  %v1820_v53 = vcombine.low %v313_v47, %v314_v51  ;;  %v1821_v54 = vcombine.low %v315_v52, %v316_v50  ;;  %v1789_v55 = vcombine.low %v314_v51, %v315_v52  ;;  %v317_v56 = vld [vmem:[%s2461_s10 + $0x64] sm:$0xf]  ;;  %v318_v57 = vld [vmem:[%s2461_s10 + $0x68] sm:$0xf]  ;;  %v319_v59 = vld [vmem:[%s2461_s10 + $0x6c] sm:$0xf]  ;;  %2030 = vmatpush3.bf16.msra.mxu1 %v2147_v63 }
  0x3f   : > { %v1822_v58 = vcombine.low %v317_v56, %v318_v57  ;;  %v1844_v60 = vcombine.low %v316_v50, %v317_v56  ;;  %v1845_v61 = vcombine.low %v318_v57, %v319_v59  ;;  %v2146_v62 = vld [vmem:[%s2461_s10 + $0x70] sm:$0xff]   ;;  %v2148_v0 = vld [vmem:[%s2951_s3 + $0x8] sm:$0xff]   ;;  %v322_v2 = vld [vmem:[#allocation2] sm:$0xff]  ;;  %s1776_s19 = sshll.u32 %s2757_s18, 3 }
  0x40   : > { %2002 = vmatpush3.bf16.msra.mxu0 %v2126_v17  ;;  %2031 = vmatprep.subr.bf16.mxu1 %v2148_v0  ;;  %v324_v1 = vld [vmem:[#allocation2 + $0x10] sm:$0xff]  ;;  %v325_v4 = vld [vmem:[#allocation2 + $0x18] sm:$0xff]  ;;  %v323_v7 = vld [vmem:[#allocation2 + $0x8] sm:$0xff]  ;;  %s2781_s23 = scalar_lea.vmem %s2953_s5, %s1776_s19 }
  0x41   : > { %2003 = vmatprep.subr.bf16.mxu0 %v2135_v23  ;;  %v328_v16 = vld [vmem:[#allocation2 + $0x30] sm:$0xff]  ;;  %v326_v18 = vld [vmem:[#allocation2 + $0x20] sm:$0xff]  ;;  %v329_v20 = vld [vmem:[#allocation2 + $0x38] sm:$0xff] }
  0x42   : > { %2032 = vmatpush3.bf16.msra.mxu1 %v2148_v0  ;;  %v330_v42 = vld [vmem:[#allocation2 + $0x40] sm:$0xff]  ;;  %v331_v47 = vld [vmem:[#allocation2 + $0x48] sm:$0xff]  ;;  %v336_v0 = vld [vmem:[#allocation2 + $0x70] sm:$0xff] }
  0x43   : > { %1950 = vmatmul.mubr.msk.bf16.gmra.mrb[4].mxu0 %vm430_vm1, %v1781_v24 }
  0x44   : > { %1953 = vmatprep.mubr.msk.bf16.mxu0 %vm430_vm1, %v1782_v25  ;;  %2004 = vmatpush3.bf16.msra.mxu0 %v2135_v23  ;;  %v327_v23 = vld [vmem:[#allocation2 + $0x28] sm:$0xff] }
  0x45   : > { %1980 = vmatmul.mubr.msk.bf16.gmra.mrb[4].mxu1 %vm430_vm1, %v1814_v28 }
  0x46   : > { %1983 = vmatprep.mubr.msk.bf16.mxu1 %vm430_vm1, %v1815_v30 }
  0x4b   : > { %1954 = vmatmul.mubr.msk.bf16.gmra.mrb[8].mxu0 %vm430_vm1, %v1783_v32 }
  0x4c   : > { %1957 = vmatprep.mubr.msk.bf16.mxu0 %vm430_vm1, %v1784_v33 }
  0x4d   : > { %1984 = vmatmul.mubr.msk.bf16.gmra.mrb[8].mxu1 %vm430_vm1, %v1816_v36 }
  0x4e   : > { %1987 = vmatprep.mubr.msk.bf16.mxu1 %vm430_vm1, %v1817_v38 }
  0x53   : > { %1958 = vmatmul.mubr.msk.bf16.gmra.mrb[12].mxu0 %vm430_vm1, %v1785_v40 }
  0x54   : > { %1961 = vmatprep.mubr.msk.bf16.mxu0 %vm430_vm1, %v1786_v41 }
  0x55   : > { %1988 = vmatmul.mubr.msk.bf16.gmra.mrb[12].mxu1 %vm430_vm1, %v1818_v44  ;;  %v333_v44 = vld [vmem:[#allocation2 + $0x58] sm:$0xff] }
  0x56   : > { %1991 = vmatprep.mubr.msk.bf16.mxu1 %vm430_vm1, %v1819_v46 }
  0x5b   : > { %1962 = vmatmul.mubr.msk.bf16.gmra.mrb[16].mxu0 %vm430_vm1, %v1787_v48 }
  0x5c   : > { %1965 = vmatprep.mubr.msk.bf16.mxu0 %vm430_vm1, %v1788_v49 }
  0x5d   : > { %1992 = vmatmul.mubr.msk.bf16.gmra.mrb[16].mxu1 %vm430_vm1, %v1820_v53 }
  0x5e   : > { %1995 = vmatprep.mubr.msk.bf16.mxu1 %vm430_vm1, %v1821_v54 }
  0x63   : > { %1966 = vmatmul.mubr.msk.bf16.gmra.mrb[20].mxu0 %vm430_vm1, %v1789_v55 }
  0x64   : > { %2005 = vmatprep.mubr.msk.bf16.mxu0 %vm430_vm1, %v1781_v24 }
  0x65   : > { %1996 = vmatmul.mubr.msk.bf16.gmra.mrb[20].mxu1 %vm430_vm1, %v1822_v58 }
  0x6b   : > { %2006 = vmatmul.mubr.msk.bf16.vlgmr.msra.gmra.mrb[24].mxu0 %vm430_vm1, %v1782_v25 }
  0x6c   : > { %2009 = vmatprep.mubr.msk.bf16.mxu0 %vm430_vm1, %v1783_v32 }
  0x73   : > { %2010 = vmatmul.mubr.msk.bf16.gmra.mrb[28].mxu0 %vm430_vm1, %v1784_v33 }
  0x74   : > { %2013 = vmatprep.mubr.msk.bf16.mxu0 %vm430_vm1, %v1785_v40  ;;  %v332_v40 = vld [vmem:[#allocation2 + $0x50] sm:$0xff] }
  0x7b   : > { %2014 = vmatmul.mubr.msk.bf16.gmra.mrb[32].mxu0 %vm430_vm1, %v1786_v41 }
  0x7c   : > { %2017 = vmatprep.mubr.msk.bf16.mxu0 %vm430_vm1, %v1787_v48 }
  0x83   : > { %2018 = vmatmul.mubr.msk.bf16.gmra.mrb[36].mxu0 %vm430_vm1, %v1788_v49 }
  0x84   : > { %2021 = vmatprep.mubr.msk.bf16.mxu0 %vm430_vm1, %v1789_v55 }
  0x8b   : > { %2022 = vmatmul.mubr.msk.bf16.gmra.mrb[40].mxu0 %vm430_vm1, %v1844_v60 }
  0x8c   : > { %2025 = vmatprep.mubr.msk.bf16.mxu0 %vm430_vm1, %v1845_v61 }
  0x93   : > { %2026 = vmatmul.mubr.msk.bf16.gmra.mrb[44].mxu0 %vm430_vm1, %v2146_v62 }
 0x10e   : > { %v1947_v3 = vpop.f32.mrb[0].mxu0 }
 0x10f   : > { %v598_v5 = vadd.f32 %v1947_v3, %v324_v1  ;;  %v501_v6 = vpop.f32.mrb[1].mxu0 }
 0x110   : > { %v596_v8 = vadd.f32 %v501_v6, %v322_v2  ;;  %v1948_v9 = vpop.f32.mrb[2].mxu0  ;;  %v1977_v12 = vpop.f32.mrb[0].mxu1  ;;  %v334_v2 = vld [vmem:[#allocation2 + $0x60] sm:$0xff] }
 0x111   : > { %622 = vst.msk [vmem:[#allocation2 + $0x10] sm:$0xff] %vm263_vm0, %v598_v5  ;;  %v599_v10 = vadd.f32 %v1948_v9, %v325_v4  ;;  %v504_v11 = vpop.f32.mrb[3].mxu0  ;;  %v781_v14 = vpop.f32.mrb[1].mxu1  ;;  %v337_v4 = vld [vmem:[#allocation2 + $0x78] sm:$0xff] }
 0x112   : > { %620 = vst.msk [vmem:[#allocation2] sm:$0xff] %vm263_vm0, %v596_v8  ;;  %v597_v13 = vadd.f32 %v504_v11, %v323_v7  ;;  %v1978_v15 = vpop.f32.mrb[2].mxu1  ;;  %v335_v7 = vld [vmem:[#allocation2 + $0x68] sm:$0xff] }
 0x113   : > { %623 = vst.msk [vmem:[#allocation2 + $0x18] sm:$0xff] %vm263_vm0, %v599_v10  ;;  %v784_v17 = vpop.f32.mrb[3].mxu1 }
 0x114   : > { %621 = vst.msk [vmem:[#allocation2 + $0x8] sm:$0xff] %vm263_vm0, %v597_v13 }
 0x116   : > { %v1951_v19 = vpop.f32.mrb[4].mxu0 }
 0x117   : > { %v602_v21 = vadd.f32 %v1951_v19, %v328_v16  ;;  %v517_v22 = vpop.f32.mrb[5].mxu0 }
 0x118   : > { %v600_v24 = vadd.f32 %v517_v22, %v326_v18  ;;  %v1952_v25 = vpop.f32.mrb[6].mxu0  ;;  %v646_v26 = vld [vmem:[#allocation2 + $0x10] sm:$0xff]  ;;  %v1981_v31 = vpop.f32.mrb[4].mxu1 }
 0x119   : > { %626 = vst.msk [vmem:[#allocation2 + $0x30] sm:$0xff] %vm263_vm0, %v602_v21  ;;  %v603_v27 = vadd.f32 %v1952_v25, %v329_v20  ;;  %v878_v28 = vadd.f32 %v1977_v12, %v646_v26  ;;  %v520_v29 = vpop.f32.mrb[7].mxu0  ;;  %v644_v30 = vld [vmem:[#allocation2] sm:$0xff]  ;;  %v797_v35 = vpop.f32.mrb[5].mxu1 }
 0x11a   : > { %624 = vst.msk [vmem:[#allocation2 + $0x20] sm:$0xff] %vm263_vm0, %v600_v24  ;;  %v601_v32 = vadd.f32 %v520_v29, %v327_v23  ;;  %v876_v33 = vadd.f32 %v781_v14, %v644_v30  ;;  %v647_v34 = vld [vmem:[#allocation2 + $0x18] sm:$0xff]  ;;  %v1982_v38 = vpop.f32.mrb[6].mxu1  ;;  %v340_v24 = vld [vmem:[#allocation2 + $0x90] sm:$0xff]  ;;  %v338_v26 = vld [vmem:[#allocation2 + $0x80] sm:$0xff] }
 0x11b   : > { %627 = vst.msk [vmem:[#allocation2 + $0x38] sm:$0xff] %vm263_vm0, %v603_v27  ;;  %902 = vst.msk [vmem:[#allocation2 + $0x10] sm:$0xff] %vm263_vm0, %v878_v28  ;;  %v879_v36 = vadd.f32 %v1978_v15, %v647_v34  ;;  %v645_v37 = vld [vmem:[#allocation2 + $0x8] sm:$0xff]  ;;  %v800_v41 = vpop.f32.mrb[7].mxu1  ;;  %v341_v28 = vld [vmem:[#allocation2 + $0x98] sm:$0xff] }
 0x11c   : > { %625 = vst.msk [vmem:[#allocation2 + $0x28] sm:$0xff] %vm263_vm0, %v601_v32  ;;  %900 = vst.msk [vmem:[#allocation2] sm:$0xff] %vm263_vm0, %v876_v33  ;;  %v877_v39 = vadd.f32 %v784_v17, %v645_v37 }
 0x11d   : > { %903 = vst.msk [vmem:[#allocation2 + $0x18] sm:$0xff] %vm263_vm0, %v879_v36 }
 0x11e   : > { %901 = vst.msk [vmem:[#allocation2 + $0x8] sm:$0xff] %vm263_vm0, %v877_v39  ;;  %v1955_v43 = vpop.f32.mrb[8].mxu0 }
 0x11f   : > { %v606_v45 = vadd.f32 %v1955_v43, %v332_v40  ;;  %v533_v46 = vpop.f32.mrb[9].mxu0 }
 0x120   : > { %v604_v48 = vadd.f32 %v533_v46, %v330_v42  ;;  %v1956_v49 = vpop.f32.mrb[10].mxu0  ;;  %v650_v50 = vld [vmem:[#allocation2 + $0x30] sm:$0xff]  ;;  %v1985_v55 = vpop.f32.mrb[8].mxu1 }
 0x121   : > { %630 = vst.msk [vmem:[#allocation2 + $0x50] sm:$0xff] %vm263_vm0, %v606_v45  ;;  %v607_v51 = vadd.f32 %v1956_v49, %v333_v44  ;;  %v882_v52 = vadd.f32 %v1981_v31, %v650_v50  ;;  %v536_v53 = vpop.f32.mrb[11].mxu0  ;;  %v648_v54 = vld [vmem:[#allocation2 + $0x20] sm:$0xff]  ;;  %v813_v59 = vpop.f32.mrb[9].mxu1  ;;  %v339_v31 = vld [vmem:[#allocation2 + $0x88] sm:$0xff] }
 0x122   : > { %628 = vst.msk [vmem:[#allocation2 + $0x40] sm:$0xff] %vm263_vm0, %v604_v48  ;;  %v605_v56 = vadd.f32 %v536_v53, %v331_v47  ;;  %v880_v57 = vadd.f32 %v797_v35, %v648_v54  ;;  %v651_v58 = vld [vmem:[#allocation2 + $0x38] sm:$0xff]  ;;  %v1986_v62 = vpop.f32.mrb[10].mxu1  ;;  %v344_v48 = vld [vmem:[#allocation2 + $0xb0] sm:$0xff]  ;;  %v342_v50 = vld [vmem:[#allocation2 + $0xa0] sm:$0xff] }
 0x123   : > { %631 = vst.msk [vmem:[#allocation2 + $0x58] sm:$0xff] %vm263_vm0, %v607_v51  ;;  %906 = vst.msk [vmem:[#allocation2 + $0x30] sm:$0xff] %vm263_vm0, %v882_v52  ;;  %v883_v60 = vadd.f32 %v1982_v38, %v651_v58  ;;  %v649_v61 = vld [vmem:[#allocation2 + $0x28] sm:$0xff]  ;;  %v816_v1 = vpop.f32.mrb[11].mxu1  ;;  %v345_v52 = vld [vmem:[#allocation2 + $0xb8] sm:$0xff] }
 0x124   : > { %629 = vst.msk [vmem:[#allocation2 + $0x48] sm:$0xff] %vm263_vm0, %v605_v56  ;;  %904 = vst.msk [vmem:[#allocation2 + $0x20] sm:$0xff] %vm263_vm0, %v880_v57  ;;  %v881_v63 = vadd.f32 %v800_v41, %v649_v61 }
 0x125   : > { %907 = vst.msk [vmem:[#allocation2 + $0x38] sm:$0xff] %vm263_vm0, %v883_v60 }
 0x126   : > { %905 = vst.msk [vmem:[#allocation2 + $0x28] sm:$0xff] %vm263_vm0, %v881_v63  ;;  %v1959_v3 = vpop.f32.mrb[12].mxu0 }
 0x127   : > { %v610_v5 = vadd.f32 %v1959_v3, %v336_v0  ;;  %v549_v6 = vpop.f32.mrb[13].mxu0 }
 0x128   : > { %v608_v8 = vadd.f32 %v549_v6, %v334_v2  ;;  %v1960_v9 = vpop.f32.mrb[14].mxu0  ;;  %v654_v10 = vld [vmem:[#allocation2 + $0x50] sm:$0xff]  ;;  %v1989_v15 = vpop.f32.mrb[12].mxu1 }
 0x129   : > { %634 = vst.msk [vmem:[#allocation2 + $0x70] sm:$0xff] %vm263_vm0, %v610_v5  ;;  %v611_v11 = vadd.f32 %v1960_v9, %v337_v4  ;;  %v886_v12 = vadd.f32 %v1985_v55, %v654_v10  ;;  %v552_v13 = vpop.f32.mrb[15].mxu0  ;;  %v652_v14 = vld [vmem:[#allocation2 + $0x40] sm:$0xff]  ;;  %v829_v19 = vpop.f32.mrb[13].mxu1  ;;  %v343_v55 = vld [vmem:[#allocation2 + $0xa8] sm:$0xff]  ;;  %v926_v9 = vld [vmem:[#allocation2 + $0x10] sm:$0xff] }
 0x12a   : > { %632 = vst.msk [vmem:[#allocation2 + $0x60] sm:$0xff] %vm263_vm0, %v608_v8  ;;  %v609_v16 = vadd.f32 %v552_v13, %v335_v7  ;;  %v884_v17 = vadd.f32 %v813_v59, %v652_v14  ;;  %v655_v18 = vld [vmem:[#allocation2 + $0x58] sm:$0xff]  ;;  %v1990_v22 = vpop.f32.mrb[14].mxu1 }
 0x12b   : > { %635 = vst.msk [vmem:[#allocation2 + $0x78] sm:$0xff] %vm263_vm0, %v611_v11  ;;  %910 = vst.msk [vmem:[#allocation2 + $0x50] sm:$0xff] %vm263_vm0, %v886_v12  ;;  %v887_v20 = vadd.f32 %v1986_v62, %v655_v18  ;;  %v653_v21 = vld [vmem:[#allocation2 + $0x48] sm:$0xff]  ;;  %v832_v25 = vpop.f32.mrb[15].mxu1  ;;  %v924_v12 = vld [vmem:[#allocation2] sm:$0xff] }
 0x12c   : > { %633 = vst.msk [vmem:[#allocation2 + $0x68] sm:$0xff] %vm263_vm0, %v609_v16  ;;  %908 = vst.msk [vmem:[#allocation2 + $0x40] sm:$0xff] %vm263_vm0, %v884_v17  ;;  %v885_v23 = vadd.f32 %v816_v1, %v653_v21  ;;  %v927_v16 = vld [vmem:[#allocation2 + $0x18] sm:$0xff]  ;;  %v925_v21 = vld [vmem:[#allocation2 + $0x8] sm:$0xff] }
 0x12d   : > { %911 = vst.msk [vmem:[#allocation2 + $0x58] sm:$0xff] %vm263_vm0, %v887_v20 }
 0x12e   : > { %909 = vst.msk [vmem:[#allocation2 + $0x48] sm:$0xff] %vm263_vm0, %v885_v23  ;;  %v1963_v27 = vpop.f32.mrb[16].mxu0 }
 0x12f   : > { %v614_v29 = vadd.f32 %v1963_v27, %v340_v24  ;;  %v565_v30 = vpop.f32.mrb[17].mxu0 }
 0x130   : > { %v612_v32 = vadd.f32 %v565_v30, %v338_v26  ;;  %v1964_v33 = vpop.f32.mrb[18].mxu0  ;;  %v658_v34 = vld [vmem:[#allocation2 + $0x70] sm:$0xff]  ;;  %v1993_v39 = vpop.f32.mrb[16].mxu1 }
 0x131   : > { %638 = vst.msk [vmem:[#allocation2 + $0x90] sm:$0xff] %vm263_vm0, %v614_v29  ;;  %v615_v35 = vadd.f32 %v1964_v33, %v341_v28  ;;  %v890_v36 = vadd.f32 %v1989_v15, %v658_v34  ;;  %v568_v37 = vpop.f32.mrb[19].mxu0  ;;  %v656_v38 = vld [vmem:[#allocation2 + $0x60] sm:$0xff]  ;;  %v845_v43 = vpop.f32.mrb[17].mxu1  ;;  %v930_v29 = vld [vmem:[#allocation2 + $0x30] sm:$0xff] }
 0x132   : > { %636 = vst.msk [vmem:[#allocation2 + $0x80] sm:$0xff] %vm263_vm0, %v612_v32  ;;  %v613_v40 = vadd.f32 %v568_v37, %v339_v31  ;;  %v888_v41 = vadd.f32 %v829_v19, %v656_v38  ;;  %v659_v42 = vld [vmem:[#allocation2 + $0x78] sm:$0xff]  ;;  %v1994_v46 = vpop.f32.mrb[18].mxu1  ;;  %v928_v32 = vld [vmem:[#allocation2 + $0x20] sm:$0xff] }
 0x133   : > { %639 = vst.msk [vmem:[#allocation2 + $0x98] sm:$0xff] %vm263_vm0, %v615_v35  ;;  %914 = vst.msk [vmem:[#allocation2 + $0x70] sm:$0xff] %vm263_vm0, %v890_v36  ;;  %v891_v44 = vadd.f32 %v1990_v22, %v659_v42  ;;  %v657_v45 = vld [vmem:[#allocation2 + $0x68] sm:$0xff]  ;;  %v848_v49 = vpop.f32.mrb[19].mxu1  ;;  %v2606_v34 = vld [vmem:[#allocation3] ss:$0 sm:$0xff] }
 0x134   : > { %637 = vst.msk [vmem:[#allocation2 + $0x88] sm:$0xff] %vm263_vm0, %v613_v40  ;;  %912 = vst.msk [vmem:[#allocation2 + $0x60] sm:$0xff] %vm263_vm0, %v888_v41  ;;  %v889_v47 = vadd.f32 %v832_v25, %v657_v45  ;;  %v931_v36 = vld [vmem:[#allocation2 + $0x38] sm:$0xff]  ;;  %v929_v40 = vld [vmem:[#allocation2 + $0x28] sm:$0xff] }
 0x135   : > { %915 = vst.msk [vmem:[#allocation2 + $0x78] sm:$0xff] %vm263_vm0, %v891_v44 }
 0x136   : > { %913 = vst.msk [vmem:[#allocation2 + $0x68] sm:$0xff] %vm263_vm0, %v889_v47  ;;  %v1967_v51 = vpop.f32.mrb[20].mxu0 }
 0x137   : > { %v618_v53 = vadd.f32 %v1967_v51, %v344_v48  ;;  %v581_v54 = vpop.f32.mrb[21].mxu0  ;;  %v934_v51 = vld [vmem:[#allocation2 + $0x50] sm:$0xff] }
 0x138   : > { %v616_v56 = vadd.f32 %v581_v54, %v342_v50  ;;  %v1968_v57 = vpop.f32.mrb[22].mxu0  ;;  %v662_v58 = vld [vmem:[#allocation2 + $0x90] sm:$0xff]  ;;  %v1997_v63 = vpop.f32.mrb[20].mxu1 }
 0x139   : > { %642 = vst.msk [vmem:[#allocation2 + $0xb0] sm:$0xff] %vm263_vm0, %v618_v53  ;;  %v619_v59 = vadd.f32 %v1968_v57, %v345_v52  ;;  %v894_v60 = vadd.f32 %v1993_v39, %v662_v58  ;;  %v584_v61 = vpop.f32.mrb[23].mxu0  ;;  %v660_v62 = vld [vmem:[#allocation2 + $0x80] sm:$0xff]  ;;  %v861_v3 = vpop.f32.mrb[21].mxu1 }
 0x13a   : > { %640 = vst.msk [vmem:[#allocation2 + $0xa0] sm:$0xff] %vm263_vm0, %v616_v56  ;;  %v617_v0 = vadd.f32 %v584_v61, %v343_v55  ;;  %v892_v1 = vadd.f32 %v845_v43, %v660_v62  ;;  %v663_v2 = vld [vmem:[#allocation2 + $0x98] sm:$0xff]  ;;  %v1998_v6 = vpop.f32.mrb[22].mxu1  ;;  %v932_v56 = vld [vmem:[#allocation2 + $0x40] sm:$0xff] }
 0x13b   : > { %643 = vst.msk [vmem:[#allocation2 + $0xb8] sm:$0xff] %vm263_vm0, %v619_v59  ;;  %918 = vst.msk [vmem:[#allocation2 + $0x90] sm:$0xff] %vm263_vm0, %v894_v60  ;;  %v895_v4 = vadd.f32 %v1994_v46, %v663_v2  ;;  %v661_v5 = vld [vmem:[#allocation2 + $0x88] sm:$0xff]  ;;  %v864_v8 = vpop.f32.mrb[23].mxu1  ;;  %v935_v60 = vld [vmem:[#allocation2 + $0x58] sm:$0xff] }
 0x13c   : > { %641 = vst.msk [vmem:[#allocation2 + $0xa8] sm:$0xff] %vm263_vm0, %v617_v0  ;;  %916 = vst.msk [vmem:[#allocation2 + $0x80] sm:$0xff] %vm263_vm0, %v892_v1  ;;  %v893_v7 = vadd.f32 %v848_v49, %v661_v5  ;;  %v933_v1 = vld [vmem:[#allocation2 + $0x48] sm:$0xff] }
 0x13d   : > { %919 = vst.msk [vmem:[#allocation2 + $0x98] sm:$0xff] %vm263_vm0, %v895_v4 }
 0x13e   : > { %917 = vst.msk [vmem:[#allocation2 + $0x88] sm:$0xff] %vm263_vm0, %v893_v7  ;;  %v2007_v10 = vpop.f32.mrb[24].mxu0 }
 0x13f   : > { %v1122_v11 = vadd.f32 %v2007_v10, %v926_v9  ;;  %v1025_v13 = vpop.f32.mrb[25].mxu0 }
 0x140   : > { %v1120_v14 = vadd.f32 %v1025_v13, %v924_v12  ;;  %v666_v15 = vld [vmem:[#allocation2 + $0xb0] sm:$0xff]  ;;  %v2008_v17 = vpop.f32.mrb[26].mxu0 }
 0x141   : > { %1146 = vst.msk [vmem:[#allocation2 + $0x10] sm:$0xff] %vm263_vm0, %v1122_v11  ;;  %v898_v18 = vadd.f32 %v1997_v63, %v666_v15  ;;  %v1123_v19 = vadd.f32 %v2008_v17, %v927_v16  ;;  %v664_v20 = vld [vmem:[#allocation2 + $0xa0] sm:$0xff]  ;;  %v1028_v22 = vpop.f32.mrb[27].mxu0  ;;  %v938_v13 = vld [vmem:[#allocation2 + $0x70] sm:$0xff] }
 0x142   : > { %1144 = vst.msk [vmem:[#allocation2] sm:$0xff] %vm263_vm0, %v1120_v14  ;;  %v896_v23 = vadd.f32 %v861_v3, %v664_v20  ;;  %v1121_v24 = vadd.f32 %v1028_v22, %v925_v21  ;;  %v667_v25 = vld [vmem:[#allocation2 + $0xb8] sm:$0xff] }
 0x143   : > { %922 = vst.msk [vmem:[#allocation2 + $0xb0] sm:$0xff] %vm263_vm0, %v898_v18  ;;  %1147 = vst.msk [vmem:[#allocation2 + $0x18] sm:$0xff] %vm263_vm0, %v1123_v19  ;;  %v899_v26 = vadd.f32 %v1998_v6, %v667_v25  ;;  %v665_v27 = vld [vmem:[#allocation2 + $0xa8] sm:$0xff]  ;;  %v936_v18 = vld [vmem:[#allocation2 + $0x60] sm:$0xff] }
 0x144   : > { %920 = vst.msk [vmem:[#allocation2 + $0xa0] sm:$0xff] %vm263_vm0, %v896_v23  ;;  %1145 = vst.msk [vmem:[#allocation2 + $0x8] sm:$0xff] %vm263_vm0, %v1121_v24  ;;  %v897_v28 = vadd.f32 %v864_v8, %v665_v27  ;;  %v939_v22 = vld [vmem:[#allocation2 + $0x78] sm:$0xff]  ;;  %v937_v27 = vld [vmem:[#allocation2 + $0x68] sm:$0xff] }
 0x145   : > { %923 = vst.msk [vmem:[#allocation2 + $0xb8] sm:$0xff] %vm263_vm0, %v899_v26 }
 0x146   : > { %921 = vst.msk [vmem:[#allocation2 + $0xa8] sm:$0xff] %vm263_vm0, %v897_v28  ;;  %v2011_v30 = vpop.f32.mrb[28].mxu0 }
 0x147   : > { %v1126_v31 = vadd.f32 %v2011_v30, %v930_v29  ;;  %v1041_v33 = vpop.f32.mrb[29].mxu0 }
 0x148   : > { %v1124_v35 = vadd.f32 %v1041_v33, %v928_v32  ;;  %v2012_v37 = vpop.f32.mrb[30].mxu0  ;;  %v1170_v38 = vld [vmem:[#allocation2 + $0x10] sm:$0xff] }
 0x149   : > { %1150 = vst.msk [vmem:[#allocation2 + $0x30] sm:$0xff] %vm263_vm0, %v1126_v31  ;;  %v1127_v39 = vadd.f32 %v2012_v37, %v931_v36  ;;  %v1044_v41 = vpop.f32.mrb[31].mxu0  ;;  %v1168_v42 = vld [vmem:[#allocation2] sm:$0xff]  ;;  %v1201_v47 = vadd.f32 %v2606_v34, %v1170_v38 }
 0x14a   : > { %1148 = vst.msk [vmem:[#allocation2 + $0x20] sm:$0xff] %vm263_vm0, %v1124_v35  ;;  %v1125_v43 = vadd.f32 %v1044_v41, %v929_v40  ;;  %v1199_v44 = vadd.f32 %v2606_v34, %v1168_v42  ;;  %v1171_v45 = vld [vmem:[#allocation2 + $0x18] sm:$0xff]  ;;  %v942_v40 = vld [vmem:[#allocation2 + $0x90] sm:$0xff] }
 0x14b   : > { %1151 = vst.msk [vmem:[#allocation2 + $0x38] sm:$0xff] %vm263_vm0, %v1127_v39  ;;  %v1169_v46 = vld [vmem:[#allocation2 + $0x8] sm:$0xff]  ;;  %v1202_v48 = vadd.f32 %v2606_v34, %v1171_v45  ;;  %v1225_v58 = vmax.f32 %v1201_v47, 0.0  ;;  %v940_v45 = vld [vmem:[#allocation2 + $0x80] sm:$0xff] }
 0x14c   : > { %1149 = vst.msk [vmem:[#allocation2 + $0x28] sm:$0xff] %vm263_vm0, %v1125_v43  ;;  %v1200_v49 = vadd.f32 %v2606_v34, %v1169_v46  ;;  %v1223_v53 = vmax.f32 %v1199_v44, 0.0 }
 0x14d   : > { %v1226_v50 = vmax.f32 %v1202_v48, 0.0 }
 0x14e   : > { %v2015_v52 = vpop.f32.mrb[32].mxu0  ;;  %v1224_v54 = vmax.f32 %v1200_v49, 0.0  ;;  %v943_v49 = vld [vmem:[#allocation2 + $0x98] sm:$0xff] }
 0x14f   : > { %v1130_v55 = vadd.f32 %v2015_v52, %v934_v51  ;;  %v1057_v57 = vpop.f32.mrb[33].mxu0  ;;  %v1248_v3 = vpack.c.bf16 %v1226_v50, %v1225_v58 }
 0x150   : > { %v1128_v59 = vadd.f32 %v1057_v57, %v932_v56  ;;  %v2016_v61 = vpop.f32.mrb[34].mxu0  ;;  %v1247_v62 = vpack.c.bf16 %v1224_v54, %v1223_v53  ;;  %v1174_v63 = vld [vmem:[#allocation2 + $0x30] sm:$0xff]  ;;  %v941_v54 = vld [vmem:[#allocation2 + $0x88] sm:$0xff] }
 0x151   : > { %1154 = vst.msk [vmem:[#allocation2 + $0x50] sm:$0xff] %vm263_vm0, %v1130_v55  ;;  %v1131_v0 = vadd.f32 %v2016_v61, %v935_v60  ;;  %v1060_v2 = vpop.f32.mrb[35].mxu0  ;;  %v1172_v4 = vld [vmem:[#allocation2 + $0x20] sm:$0xff]  ;;  %v1205_v9 = vadd.f32 %v2606_v34, %v1174_v63 }
 0x152   : > { %1152 = vst.msk [vmem:[#allocation2 + $0x40] sm:$0xff] %vm263_vm0, %v1128_v59  ;;  %v1129_v5 = vadd.f32 %v1060_v2, %v933_v1  ;;  %2033 = vmatprep.mubr.msk.bf16.mxu1 %vm263_vm0, %v1247_v62  ;;  %v1203_v6 = vadd.f32 %v2606_v34, %v1172_v4  ;;  %v1175_v7 = vld [vmem:[#allocation2 + $0x38] sm:$0xff]  ;;  %v946_v2 = vld [vmem:[#allocation2 + $0xb0] sm:$0xff] }
 0x153   : > { %1155 = vst.msk [vmem:[#allocation2 + $0x58] sm:$0xff] %vm263_vm0, %v1131_v0  ;;  %2034 = vmatmul.mubr.msk.bf16.vlgmr.msra.gmra.mrb[24].mxu1 %vm263_vm0, %v1248_v3  ;;  %v1173_v8 = vld [vmem:[#allocation2 + $0x28] sm:$0xff]  ;;  %v1206_v10 = vadd.f32 %v2606_v34, %v1175_v7  ;;  %v1229_v20 = vmax.f32 %v1205_v9, 0.0  ;;  %v944_v7 = vld [vmem:[#allocation2 + $0xa0] sm:$0xff] }
 0x154   : > { %1153 = vst.msk [vmem:[#allocation2 + $0x48] sm:$0xff] %vm263_vm0, %v1129_v5  ;;  %v1204_v11 = vadd.f32 %v2606_v34, %v1173_v8  ;;  %v1227_v15 = vmax.f32 %v1203_v6, 0.0 }
 0x155   : > { %v1230_v12 = vmax.f32 %v1206_v10, 0.0 }
 0x156   : > { %v2019_v14 = vpop.f32.mrb[36].mxu0  ;;  %v1228_v16 = vmax.f32 %v1204_v11, 0.0  ;;  %v947_v11 = vld [vmem:[#allocation2 + $0xb8] sm:$0xff] }
 0x157   : > { %v1134_v17 = vadd.f32 %v2019_v14, %v938_v13  ;;  %v1073_v19 = vpop.f32.mrb[37].mxu0  ;;  %v1250_v29 = vpack.c.bf16 %v1230_v12, %v1229_v20 }
 0x158   : > { %v1132_v21 = vadd.f32 %v1073_v19, %v936_v18  ;;  %v2020_v23 = vpop.f32.mrb[38].mxu0  ;;  %v1249_v24 = vpack.c.bf16 %v1228_v16, %v1227_v15  ;;  %v1178_v25 = vld [vmem:[#allocation2 + $0x50] sm:$0xff]  ;;  %v945_v16 = vld [vmem:[#allocation2 + $0xa8] sm:$0xff] }
 0x159   : > { %1158 = vst.msk [vmem:[#allocation2 + $0x70] sm:$0xff] %vm263_vm0, %v1134_v17  ;;  %v1135_v26 = vadd.f32 %v2020_v23, %v939_v22  ;;  %v1076_v28 = vpop.f32.mrb[39].mxu0  ;;  %v1176_v30 = vld [vmem:[#allocation2 + $0x40] sm:$0xff]  ;;  %v1209_v36 = vadd.f32 %v2606_v34, %v1178_v25 }
 0x15a   : > { %1156 = vst.msk [vmem:[#allocation2 + $0x60] sm:$0xff] %vm263_vm0, %v1132_v21  ;;  %v1133_v31 = vadd.f32 %v1076_v28, %v937_v27  ;;  %2037 = vmatprep.mubr.msk.bf16.mxu1 %vm263_vm0, %v1249_v24  ;;  %v1207_v32 = vadd.f32 %v2606_v34, %v1176_v30  ;;  %v1179_v33 = vld [vmem:[#allocation2 + $0x58] sm:$0xff] }
 0x15b   : > { %1159 = vst.msk [vmem:[#allocation2 + $0x78] sm:$0xff] %vm263_vm0, %v1135_v26  ;;  %2038 = vmatmul.mubr.msk.bf16.gmra.mrb[28].mxu1 %vm263_vm0, %v1250_v29  ;;  %v1177_v35 = vld [vmem:[#allocation2 + $0x48] sm:$0xff]  ;;  %v1210_v37 = vadd.f32 %v2606_v34, %v1179_v33  ;;  %v1233_v47 = vmax.f32 %v1209_v36, 0.0 }
 0x15c   : > { %1157 = vst.msk [vmem:[#allocation2 + $0x68] sm:$0xff] %vm263_vm0, %v1133_v31  ;;  %v1208_v38 = vadd.f32 %v2606_v34, %v1177_v35  ;;  %v1231_v42 = vmax.f32 %v1207_v32, 0.0 }
 0x15d   : > { %v1234_v39 = vmax.f32 %v1210_v37, 0.0 }
 0x15e   : > { %v2023_v41 = vpop.f32.mrb[40].mxu0  ;;  %v1232_v43 = vmax.f32 %v1208_v38, 0.0 }
 0x15f   : > { %v1138_v44 = vadd.f32 %v2023_v41, %v942_v40  ;;  %v1089_v46 = vpop.f32.mrb[41].mxu0  ;;  %v1252_v56 = vpack.c.bf16 %v1234_v39, %v1233_v47 }
 0x160   : > { %v1136_v48 = vadd.f32 %v1089_v46, %v940_v45  ;;  %v2024_v50 = vpop.f32.mrb[42].mxu0  ;;  %v1251_v51 = vpack.c.bf16 %v1232_v43, %v1231_v42  ;;  %v1182_v52 = vld [vmem:[#allocation2 + $0x70] sm:$0xff] }
 0x161   : > { %1162 = vst.msk [vmem:[#allocation2 + $0x90] sm:$0xff] %vm263_vm0, %v1138_v44  ;;  %v1139_v53 = vadd.f32 %v2024_v50, %v943_v49  ;;  %v1092_v55 = vpop.f32.mrb[43].mxu0  ;;  %v1180_v57 = vld [vmem:[#allocation2 + $0x60] sm:$0xff]  ;;  %v1213_v62 = vadd.f32 %v2606_v34, %v1182_v52 }
 0x162   : > { %1160 = vst.msk [vmem:[#allocation2 + $0x80] sm:$0xff] %vm263_vm0, %v1136_v48  ;;  %v1137_v58 = vadd.f32 %v1092_v55, %v941_v54  ;;  %2041 = vmatprep.mubr.msk.bf16.mxu1 %vm263_vm0, %v1251_v51  ;;  %v1211_v59 = vadd.f32 %v2606_v34, %v1180_v57  ;;  %v1183_v60 = vld [vmem:[#allocation2 + $0x78] sm:$0xff]  ;;  %v1447_v48 = vlaneseq  ;;  %v2667_v50 = vld [vmem:[%s2952_s4] ss:$0 sm:$0xff] }
 0x163   : > { %1163 = vst.msk [vmem:[#allocation2 + $0x98] sm:$0xff] %vm263_vm0, %v1139_v53  ;;  %2042 = vmatmul.mubr.msk.bf16.gmra.mrb[32].mxu1 %vm263_vm0, %v1252_v56  ;;  %v1181_v61 = vld [vmem:[#allocation2 + $0x68] sm:$0xff]  ;;  %v1214_v63 = vadd.f32 %v2606_v34, %v1183_v60  ;;  %v1237_v9 = vmax.f32 %v1213_v62, 0.0 }
 0x164   : > { %1161 = vst.msk [vmem:[#allocation2 + $0x88] sm:$0xff] %vm263_vm0, %v1137_v58  ;;  %v1212_v0 = vadd.f32 %v2606_v34, %v1181_v61  ;;  %v1235_v4 = vmax.f32 %v1211_v59, 0.0  ;;  %v1448_v49 = vand.u32 127, %v1447_v48 }
 0x165   : > { %v1238_v1 = vmax.f32 %v1214_v63, 0.0 }
 0x166   : > { %v2027_v3 = vpop.f32.mrb[44].mxu0  ;;  %v1236_v5 = vmax.f32 %v1212_v0, 0.0  ;;  %vm1449_vm2 = vcmp.ge.s32.totalorder %v1448_v49, 54  ;;  %vm1450_vm3 = vcmp.lt.s32.totalorder %v1448_v49, 63 }
 0x167   : > { %v1142_v6 = vadd.f32 %v2027_v3, %v946_v2  ;;  %v1105_v8 = vpop.f32.mrb[45].mxu0  ;;  %v1254_v18 = vpack.c.bf16 %v1238_v1, %v1237_v9  ;;  %vm2669_vm4 = vmand %vm1449_vm2, %vm1450_vm3 }
 0x168   : > { %v1140_v10 = vadd.f32 %v1105_v8, %v944_v7  ;;  %v2028_v12 = vpop.f32.mrb[46].mxu0  ;;  %v1253_v13 = vpack.c.bf16 %v1236_v5, %v1235_v4  ;;  %v1186_v14 = vld [vmem:[#allocation2 + $0x90] sm:$0xff] }
 0x169   : > { %1166 = vst.msk [vmem:[#allocation2 + $0xb0] sm:$0xff] %vm263_vm0, %v1142_v6  ;;  %v1143_v15 = vadd.f32 %v2028_v12, %v947_v11  ;;  %v1108_v17 = vpop.f32.mrb[47].mxu0  ;;  %v1184_v19 = vld [vmem:[#allocation2 + $0x80] sm:$0xff]  ;;  %v1217_v24 = vadd.f32 %v2606_v34, %v1186_v14 }
 0x16a   : > { %1164 = vst.msk [vmem:[#allocation2 + $0xa0] sm:$0xff] %vm263_vm0, %v1140_v10  ;;  %v1141_v20 = vadd.f32 %v1108_v17, %v945_v16  ;;  %2045 = vmatprep.mubr.msk.bf16.mxu1 %vm263_vm0, %v1253_v13  ;;  %v1215_v21 = vadd.f32 %v2606_v34, %v1184_v19  ;;  %v1187_v22 = vld [vmem:[#allocation2 + $0x98] sm:$0xff] }
 0x16b   : > { %1167 = vst.msk [vmem:[#allocation2 + $0xb8] sm:$0xff] %vm263_vm0, %v1143_v15  ;;  %2046 = vmatmul.mubr.msk.bf16.gmra.mrb[36].mxu1 %vm263_vm0, %v1254_v18  ;;  %v1185_v23 = vld [vmem:[#allocation2 + $0x88] sm:$0xff]  ;;  %v1218_v25 = vadd.f32 %v2606_v34, %v1187_v22  ;;  %v1241_v30 = vmax.f32 %v1217_v24, 0.0 }
 0x16c   : > { %1165 = vst.msk [vmem:[#allocation2 + $0xa8] sm:$0xff] %vm263_vm0, %v1141_v20  ;;  %v1216_v26 = vadd.f32 %v2606_v34, %v1185_v23  ;;  %v1239_v28 = vmax.f32 %v1215_v21, 0.0 }
 0x16d   : > { %v1242_v27 = vmax.f32 %v1218_v25, 0.0 }
 0x16e   : > { %v1240_v29 = vmax.f32 %v1216_v26, 0.0 }
 0x16f   : > { %v1256_v33 = vpack.c.bf16 %v1242_v27, %v1241_v30 }
 0x170   : > { %v1255_v31 = vpack.c.bf16 %v1240_v29, %v1239_v28  ;;  %v1190_v32 = vld [vmem:[#allocation2 + $0xb0] sm:$0xff] }
 0x171   : > { %v1188_v35 = vld [vmem:[#allocation2 + $0xa0] sm:$0xff]  ;;  %v1221_v39 = vadd.f32 %v2606_v34, %v1190_v32 }
 0x172   : > { %2049 = vmatprep.mubr.msk.bf16.mxu1 %vm263_vm0, %v1255_v31  ;;  %v1219_v36 = vadd.f32 %v2606_v34, %v1188_v35  ;;  %v1191_v37 = vld [vmem:[#allocation2 + $0xb8] sm:$0xff] }
 0x173   : > { %2050 = vmatmul.mubr.msk.bf16.gmra.mrb[40].mxu1 %vm263_vm0, %v1256_v33  ;;  %v1189_v38 = vld [vmem:[#allocation2 + $0xa8] sm:$0xff]  ;;  %v1222_v40 = vadd.f32 %v2606_v34, %v1191_v37  ;;  %v1245_v45 = vmax.f32 %v1221_v39, 0.0 }
 0x174   : > { %v1220_v41 = vadd.f32 %v2606_v34, %v1189_v38  ;;  %v1243_v43 = vmax.f32 %v1219_v36, 0.0 }
 0x175   : > { %v1246_v42 = vmax.f32 %v1222_v40, 0.0 }
 0x176   : > { %v1244_v44 = vmax.f32 %v1220_v41, 0.0 }
 0x177   : > { %v1258_v47 = vpack.c.bf16 %v1246_v42, %v1245_v45 }
 0x178   : > { %v1257_v46 = vpack.c.bf16 %v1244_v44, %v1243_v43 }
 0x17a   : > { %2053 = vmatprep.mubr.msk.bf16.mxu1 %vm263_vm0, %v1257_v46 }
 0x17b   : > { %2054 = vmatmul.mubr.msk.bf16.gmra.mrb[44].mxu1 %vm263_vm0, %v1258_v47 }
 0x226   : > { %v2035_v34 = vpop.f32.mrb[24].mxu1 }
 0x227   : > { %v2674_v52 = vadd.f32 %v2035_v34, %v2667_v50  ;;  %v1352_v53 = vpop.f32.mrb[25].mxu1 }
 0x228   : > { %v2677_v54 = vadd.f32 %v2667_v50, %v1352_v53  ;;  %v2036_v55 = vpop.f32.mrb[26].mxu1 }
 0x229   : > { %v1456_v56 = vsel %vm2669_vm4, %v2674_v52, 0.0  ;;  %v2683_v57 = vadd.f32 %v2036_v55, %v2667_v50  ;;  %v1355_v58 = vpop.f32.mrb[27].mxu1 }
 0x22a   : > { %v1480_v59 = vsub.f32 0.0, %v1456_v56  ;;  %v1454_v60 = vsel %vm2669_vm4, %v2677_v54, 0.0  ;;  %v2689_v61 = vadd.f32 %v2667_v50, %v1355_v58 }
 0x22b   : > { %v1478_v62 = vsub.f32 0.0, %v1454_v60  ;;  %v1457_v63 = vsel %vm2669_vm4, %v2683_v57, 0.0 }
 0x22c   : > { %v1506_v0 = vmul.f32 1.442695, %v1480_v59  ;;  %v1481_v1 = vsub.f32 0.0, %v1457_v63  ;;  %v1455_v2 = vsel %vm2669_vm4, %v2689_v61, 0.0 }
 0x22d   : > { %v1502_v3 = vmul.f32 1.442695, %v1478_v62  ;;  %v1479_v4 = vsub.f32 0.0, %v1455_v2 }
 0x22e   : > { %2149 = vpow2.f32 %v1506_v0  ;;  %v1508_v5 = vmul.f32 1.442695, %v1481_v1  ;;  %v2039_v6 = vpop.f32.mrb[28].mxu1 }
 0x22f   : > { %2151 = vpow2.f32 %v1502_v3  ;;  %v1504_v7 = vmul.f32 1.442695, %v1479_v4  ;;  %v2698_v8 = vadd.f32 %v2039_v6, %v2667_v50  ;;  %v1368_v9 = vpop.f32.mrb[29].mxu1 }
 0x230   : > { %2153 = vpow2.f32 %v1508_v5  ;;  %v2701_v10 = vadd.f32 %v2667_v50, %v1368_v9  ;;  %v2040_v11 = vpop.f32.mrb[30].mxu1 }
 0x231   : > { %2155 = vpow2.f32 %v1504_v7  ;;  %v1460_v12 = vsel %vm2669_vm4, %v2698_v8, 0.0  ;;  %v2707_v13 = vadd.f32 %v2040_v11, %v2667_v50  ;;  %v1371_v14 = vpop.f32.mrb[31].mxu1 }
 0x232   : > { %v1484_v15 = vsub.f32 0.0, %v1460_v12  ;;  %v1458_v16 = vsel %vm2669_vm4, %v2701_v10, 0.0  ;;  %v2714_v17 = vadd.f32 %v2667_v50, %v1371_v14 }
 0x233   : > { %v1482_v18 = vsub.f32 0.0, %v1458_v16  ;;  %v1461_v19 = vsel %vm2669_vm4, %v2707_v13, 0.0 }
 0x234   : > { %v1514_v20 = vmul.f32 1.442695, %v1484_v15  ;;  %v1485_v21 = vsub.f32 0.0, %v1461_v19  ;;  %v1459_v22 = vsel %vm2669_vm4, %v2714_v17, 0.0 }
 0x235   : > { %v1510_v23 = vmul.f32 1.442695, %v1482_v18  ;;  %v1483_v24 = vsub.f32 0.0, %v1459_v22 }
 0x236   : > { %2157 = vpow2.f32 %v1514_v20  ;;  %v1516_v25 = vmul.f32 1.442695, %v1485_v21  ;;  %v2043_v26 = vpop.f32.mrb[32].mxu1 }
 0x237   : > { %2159 = vpow2.f32 %v1510_v23  ;;  %v1512_v27 = vmul.f32 1.442695, %v1483_v24  ;;  %v2729_v28 = vadd.f32 %v2043_v26, %v2667_v50  ;;  %v1384_v29 = vpop.f32.mrb[33].mxu1 }
 0x238   : > { %v2150_v30 = vpop.eup %2149  ;;  %2161 = vpow2.f32 %v1516_v25  ;;  %v2732_v31 = vadd.f32 %v2667_v50, %v1384_v29  ;;  %v2044_v32 = vpop.f32.mrb[34].mxu1 }
 0x239   : > { %v2152_v33 = vpop.eup %2151  ;;  %v1552_v35 = vadd.f32 1.0, %v2150_v30  ;;  %2163 = vpow2.f32 %v1512_v27  ;;  %v1464_v36 = vsel %vm2669_vm4, %v2729_v28, 0.0  ;;  %v2739_v37 = vadd.f32 %v2044_v32, %v2667_v50  ;;  %v1387_v38 = vpop.f32.mrb[35].mxu1 }
 0x23a   : > { %v2154_v39 = vpop.eup %2153  ;;  %v1550_v40 = vadd.f32 1.0, %v2152_v33  ;;  %v1488_v41 = vsub.f32 0.0, %v1464_v36  ;;  %v1462_v42 = vsel %vm2669_vm4, %v2732_v31, 0.0  ;;  %v2749_v43 = vadd.f32 %v2667_v50, %v1387_v38 }
 0x23b   : > { %v2156_v44 = vpop.eup %2155  ;;  %2165 = vrcp.f32 %v1552_v35  ;;  %v1553_v45 = vadd.f32 1.0, %v2154_v39  ;;  %v1486_v46 = vsub.f32 0.0, %v1462_v42  ;;  %v1465_v47 = vsel %vm2669_vm4, %v2739_v37, 0.0 }
 0x23c   : > { %2167 = vrcp.f32 %v1550_v40  ;;  %v1551_v48 = vadd.f32 1.0, %v2156_v44  ;;  %v1522_v49 = vmul.f32 1.442695, %v1488_v41  ;;  %v1489_v34 = vsub.f32 0.0, %v1465_v47 }
 0x23d   : > { %2169 = vrcp.f32 %v1553_v45  ;;  %v1518_v53 = vmul.f32 1.442695, %v1486_v46  ;;  %v1463_v55 = vsel %vm2669_vm4, %v2749_v43, 0.0 }
 0x23e   : > { %2171 = vrcp.f32 %v1551_v48  ;;  %v1524_v56 = vmul.f32 1.442695, %v1489_v34  ;;  %v1487_v58 = vsub.f32 0.0, %v1463_v55  ;;  %v2047_v59 = vpop.f32.mrb[36].mxu1 }
 0x23f   : > { %2173 = vpow2.f32 %v1522_v49  ;;  %v2760_v60 = vadd.f32 %v2047_v59, %v2667_v50  ;;  %v1400_v62 = vpop.f32.mrb[37].mxu1 }
 0x240   : > { %v2158_v63 = vpop.eup %2157  ;;  %2175 = vpow2.f32 %v1518_v53  ;;  %v1520_v0 = vmul.f32 1.442695, %v1487_v58  ;;  %v2763_v1 = vadd.f32 %v2667_v50, %v1400_v62  ;;  %v2048_v2 = vpop.f32.mrb[38].mxu1 }
 0x241   : > { %v2160_v3 = vpop.eup %2159  ;;  %v1556_v4 = vadd.f32 1.0, %v2158_v63  ;;  %2177 = vpow2.f32 %v1524_v56  ;;  %v1468_v5 = vsel %vm2669_vm4, %v2760_v60, 0.0  ;;  %v2770_v6 = vadd.f32 %v2048_v2, %v2667_v50  ;;  %v1403_v7 = vpop.f32.mrb[39].mxu1 }
 0x242   : > { %v2162_v9 = vpop.eup %2161  ;;  %v1554_v11 = vadd.f32 1.0, %v2160_v3  ;;  %2179 = vpow2.f32 %v1520_v0  ;;  %v1492_v12 = vsub.f32 0.0, %v1468_v5  ;;  %v1466_v14 = vsel %vm2669_vm4, %v2763_v1, 0.0 }
 0x243   : > { %v2164_v15 = vpop.eup %2163  ;;  %2181 = vrcp.f32 %v1556_v4  ;;  %v1557_v16 = vadd.f32 1.0, %v2162_v9  ;;  %v1490_v18 = vsub.f32 0.0, %v1466_v14  ;;  %v1469_v19 = vsel %vm2669_vm4, %v2770_v6, 0.0 }
 0x244   : > { %2183 = vrcp.f32 %v1554_v11  ;;  %v1555_v20 = vadd.f32 1.0, %v2164_v15  ;;  %v1530_v21 = vmul.f32 1.442695, %v1492_v12  ;;  %v1493_v22 = vsub.f32 0.0, %v1469_v19 }
 0x245   : > { %v2166_v23 = vpop.eup %2165  ;;  %2185 = vrcp.f32 %v1557_v16  ;;  %v1526_v24 = vmul.f32 1.442695, %v1490_v18  ;;  %v2784_v25 = vadd.f32 %v2667_v50, %v1403_v7 }
 0x246   : > { %v2168_v26 = vpop.eup %2167  ;;  %v1624_v27 = vsel %vm2669_vm4, %v2166_v23, %v2674_v52  ;;  %2187 = vrcp.f32 %v1555_v20  ;;  %v1532_v29 = vmul.f32 1.442695, %v1493_v22  ;;  %v2051_v30 = vpop.f32.mrb[40].mxu1 }
 0x247   : > { %v2170_v32 = vpop.eup %2169  ;;  %1648 = vst [vmem:[%s2781_s23 + $0x10] sm:$0xff] %v1624_v27  ;;  %v1622_v33 = vsel %vm2669_vm4, %v2168_v26, %v2677_v54  ;;  %2189 = vpow2.f32 %v1530_v21  ;;  %v1467_v35 = vsel %vm2669_vm4, %v2784_v25, 0.0  ;;  %v2797_v36 = vadd.f32 %v2051_v30, %v2667_v50  ;;  %v1416_v38 = vpop.f32.mrb[41].mxu1 }
 0x248   : > { %v2172_v52 = vpop.eup %2171  ;;  %1646 = vst [vmem:[%s2781_s23] sm:$0xff] %v1622_v33  ;;  %v1625_v39 = vsel %vm2669_vm4, %v2170_v32, %v2683_v57  ;;  %2191 = vpow2.f32 %v1526_v24  ;;  %v1491_v40 = vsub.f32 0.0, %v1467_v35  ;;  %v2804_v54 = vadd.f32 %v2667_v50, %v1416_v38  ;;  %v2052_v41 = vpop.f32.mrb[42].mxu1 }
 0x249   : > { %v2174_v42 = vpop.eup %2173  ;;  %1649 = vst [vmem:[%s2781_s23 + $0x18] sm:$0xff] %v1625_v39  ;;  %v1623_v44 = vsel %vm2669_vm4, %v2172_v52, %v2689_v61  ;;  %2193 = vpow2.f32 %v1532_v29  ;;  %v1472_v45 = vsel %vm2669_vm4, %v2797_v36, 0.0  ;;  %v2814_v46 = vadd.f32 %v2052_v41, %v2667_v50  ;;  %v1419_v57 = vpop.f32.mrb[43].mxu1 }
 0x24a   : > { %v2176_v47 = vpop.eup %2175  ;;  %1647 = vst [vmem:[%s2781_s23 + $0x8] sm:$0xff] %v1623_v44  ;;  %v1560_v48 = vadd.f32 1.0, %v2174_v42  ;;  %v1496_v49 = vsub.f32 0.0, %v1472_v45  ;;  %v1470_v34 = vsel %vm2669_vm4, %v2804_v54, 0.0  ;;  %v2824_v58 = vadd.f32 %v2667_v50, %v1419_v57 }
 0x24b   : > { %v2178_v53 = vpop.eup %2177  ;;  %v1558_v55 = vadd.f32 1.0, %v2176_v47  ;;  %v1494_v61 = vsub.f32 0.0, %v1470_v34  ;;  %v1473_v56 = vsel %vm2669_vm4, %v2814_v46, 0.0  ;;  %v1528_v63 = vmul.f32 1.442695, %v1491_v40 }
 0x24c   : > { %v2180_v59 = vpop.eup %2179  ;;  %2195 = vrcp.f32 %v1560_v48  ;;  %v1561_v62 = vadd.f32 1.0, %v2178_v53  ;;  %v1497_v0 = vsub.f32 0.0, %v1473_v56  ;;  %v1538_v4 = vmul.f32 1.442695, %v1496_v49 }
 0x24d   : > { %v2182_v2 = vpop.eup %2181  ;;  %2197 = vrcp.f32 %v1558_v55  ;;  %v1559_v3 = vadd.f32 1.0, %v2180_v59  ;;  %v1471_v5 = vsel %vm2669_vm4, %v2824_v58, 0.0  ;;  %v1534_v11 = vmul.f32 1.442695, %v1494_v61 }
 0x24e   : > { %v2184_v7 = vpop.eup %2183  ;;  %v1628_v9 = vsel %vm2669_vm4, %v2182_v2, %v2698_v8  ;;  %2199 = vrcp.f32 %v1561_v62  ;;  %v1495_v12 = vsub.f32 0.0, %v1471_v5  ;;  %v2055_v14 = vpop.f32.mrb[44].mxu1  ;;  %v1540_v18 = vmul.f32 1.442695, %v1497_v0 }
 0x24f   : > { %v2186_v15 = vpop.eup %2185  ;;  %1652 = vst [vmem:[%s2781_s23 + $0x30] sm:$0xff] %v1628_v9  ;;  %v1626_v16 = vsel %vm2669_vm4, %v2184_v7, %v2701_v10  ;;  %2201 = vrcp.f32 %v1559_v3  ;;  %v2837_v19 = vadd.f32 %v2055_v14, %v2667_v50  ;;  %v1432_v20 = vpop.f32.mrb[45].mxu1 }
 0x250   : > { %v2188_v21 = vpop.eup %2187  ;;  %1650 = vst [vmem:[%s2781_s23 + $0x20] sm:$0xff] %v1626_v16  ;;  %v1629_v8 = vsel %vm2669_vm4, %v2186_v15, %v2707_v13  ;;  %2203 = vpow2.f32 %v1528_v63  ;;  %v1536_v22 = vmul.f32 1.442695, %v1495_v12  ;;  %v2844_v23 = vadd.f32 %v2667_v50, %v1432_v20  ;;  %v2056_v24 = vpop.f32.mrb[46].mxu1 }
 0x251   : > { %v2190_v10 = vpop.eup %2189  ;;  %1653 = vst [vmem:[%s2781_s23 + $0x38] sm:$0xff] %v1629_v8  ;;  %v1627_v26 = vsel %vm2669_vm4, %v2188_v21, %v2714_v17  ;;  %2205 = vpow2.f32 %v1538_v4  ;;  %v1476_v27 = vsel %vm2669_vm4, %v2837_v19, 0.0  ;;  %v2854_v29 = vadd.f32 %v2056_v24, %v2667_v50  ;;  %v1435_v13 = vpop.f32.mrb[47].mxu1 }
 0x252   : > { %v2192_v30 = vpop.eup %2191  ;;  %1651 = vst [vmem:[%s2781_s23 + $0x28] sm:$0xff] %v1627_v26  ;;  %v1564_v32 = vadd.f32 1.0, %v2190_v10  ;;  %2207 = vpow2.f32 %v1534_v11  ;;  %v1500_v33 = vsub.f32 0.0, %v1476_v27  ;;  %v1474_v35 = vsel %vm2669_vm4, %v2844_v23, 0.0 }
 0x253   : > { %v2194_v38 = vpop.eup %2193  ;;  %v1562_v17 = vadd.f32 1.0, %v2192_v30  ;;  %2209 = vpow2.f32 %v1540_v18  ;;  %v1498_v52 = vsub.f32 0.0, %v1474_v35  ;;  %v1477_v39 = vsel %vm2669_vm4, %v2854_v29, 0.0 }
 0x254   : > { %2211 = vrcp.f32 %v1564_v32  ;;  %v1565_v40 = vadd.f32 1.0, %v2194_v38  ;;  %v1546_v41 = vmul.f32 1.442695, %v1500_v33  ;;  %v1501_v42 = vsub.f32 0.0, %v1477_v39 }
 0x255   : > { %2213 = vrcp.f32 %v1562_v17  ;;  %v1542_v44 = vmul.f32 1.442695, %v1498_v52  ;;  %v2864_v45 = vadd.f32 %v2667_v50, %v1435_v13 }
 0x256   : > { %v2196_v57 = vpop.eup %2195  ;;  %2215 = vrcp.f32 %v1565_v40  ;;  %v1548_v47 = vmul.f32 1.442695, %v1501_v42 }
 0x257   : > { %v2198_v48 = vpop.eup %2197  ;;  %v1632_v49 = vsel %vm2669_vm4, %v2196_v57, %v2729_v28  ;;  %2217 = vpow2.f32 %v1536_v22  ;;  %v1475_v34 = vsel %vm2669_vm4, %v2864_v45, 0.0 }
 0x258   : > { %v2200_v53 = vpop.eup %2199  ;;  %1656 = vst [vmem:[%s2781_s23 + $0x50] sm:$0xff] %v1632_v49  ;;  %v1630_v50 = vsel %vm2669_vm4, %v2198_v48, %v2732_v31  ;;  %2219 = vpow2.f32 %v1546_v41  ;;  %v1499_v55 = vsub.f32 0.0, %v1475_v34 }
 0x259   : > { %v2202_v61 = vpop.eup %2201  ;;  %1654 = vst [vmem:[%s2781_s23 + $0x40] sm:$0xff] %v1630_v50  ;;  %v1633_v28 = vsel %vm2669_vm4, %v2200_v53, %v2739_v37  ;;  %2221 = vpow2.f32 %v1542_v44 }
 0x25a   : > { %v2204_v56 = vpop.eup %2203  ;;  %1657 = vst [vmem:[%s2781_s23 + $0x58] sm:$0xff] %v1633_v28  ;;  %v1631_v59 = vsel %vm2669_vm4, %v2202_v61, %v2749_v43  ;;  %2223 = vpow2.f32 %v1548_v47  ;;  %v1544_v62 = vmul.f32 1.442695, %v1499_v55 }
 0x25b   : > { %v2206_v63 = vpop.eup %2205  ;;  %1655 = vst [vmem:[%s2781_s23 + $0x48] sm:$0xff] %v1631_v59  ;;  %v1563_v31 = vadd.f32 1.0, %v2204_v56 }
 0x25c   : > { %v2208_v0 = vpop.eup %2207  ;;  %v1568_v2 = vadd.f32 1.0, %v2206_v63  ;;  %2225 = vpow2.f32 %v1544_v62 }
 0x25d   : > { %v2210_v3 = vpop.eup %2209  ;;  %2227 = vrcp.f32 %v1563_v31  ;;  %v1566_v37 = vadd.f32 1.0, %v2208_v0 }
 0x25e   : > { %v2212_v4 = vpop.eup %2211  ;;  %2229 = vrcp.f32 %v1568_v2  ;;  %v1569_v5 = vadd.f32 1.0, %v2210_v3 }
 0x25f   : > { %v2214_v7 = vpop.eup %2213  ;;  %v1636_v43 = vsel %vm2669_vm4, %v2212_v4, %v2760_v60  ;;  %2231 = vrcp.f32 %v1566_v37 }
 0x260   : > { %v2216_v9 = vpop.eup %2215  ;;  %1660 = vst [vmem:[%s2781_s23 + $0x70] sm:$0xff] %v1636_v43  ;;  %v1634_v11 = vsel %vm2669_vm4, %v2214_v7, %v2763_v1  ;;  %2233 = vrcp.f32 %v1569_v5 }
 0x261   : > { %v2218_v12 = vpop.eup %2217  ;;  %1658 = vst [vmem:[%s2781_s23 + $0x60] sm:$0xff] %v1634_v11  ;;  %v1637_v14 = vsel %vm2669_vm4, %v2216_v9, %v2770_v6 }
 0x262   : > { %v2220_v15 = vpop.eup %2219  ;;  %1661 = vst [vmem:[%s2781_s23 + $0x78] sm:$0xff] %v1637_v14  ;;  %v1567_v16 = vadd.f32 1.0, %v2218_v12 }
 0x263   : > { %v2222_v18 = vpop.eup %2221  ;;  %v1572_v60 = vadd.f32 1.0, %v2220_v15 }
 0x264   : > { %v2224_v20 = vpop.eup %2223  ;;  %2235 = vrcp.f32 %v1567_v16  ;;  %v1570_v21 = vadd.f32 1.0, %v2222_v18 }
 0x265   : > { %2237 = vrcp.f32 %v1572_v60  ;;  %v1573_v1 = vadd.f32 1.0, %v2224_v20 }
 0x266   : > { %v2226_v8 = vpop.eup %2225  ;;  %2239 = vrcp.f32 %v1570_v21 }
 0x267   : > { %v2228_v22 = vpop.eup %2227  ;;  %2241 = vrcp.f32 %v1573_v1  ;;  %v1571_v24 = vadd.f32 1.0, %v2226_v8 }
 0x268   : > { %v2230_v6 = vpop.eup %2229  ;;  %v1635_v10 = vsel %vm2669_vm4, %v2228_v22, %v2784_v25 }
 0x269   : > { %v2232_v26 = vpop.eup %2231  ;;  %1659 = vst [vmem:[%s2781_s23 + $0x68] sm:$0xff] %v1635_v10  ;;  %v1640_v27 = vsel %vm2669_vm4, %v2230_v6, %v2797_v36  ;;  %2243 = vrcp.f32 %v1571_v24 }
 0x26a   : > { %v2234_v13 = vpop.eup %2233  ;;  %1664 = vst [vmem:[%s2781_s23 + $0x90] sm:$0xff] %v1640_v27  ;;  %v1638_v30 = vsel %vm2669_vm4, %v2232_v26, %v2804_v54 }
 0x26b   : > { %1662 = vst [vmem:[%s2781_s23 + $0x80] sm:$0xff] %v1638_v30  ;;  %v1641_v25 = vsel %vm2669_vm4, %v2234_v13, %v2814_v46 }
 0x26c   : > { %1665 = vst [vmem:[%s2781_s23 + $0x98] sm:$0xff] %v1641_v25 }
 0x26e   : > { %v2236_v32 = vpop.eup %2235 }
 0x26f   : > { %v2238_v33 = vpop.eup %2237  ;;  %v1639_v36 = vsel %vm2669_vm4, %v2236_v32, %v2824_v58 }
 0x270   : > { %v2240_v35 = vpop.eup %2239  ;;  %1663 = vst [vmem:[%s2781_s23 + $0x88] sm:$0xff] %v1639_v36  ;;  %v1644_v54 = vsel %vm2669_vm4, %v2238_v33, %v2837_v19 }
 0x271   : > { %v2242_v38 = vpop.eup %2241  ;;  %1668 = vst [vmem:[%s2781_s23 + $0xb0] sm:$0xff] %v1644_v54  ;;  %v1642_v46 = vsel %vm2669_vm4, %v2240_v35, %v2844_v23 }
 0x272   : > { %1666 = vst [vmem:[%s2781_s23 + $0xa0] sm:$0xff] %v1642_v46  ;;  %v1645_v17 = vsel %vm2669_vm4, %v2242_v38, %v2854_v29 }
 0x273   : > { %v2244_v52 = vpop.eup %2243  ;;  %1669 = vst [vmem:[%s2781_s23 + $0xb8] sm:$0xff] %v1645_v17 }
 0x274   : > { %v1643_v58 = vsel %vm2669_vm4, %v2244_v52, %v2864_v45 }
 0x275   : > { %1667 = vst [vmem:[%s2781_s23 + $0xa8] sm:$0xff] %v1643_v58 }
 0x276 PF: > { %s16_s22 = sadd.s32 1, %s2315_s22   ;;  %s2965_s18 = smov %s2307_s20 }
 0x277   : > { %p13_p7 = scmp.ge.s32.totalorder %s16_s22, 6   ;;  %s2966_s19 = smov %s2311_s21 }
 0x278   : > { %s2967_s20 = smov %s2970_s24  ;;  %s2968_s21 = smov %s2974_s25 }
 0x279   :  { %15 = sbr.rel (!%p13_p7) target bundleno = 3 (0x3), region = 78 }
 0x280   :  { %1700 = vsyncpa [#allocation4], 1 }
 0x281   :  { %1702 = vsyncpa [#allocation4 + $0x1], 1 }

// kernel: sub.3
= control target key start
LH: loop header
LB: loop body
LE: loop exit
PB: predicated region body
PF: predicated region fallthrough
CT: control target
= control target key end

     0   :  { %s34_s0 = inlined_call_operand.vmem [shape: f32[9], index: 0, kind: input, shape index: {}]   ;;  %s35_s1 = inlined_call_operand.vmem [shape: f32[9], index: 1, kind: input, shape index: {}]   ;;  %s36_s2 = inlined_call_operand.vmem [shape: f32[9], index: 2, kind: output, shape index: {}]  }
   0x1   :  { %v3_v0 = vld [vmem:[%s34_s0] sm:$0x1] }
   0x2   :  { %v4_v1 = vld [vmem:[%s35_s1] sm:$0x1] }
   0x3   :  { %v7_v2 = vsub.f32 %v3_v0, %v4_v1 }
   0x5   :  { %9 = vst [vmem:[%s36_s2] sm:$0x1] %v7_v2 }

// kernel: _rpn_compute.1
= control target key start
LH: loop header
LB: loop body
LE: loop exit
PB: predicated region body
PF: predicated region fallthrough
CT: control target
= control target key end

     0   :  { %10 = vsyncpa [#allocation4], 0  ;;  %s2349_s18 = smov 0   ;;  %s2351_s19 = smov 0   ;;  %s2948_s0 = inlined_call_operand.vmem [shape: bf16[2,432,48], index: 0, kind: input, shape index: {}]   ;;  %s2949_s1 = inlined_call_operand.vmem [shape: bf16[3,48,32], index: 1, kind: input, shape index: {}]   ;;  %s2950_s2 = inlined_call_operand.hbm [shape: f32[1,32], index: 2, kind: input, shape index: {}]   ;;  %s2951_s3 = inlined_call_operand.vmem [shape: bf16[32,128], index: 3, kind: input, shape index: {}]   ;;  %s2952_s4 = inlined_call_operand.vmem [shape: f32[1,128], index: 4, kind: input, shape index: {}]   ;;  %s2953_s5 = inlined_call_operand.vmem [shape: f32[2,384,128], index: 5, kind: output, shape index: {}]  }
   0x1   :  { %s2353_s20 = smov 0   ;;  %s2355_s21 = smov 0  }
   0x2   :  { %s2357_s22 = smov 0  }
   0x3 LB: > { %s1768_s23 = sadd.s32 4294967295, %s2315_s22   ;;  %s25_s24 = sadd.s32 1, %s2307_s20  ;;  %s2315_s22 = sphi %s2357_s22, %s16_s22   ;;  %s2311_s21 = sphi %s2355_s21, %s2968_s21   ;;  %s2307_s20 = sphi %s2353_s20, %s2967_s20   ;;  %s2303_s19 = sphi %s2351_s19, %s2966_s19   ;;  %s2299_s18 = sphi %s2349_s18, %s2965_s18  }
   0x4   : > { %p26_p0 = scmp.ge.s32.totalorder %s25_s24, 2  ;;  %s28_s25 = sadd.s32 1, %s2311_s21 }
   0x5   : > { %p1770_p1 = scmp.ge.s32.totalorder %s2315_s22, 1  ;;  %p171_p2 = scmp.lt.s32.totalorder %s2315_s22, 5 }
   0x6   : > { %s2970_s24 = smov (%p26_p0, %s25_s24), 0  ;;  %s2972_s25 = smov (!%p26_p0, %s28_s25), %s2311_s21 }
   0x7   : > { %p2382_p3 = pnand %p1770_p1, %p171_p2  ;;  %p30_p4 = scmp.ge.s32.totalorder %s2972_s25, 2 }
   0x8   : > { %p2386_p5 = scmp.eq.s32.totalorder %s1768_s23, 0  ;;  %s2317_s28 = smov [#allocation3]  }
   0x9   : > { %s2957_s26 = scalar_select %p2382_p3, 1, 0 }
   0xa   : > { %s2958_s27 = scalar_select %p2386_p5, 1, 0 }
   0xb   : > { %p2063_p6 = pneg %p2382_p3  ;;  %s2974_s25 = smov (%p30_p4, %s2972_s25), 0 }
   0xc   : > { %s187_s29 = sshll.u32 %s2317_s28, 4  ;;  %s2245_s8 = scalar_lea.hbm %s2950_s2, 16  ;;  %s188_s29 = int_to_ptr.vmem [resolvable:$true] %s187_s29 }
   0xd   : > { %p2396_p7 = pnand %p2386_p5, %p2063_p6  ;;  %p2246_p8 = scmp.ne.s32.totalorder %s2950_s2, %s2245_s8 }
   0xe   : > { %p2252_p12 = scmp.lt.u32.totalorder %s2245_s8, %s2950_s2 }
   0xf   : > { %p2247_p9 = pneg %p2396_p7 }
  0x11   : > { %p2248_p10 = pnand %p2247_p9, %p2246_p8 }
  0x13   : > { %p2249_p11 = pneg %p2248_p10 }
  0x15   : > { %p2254_p13 = pnand %p2252_p12, %p2249_p11 }
  0x17   : > { %2257 = shalt.err (!%p2254_p13)
}
  0x18   : > { %s2258_s13 = scalar_lea.vmem %s188_s29, 16  ;;  %s2265_s14 = scalar_lea.vmem %s188_s29, 32 }
  0x19   : > { %p2259_p0 = scmp.ne.s32.totalorder %s188_s29, %s2258_s13  ;;  %p2266_p4 = scmp.lt.s32.totalorder %s188_s29, %s188_s29 }
  0x1a   : > { %p2267_p6 = scmp.lt.s32.totalorder %s2265_s14, %s2258_s13 }
  0x1b   : > { %p2261_p1 = pnand %p2259_p0, %p2247_p9 }
  0x1c   : > { %p2268_p5 = por %p2267_p6, %p2266_p4 }
  0x1d   : > { %p2262_p2 = pneg %p2261_p1 }
  0x1f   : > { %p2269_p3 = pnand %p2268_p5, %p2262_p2 }
  0x21   : > { %2272 = shalt.err (!%p2269_p3)
}
  0x22   : > { %2066 = dma.hbm_to_vmem [thread:$0]  (!%p2396_p7), %s2950_s2, 16, %s188_s29, [#allocation4]  }
  0x23   : > { %p2960_p8 = scmp.ne.s32.totalorder %s2957_s26, 0 }
  0x24   : > { %p2961_p10 = scmp.ne.s32.totalorder (!%p2960_p8), %s2958_s27, 0 }
  0x25   : > { %214 = sbr.rel (%p2960_p8) target bundleno = 630 (0x276), region = 40 }
  0x2c   : > { %2294 = dma.done.wait (%p2961_p10), [#allocation4], 16  }
  0x2d   : > { %2296 = vsyncadd (%p2961_p10), [#allocation4], 4294967280  ;;  %p246_p5 = scmp.lt.s32.totalorder %s2303_s19, 1  ;;  %s262_s17 = smul.u32 192, %s2299_s18  ;;  %vm263_vm0 = vcmask 261120   ;;  %v2318_v0 = vmov 0.0  }
  0x2e   : > { %266 = vst.msk [vmem:[#allocation2 + $0x10] sm:$0xff] %vm263_vm0, %v2318_v0  ;;  %264 = vst.msk [vmem:[#allocation2] sm:$0xff] %vm263_vm0, %v2318_v0  ;;  %v2111_v1 = vld [vmem:[%s2949_s1] sm:$0xff]   ;;  %v2112_v2 = vld [vmem:[%s2949_s1 + $0x8] sm:$0xff]   ;;  %vm430_vm1 = vcmask 392192   ;;  %s251_s13 = smul.u32 24, %s2299_s18 }
  0x2f   : > { %s2976_s19 = smov (!%p246_p5, %s2303_s19), 1  ;;  %265 = vst.msk [vmem:[#allocation2 + $0x8] sm:$0xff] %vm263_vm0, %v2318_v0  ;;  %267 = vst.msk [vmem:[#allocation2 + $0x18] sm:$0xff] %vm263_vm0, %v2318_v0  ;;  %s288_s23 = sshra.s32 %s262_s17, 3  ;;  %1939 = vmatprep.subr.bf16.mxu0 %v2111_v1  ;;  %v2113_v3 = vld [vmem:[%s2949_s1 + $0x10] sm:$0xff]   ;;  %v2114_v4 = vld [vmem:[%s2949_s1 + $0x18] sm:$0xff]  }
  0x30   : > { %268 = vst.msk [vmem:[#allocation2 + $0x20] sm:$0xff] %vm263_vm0, %v2318_v0  ;;  %269 = vst.msk [vmem:[#allocation2 + $0x28] sm:$0xff] %vm263_vm0, %v2318_v0  ;;  %s2057_s26 = smul.u32 216, %s2976_s19  ;;  %s1777_s27 = sshll.u32 %s288_s23, 2  ;;  %1940 = vmatpush3.bf16.msra.mxu0 %v2111_v1  ;;  %1969 = vmatprep.subr.bf16.mxu1 %v2114_v4  ;;  %v2117_v8 = vld [vmem:[%s2949_s1 + $0x30] sm:$0xff]   ;;  %v2118_v9 = vld [vmem:[%s2949_s1 + $0x20] sm:$0xff]  }
  0x31   : > { %270 = vst.msk [vmem:[#allocation2 + $0x30] sm:$0xff] %vm263_vm0, %v2318_v0  ;;  %271 = vst.msk [vmem:[#allocation2 + $0x38] sm:$0xff] %vm263_vm0, %v2318_v0  ;;  %1941 = vmatprep.subr.bf16.mxu0 %v2112_v2  ;;  %1970 = vmatpush3.bf16.msra.mxu1 %v2114_v4  ;;  %v2119_v10 = vld [vmem:[%s2949_s1 + $0x28] sm:$0xff]   ;;  %v2126_v17 = vld [vmem:[%s2949_s1 + $0x38] sm:$0xff]   ;;  %p2724_p3 = scmp.lt.s32.totalorder %s251_s13, 47  ;;  %s2058_s15 = smul.u32 48, %s2976_s19 }
  0x32   : > { %272 = vst.msk [vmem:[#allocation2 + $0x40] sm:$0xff] %vm263_vm0, %v2318_v0  ;;  %273 = vst.msk [vmem:[#allocation2 + $0x48] sm:$0xff] %vm263_vm0, %v2318_v0  ;;  %s250_s30 = scalar_lea.vmem %s2948_s0, %s2057_s26  ;;  %1971 = vmatprep.subr.bf16.mxu1 %v2118_v9  ;;  %v2135_v23 = vld [vmem:[%s2949_s1 + $0x40] sm:$0xff]  }
  0x33   : > { %274 = vst.msk [vmem:[#allocation2 + $0x50] sm:$0xff] %vm263_vm0, %v2318_v0  ;;  %275 = vst.msk [vmem:[#allocation2 + $0x58] sm:$0xff] %vm263_vm0, %v2318_v0  ;;  %s2461_s10 = scalar_lea.vmem %s250_s30, %s1777_s27  ;;  %v2147_v63 = vld [vmem:[%s2951_s3] sm:$0xff]   ;;  %s2978_s13 = smov (!%p2724_p3, %s251_s13), 47 }
  0x34   : > { %276 = vst.msk [vmem:[#allocation2 + $0x60] sm:$0xff] %vm263_vm0, %v2318_v0  ;;  %277 = vst.msk [vmem:[#allocation2 + $0x68] sm:$0xff] %vm263_vm0, %v2318_v0  ;;  %v2115_v5 = vld [vmem:[%s2461_s10] sm:$0xff]   ;;  %v294_v6 = vld [vmem:[%s2461_s10 + $0x8] sm:$0xf]  ;;  %1942 = vmatpush3.bf16.msra.mxu0 %v2112_v2  ;;  %s2757_s18 = sadd.s32 %s2058_s15, %s2978_s13 }
  0x35   : > { %278 = vst.msk [vmem:[#allocation2 + $0x70] sm:$0xff] %vm263_vm0, %v2318_v0  ;;  %279 = vst.msk [vmem:[#allocation2 + $0x78] sm:$0xff] %vm263_vm0, %v2318_v0  ;;  %v295_v7 = vld [vmem:[%s2461_s10 + $0xc] sm:$0xf]  ;;  %1945 = vmatprep.mubr.msk.bf16.mxu0 %vm430_vm1, %v2115_v5  ;;  %1943 = vmatprep.subr.bf16.mxu0 %v2113_v3  ;;  %v296_v11 = vld [vmem:[%s2461_s10 + $0x10] sm:$0xf] }
  0x36   : > { %280 = vst.msk [vmem:[#allocation2 + $0x80] sm:$0xff] %vm263_vm0, %v2318_v0  ;;  %281 = vst.msk [vmem:[#allocation2 + $0x88] sm:$0xff] %vm263_vm0, %v2318_v0  ;;  %v297_v12 = vld [vmem:[%s2461_s10 + $0x14] sm:$0xf]  ;;  %v1811_v13 = vcombine.low %v295_v7, %v296_v11  ;;  %v1779_v14 = vcombine.low %v294_v6, %v295_v7  ;;  %1972 = vmatpush3.bf16.msra.mxu1 %v2118_v9  ;;  %v298_v16 = vld [vmem:[%s2461_s10 + $0x18] sm:$0xf] }
  0x37   : > { %282 = vst.msk [vmem:[#allocation2 + $0x90] sm:$0xff] %vm263_vm0, %v2318_v0  ;;  %283 = vst.msk [vmem:[#allocation2 + $0x98] sm:$0xff] %vm263_vm0, %v2318_v0  ;;  %1973 = vmatprep.subr.bf16.mxu1 %v2119_v10  ;;  %v1780_v15 = vcombine.low %v296_v11, %v297_v12  ;;  %v299_v18 = vld [vmem:[%s2461_s10 + $0x1c] sm:$0xf]  ;;  %v1812_v19 = vcombine.low %v297_v12, %v298_v16  ;;  %v300_v20 = vld [vmem:[%s2461_s10 + $0x20] sm:$0xf] }
  0x38   : > { %284 = vst.msk [vmem:[#allocation2 + $0xa0] sm:$0xff] %vm263_vm0, %v2318_v0  ;;  %285 = vst.msk [vmem:[#allocation2 + $0xa8] sm:$0xff] %vm263_vm0, %v2318_v0  ;;  %1944 = vmatpush3.bf16.msra.mxu0 %v2113_v3  ;;  %1975 = vmatprep.mubr.msk.bf16.mxu1 %vm430_vm1, %v1811_v13  ;;  %v1813_v21 = vcombine.low %v299_v18, %v300_v20  ;;  %v301_v22 = vld [vmem:[%s2461_s10 + $0x24] sm:$0xf]  ;;  %v1781_v24 = vcombine.low %v298_v16, %v299_v18  ;;  %v302_v26 = vld [vmem:[%s2461_s10 + $0x28] sm:$0xf] }
  0x39   : > { %286 = vst.msk [vmem:[#allocation2 + $0xb0] sm:$0xff] %vm263_vm0, %v2318_v0  ;;  %287 = vst.msk [vmem:[#allocation2 + $0xb8] sm:$0xff] %vm263_vm0, %v2318_v0  ;;  %1999 = vmatprep.subr.bf16.mxu0 %v2117_v8  ;;  %v1782_v25 = vcombine.low %v300_v20, %v301_v22  ;;  %v303_v27 = vld [vmem:[%s2461_s10 + $0x2c] sm:$0xf]  ;;  %v1814_v28 = vcombine.low %v301_v22, %v302_v26  ;;  %v304_v29 = vld [vmem:[%s2461_s10 + $0x30] sm:$0xf] }
  0x3a   : > { %1974 = vmatpush3.bf16.msra.mxu1 %v2119_v10  ;;  %v1815_v30 = vcombine.low %v303_v27, %v304_v29  ;;  %v305_v31 = vld [vmem:[%s2461_s10 + $0x34] sm:$0xf]  ;;  %v1783_v32 = vcombine.low %v302_v26, %v303_v27  ;;  %v306_v34 = vld [vmem:[%s2461_s10 + $0x38] sm:$0xf]  ;;  %v307_v35 = vld [vmem:[%s2461_s10 + $0x3c] sm:$0xf] }
  0x3b   : > { %1946 = vmatmul.mubr.msk.bf16.vlgmr.msra.gmra.mrb[0].mxu0 %vm430_vm1, %v1779_v14  ;;  %v1784_v33 = vcombine.low %v304_v29, %v305_v31  ;;  %v1816_v36 = vcombine.low %v305_v31, %v306_v34  ;;  %v308_v37 = vld [vmem:[%s2461_s10 + $0x40] sm:$0xf]  ;;  %v309_v39 = vld [vmem:[%s2461_s10 + $0x44] sm:$0xf]  ;;  %v1785_v40 = vcombine.low %v306_v34, %v307_v35  ;;  %v310_v42 = vld [vmem:[%s2461_s10 + $0x48] sm:$0xf]  ;;  %2029 = vmatprep.subr.bf16.mxu1 %v2147_v63 }
  0x3c   : > { %2000 = vmatpush3.bf16.msra.mxu0 %v2117_v8  ;;  %1949 = vmatprep.mubr.msk.bf16.mxu0 %vm430_vm1, %v1780_v15  ;;  %v1817_v38 = vcombine.low %v307_v35, %v308_v37  ;;  %v1786_v41 = vcombine.low %v308_v37, %v309_v39  ;;  %v311_v43 = vld [vmem:[%s2461_s10 + $0x4c] sm:$0xf]  ;;  %v1818_v44 = vcombine.low %v309_v39, %v310_v42  ;;  %v312_v45 = vld [vmem:[%s2461_s10 + $0x50] sm:$0xf]  ;;  %v313_v47 = vld [vmem:[%s2461_s10 + $0x54] sm:$0xf] }
  0x3d   : > { %2001 = vmatprep.subr.bf16.mxu0 %v2126_v17  ;;  %1976 = vmatmul.mubr.msk.bf16.vlgmr.msra.gmra.mrb[0].mxu1 %vm430_vm1, %v1812_v19  ;;  %v1819_v46 = vcombine.low %v311_v43, %v312_v45  ;;  %v1787_v48 = vcombine.low %v310_v42, %v311_v43  ;;  %v1788_v49 = vcombine.low %v312_v45, %v313_v47  ;;  %v316_v50 = vld [vmem:[%s2461_s10 + $0x60] sm:$0xf]  ;;  %v314_v51 = vld [vmem:[%s2461_s10 + $0x58] sm:$0xf]  ;;  %v315_v52 = vld [vmem:[%s2461_s10 + $0x5c] sm:$0xf] }
  0x3e   : > { %1979 = vmatprep.mubr.msk.bf16.mxu1 %vm430_vm1, %v1813_v21  ;;  %v1820_v53 = vcombine.low %v313_v47, %v314_v51  ;;  %v1821_v54 = vcombine.low %v315_v52, %v316_v50  ;;  %v1789_v55 = vcombine.low %v314_v51, %v315_v52  ;;  %v317_v56 = vld [vmem:[%s2461_s10 + $0x64] sm:$0xf]  ;;  %v318_v57 = vld [vmem:[%s2461_s10 + $0x68] sm:$0xf]  ;;  %v319_v59 = vld [vmem:[%s2461_s10 + $0x6c] sm:$0xf]  ;;  %2030 = vmatpush3.bf16.msra.mxu1 %v2147_v63 }
  0x3f   : > { %v1822_v58 = vcombine.low %v317_v56, %v318_v57  ;;  %v1844_v60 = vcombine.low %v316_v50, %v317_v56  ;;  %v1845_v61 = vcombine.low %v318_v57, %v319_v59  ;;  %v2146_v62 = vld [vmem:[%s2461_s10 + $0x70] sm:$0xff]   ;;  %v2148_v0 = vld [vmem:[%s2951_s3 + $0x8] sm:$0xff]   ;;  %v322_v2 = vld [vmem:[#allocation2] sm:$0xff]  ;;  %s1776_s19 = sshll.u32 %s2757_s18, 3 }
  0x40   : > { %2002 = vmatpush3.bf16.msra.mxu0 %v2126_v17  ;;  %2031 = vmatprep.subr.bf16.mxu1 %v2148_v0  ;;  %v324_v1 = vld [vmem:[#allocation2 + $0x10] sm:$0xff]  ;;  %v325_v4 = vld [vmem:[#allocation2 + $0x18] sm:$0xff]  ;;  %v323_v7 = vld [vmem:[#allocation2 + $0x8] sm:$0xff]  ;;  %s2781_s23 = scalar_lea.vmem %s2953_s5, %s1776_s19 }
  0x41   : > { %2003 = vmatprep.subr.bf16.mxu0 %v2135_v23  ;;  %v328_v16 = vld [vmem:[#allocation2 + $0x30] sm:$0xff]  ;;  %v326_v18 = vld [vmem:[#allocation2 + $0x20] sm:$0xff]  ;;  %v329_v20 = vld [vmem:[#allocation2 + $0x38] sm:$0xff] }
  0x42   : > { %2032 = vmatpush3.bf16.msra.mxu1 %v2148_v0  ;;  %v330_v42 = vld [vmem:[#allocation2 + $0x40] sm:$0xff]  ;;  %v331_v47 = vld [vmem:[#allocation2 + $0x48] sm:$0xff]  ;;  %v336_v0 = vld [vmem:[#allocation2 + $0x70] sm:$0xff] }
  0x43   : > { %1950 = vmatmul.mubr.msk.bf16.gmra.mrb[4].mxu0 %vm430_vm1, %v1781_v24 }
  0x44   : > { %1953 = vmatprep.mubr.msk.bf16.mxu0 %vm430_vm1, %v1782_v25  ;;  %2004 = vmatpush3.bf16.msra.mxu0 %v2135_v23  ;;  %v327_v23 = vld [vmem:[#allocation2 + $0x28] sm:$0xff] }
  0x45   : > { %1980 = vmatmul.mubr.msk.bf16.gmra.mrb[4].mxu1 %vm430_vm1, %v1814_v28 }
  0x46   : > { %1983 = vmatprep.mubr.msk.bf16.mxu1 %vm430_vm1, %v1815_v30 }
  0x4b   : > { %1954 = vmatmul.mubr.msk.bf16.gmra.mrb[8].mxu0 %vm430_vm1, %v1783_v32 }
  0x4c   : > { %1957 = vmatprep.mubr.msk.bf16.mxu0 %vm430_vm1, %v1784_v33 }
  0x4d   : > { %1984 = vmatmul.mubr.msk.bf16.gmra.mrb[8].mxu1 %vm430_vm1, %v1816_v36 }
  0x4e   : > { %1987 = vmatprep.mubr.msk.bf16.mxu1 %vm430_vm1, %v1817_v38 }
  0x53   : > { %1958 = vmatmul.mubr.msk.bf16.gmra.mrb[12].mxu0 %vm430_vm1, %v1785_v40 }
  0x54   : > { %1961 = vmatprep.mubr.msk.bf16.mxu0 %vm430_vm1, %v1786_v41 }
  0x55   : > { %1988 = vmatmul.mubr.msk.bf16.gmra.mrb[12].mxu1 %vm430_vm1, %v1818_v44  ;;  %v333_v44 = vld [vmem:[#allocation2 + $0x58] sm:$0xff] }
  0x56   : > { %1991 = vmatprep.mubr.msk.bf16.mxu1 %vm430_vm1, %v1819_v46 }
  0x5b   : > { %1962 = vmatmul.mubr.msk.bf16.gmra.mrb[16].mxu0 %vm430_vm1, %v1787_v48 }
  0x5c   : > { %1965 = vmatprep.mubr.msk.bf16.mxu0 %vm430_vm1, %v1788_v49 }
  0x5d   : > { %1992 = vmatmul.mubr.msk.bf16.gmra.mrb[16].mxu1 %vm430_vm1, %v1820_v53 }
  0x5e   : > { %1995 = vmatprep.mubr.msk.bf16.mxu1 %vm430_vm1, %v1821_v54 }
  0x63   : > { %1966 = vmatmul.mubr.msk.bf16.gmra.mrb[20].mxu0 %vm430_vm1, %v1789_v55 }
  0x64   : > { %2005 = vmatprep.mubr.msk.bf16.mxu0 %vm430_vm1, %v1781_v24 }
  0x65   : > { %1996 = vmatmul.mubr.msk.bf16.gmra.mrb[20].mxu1 %vm430_vm1, %v1822_v58 }
  0x6b   : > { %2006 = vmatmul.mubr.msk.bf16.vlgmr.msra.gmra.mrb[24].mxu0 %vm430_vm1, %v1782_v25 }
  0x6c   : > { %2009 = vmatprep.mubr.msk.bf16.mxu0 %vm430_vm1, %v1783_v32 }
  0x73   : > { %2010 = vmatmul.mubr.msk.bf16.gmra.mrb[28].mxu0 %vm430_vm1, %v1784_v33 }
  0x74   : > { %2013 = vmatprep.mubr.msk.bf16.mxu0 %vm430_vm1, %v1785_v40  ;;  %v332_v40 = vld [vmem:[#allocation2 + $0x50] sm:$0xff] }
  0x7b   : > { %2014 = vmatmul.mubr.msk.bf16.gmra.mrb[32].mxu0 %vm430_vm1, %v1786_v41 }
  0x7c   : > { %2017 = vmatprep.mubr.msk.bf16.mxu0 %vm430_vm1, %v1787_v48 }
  0x83   : > { %2018 = vmatmul.mubr.msk.bf16.gmra.mrb[36].mxu0 %vm430_vm1, %v1788_v49 }
  0x84   : > { %2021 = vmatprep.mubr.msk.bf16.mxu0 %vm430_vm1, %v1789_v55 }
  0x8b   : > { %2022 = vmatmul.mubr.msk.bf16.gmra.mrb[40].mxu0 %vm430_vm1, %v1844_v60 }
  0x8c   : > { %2025 = vmatprep.mubr.msk.bf16.mxu0 %vm430_vm1, %v1845_v61 }
  0x93   : > { %2026 = vmatmul.mubr.msk.bf16.gmra.mrb[44].mxu0 %vm430_vm1, %v2146_v62 }
 0x10e   : > { %v1947_v3 = vpop.f32.mrb[0].mxu0 }
 0x10f   : > { %v598_v5 = vadd.f32 %v1947_v3, %v324_v1  ;;  %v501_v6 = vpop.f32.mrb[1].mxu0 }
 0x110   : > { %v596_v8 = vadd.f32 %v501_v6, %v322_v2  ;;  %v1948_v9 = vpop.f32.mrb[2].mxu0  ;;  %v1977_v12 = vpop.f32.mrb[0].mxu1  ;;  %v334_v2 = vld [vmem:[#allocation2 + $0x60] sm:$0xff] }
 0x111   : > { %622 = vst.msk [vmem:[#allocation2 + $0x10] sm:$0xff] %vm263_vm0, %v598_v5  ;;  %v599_v10 = vadd.f32 %v1948_v9, %v325_v4  ;;  %v504_v11 = vpop.f32.mrb[3].mxu0  ;;  %v781_v14 = vpop.f32.mrb[1].mxu1  ;;  %v337_v4 = vld [vmem:[#allocation2 + $0x78] sm:$0xff] }
 0x112   : > { %620 = vst.msk [vmem:[#allocation2] sm:$0xff] %vm263_vm0, %v596_v8  ;;  %v597_v13 = vadd.f32 %v504_v11, %v323_v7  ;;  %v1978_v15 = vpop.f32.mrb[2].mxu1  ;;  %v335_v7 = vld [vmem:[#allocation2 + $0x68] sm:$0xff] }
 0x113   : > { %623 = vst.msk [vmem:[#allocation2 + $0x18] sm:$0xff] %vm263_vm0, %v599_v10  ;;  %v784_v17 = vpop.f32.mrb[3].mxu1 }
 0x114   : > { %621 = vst.msk [vmem:[#allocation2 + $0x8] sm:$0xff] %vm263_vm0, %v597_v13 }
 0x116   : > { %v1951_v19 = vpop.f32.mrb[4].mxu0 }
 0x117   : > { %v602_v21 = vadd.f32 %v1951_v19, %v328_v16  ;;  %v517_v22 = vpop.f32.mrb[5].mxu0 }
 0x118   : > { %v600_v24 = vadd.f32 %v517_v22, %v326_v18  ;;  %v1952_v25 = vpop.f32.mrb[6].mxu0  ;;  %v646_v26 = vld [vmem:[#allocation2 + $0x10] sm:$0xff]  ;;  %v1981_v31 = vpop.f32.mrb[4].mxu1 }
 0x119   : > { %626 = vst.msk [vmem:[#allocation2 + $0x30] sm:$0xff] %vm263_vm0, %v602_v21  ;;  %v603_v27 = vadd.f32 %v1952_v25, %v329_v20  ;;  %v878_v28 = vadd.f32 %v1977_v12, %v646_v26  ;;  %v520_v29 = vpop.f32.mrb[7].mxu0  ;;  %v644_v30 = vld [vmem:[#allocation2] sm:$0xff]  ;;  %v797_v35 = vpop.f32.mrb[5].mxu1 }
 0x11a   : > { %624 = vst.msk [vmem:[#allocation2 + $0x20] sm:$0xff] %vm263_vm0, %v600_v24  ;;  %v601_v32 = vadd.f32 %v520_v29, %v327_v23  ;;  %v876_v33 = vadd.f32 %v781_v14, %v644_v30  ;;  %v647_v34 = vld [vmem:[#allocation2 + $0x18] sm:$0xff]  ;;  %v1982_v38 = vpop.f32.mrb[6].mxu1  ;;  %v340_v24 = vld [vmem:[#allocation2 + $0x90] sm:$0xff]  ;;  %v338_v26 = vld [vmem:[#allocation2 + $0x80] sm:$0xff] }
 0x11b   : > { %627 = vst.msk [vmem:[#allocation2 + $0x38] sm:$0xff] %vm263_vm0, %v603_v27  ;;  %902 = vst.msk [vmem:[#allocation2 + $0x10] sm:$0xff] %vm263_vm0, %v878_v28  ;;  %v879_v36 = vadd.f32 %v1978_v15, %v647_v34  ;;  %v645_v37 = vld [vmem:[#allocation2 + $0x8] sm:$0xff]  ;;  %v800_v41 = vpop.f32.mrb[7].mxu1  ;;  %v341_v28 = vld [vmem:[#allocation2 + $0x98] sm:$0xff] }
 0x11c   : > { %625 = vst.msk [vmem:[#allocation2 + $0x28] sm:$0xff] %vm263_vm0, %v601_v32  ;;  %900 = vst.msk [vmem:[#allocation2] sm:$0xff] %vm263_vm0, %v876_v33  ;;  %v877_v39 = vadd.f32 %v784_v17, %v645_v37 }
 0x11d   : > { %903 = vst.msk [vmem:[#allocation2 + $0x18] sm:$0xff] %vm263_vm0, %v879_v36 }
 0x11e   : > { %901 = vst.msk [vmem:[#allocation2 + $0x8] sm:$0xff] %vm263_vm0, %v877_v39  ;;  %v1955_v43 = vpop.f32.mrb[8].mxu0 }
 0x11f   : > { %v606_v45 = vadd.f32 %v1955_v43, %v332_v40  ;;  %v533_v46 = vpop.f32.mrb[9].mxu0 }
 0x120   : > { %v604_v48 = vadd.f32 %v533_v46, %v330_v42  ;;  %v1956_v49 = vpop.f32.mrb[10].mxu0  ;;  %v650_v50 = vld [vmem:[#allocation2 + $0x30] sm:$0xff]  ;;  %v1985_v55 = vpop.f32.mrb[8].mxu1 }
 0x121   : > { %630 = vst.msk [vmem:[#allocation2 + $0x50] sm:$0xff] %vm263_vm0, %v606_v45  ;;  %v607_v51 = vadd.f32 %v1956_v49, %v333_v44  ;;  %v882_v52 = vadd.f32 %v1981_v31, %v650_v50  ;;  %v536_v53 = vpop.f32.mrb[11].mxu0  ;;  %v648_v54 = vld [vmem:[#allocation2 + $0x20] sm:$0xff]  ;;  %v813_v59 = vpop.f32.mrb[9].mxu1  ;;  %v339_v31 = vld [vmem:[#allocation2 + $0x88] sm:$0xff] }
 0x122   : > { %628 = vst.msk [vmem:[#allocation2 + $0x40] sm:$0xff] %vm263_vm0, %v604_v48  ;;  %v605_v56 = vadd.f32 %v536_v53, %v331_v47  ;;  %v880_v57 = vadd.f32 %v797_v35, %v648_v54  ;;  %v651_v58 = vld [vmem:[#allocation2 + $0x38] sm:$0xff]  ;;  %v1986_v62 = vpop.f32.mrb[10].mxu1  ;;  %v344_v48 = vld [vmem:[#allocation2 + $0xb0] sm:$0xff]  ;;  %v342_v50 = vld [vmem:[#allocation2 + $0xa0] sm:$0xff] }
 0x123   : > { %631 = vst.msk [vmem:[#allocation2 + $0x58] sm:$0xff] %vm263_vm0, %v607_v51  ;;  %906 = vst.msk [vmem:[#allocation2 + $0x30] sm:$0xff] %vm263_vm0, %v882_v52  ;;  %v883_v60 = vadd.f32 %v1982_v38, %v651_v58  ;;  %v649_v61 = vld [vmem:[#allocation2 + $0x28] sm:$0xff]  ;;  %v816_v1 = vpop.f32.mrb[11].mxu1  ;;  %v345_v52 = vld [vmem:[#allocation2 + $0xb8] sm:$0xff] }
 0x124   : > { %629 = vst.msk [vmem:[#allocation2 + $0x48] sm:$0xff] %vm263_vm0, %v605_v56  ;;  %904 = vst.msk [vmem:[#allocation2 + $0x20] sm:$0xff] %vm263_vm0, %v880_v57  ;;  %v881_v63 = vadd.f32 %v800_v41, %v649_v61 }
 0x125   : > { %907 = vst.msk [vmem:[#allocation2 + $0x38] sm:$0xff] %vm263_vm0, %v883_v60 }
 0x126   : > { %905 = vst.msk [vmem:[#allocation2 + $0x28] sm:$0xff] %vm263_vm0, %v881_v63  ;;  %v1959_v3 = vpop.f32.mrb[12].mxu0 }
 0x127   : > { %v610_v5 = vadd.f32 %v1959_v3, %v336_v0  ;;  %v549_v6 = vpop.f32.mrb[13].mxu0 }
 0x128   : > { %v608_v8 = vadd.f32 %v549_v6, %v334_v2  ;;  %v1960_v9 = vpop.f32.mrb[14].mxu0  ;;  %v654_v10 = vld [vmem:[#allocation2 + $0x50] sm:$0xff]  ;;  %v1989_v15 = vpop.f32.mrb[12].mxu1 }
 0x129   : > { %634 = vst.msk [vmem:[#allocation2 + $0x70] sm:$0xff] %vm263_vm0, %v610_v5  ;;  %v611_v11 = vadd.f32 %v1960_v9, %v337_v4  ;;  %v886_v12 = vadd.f32 %v1985_v55, %v654_v10  ;;  %v552_v13 = vpop.f32.mrb[15].mxu0  ;;  %v652_v14 = vld [vmem:[#allocation2 + $0x40] sm:$0xff]  ;;  %v829_v19 = vpop.f32.mrb[13].mxu1  ;;  %v343_v55 = vld [vmem:[#allocation2 + $0xa8] sm:$0xff]  ;;  %v926_v9 = vld [vmem:[#allocation2 + $0x10] sm:$0xff] }
 0x12a   : > { %632 = vst.msk [vmem:[#allocation2 + $0x60] sm:$0xff] %vm263_vm0, %v608_v8  ;;  %v609_v16 = vadd.f32 %v552_v13, %v335_v7  ;;  %v884_v17 = vadd.f32 %v813_v59, %v652_v14  ;;  %v655_v18 = vld [vmem:[#allocation2 + $0x58] sm:$0xff]  ;;  %v1990_v22 = vpop.f32.mrb[14].mxu1 }
 0x12b   : > { %635 = vst.msk [vmem:[#allocation2 + $0x78] sm:$0xff] %vm263_vm0, %v611_v11  ;;  %910 = vst.msk [vmem:[#allocation2 + $0x50] sm:$0xff] %vm263_vm0, %v886_v12  ;;  %v887_v20 = vadd.f32 %v1986_v62, %v655_v18  ;;  %v653_v21 = vld [vmem:[#allocation2 + $0x48] sm:$0xff]  ;;  %v832_v25 = vpop.f32.mrb[15].mxu1  ;;  %v924_v12 = vld [vmem:[#allocation2] sm:$0xff] }
 0x12c   : > { %633 = vst.msk [vmem:[#allocation2 + $0x68] sm:$0xff] %vm263_vm0, %v609_v16  ;;  %908 = vst.msk [vmem:[#allocation2 + $0x40] sm:$0xff] %vm263_vm0, %v884_v17  ;;  %v885_v23 = vadd.f32 %v816_v1, %v653_v21  ;;  %v927_v16 = vld [vmem:[#allocation2 + $0x18] sm:$0xff]  ;;  %v925_v21 = vld [vmem:[#allocation2 + $0x8] sm:$0xff] }
 0x12d   : > { %911 = vst.msk [vmem:[#allocation2 + $0x58] sm:$0xff] %vm263_vm0, %v887_v20 }
 0x12e   : > { %909 = vst.msk [vmem:[#allocation2 + $0x48] sm:$0xff] %vm263_vm0, %v885_v23  ;;  %v1963_v27 = vpop.f32.mrb[16].mxu0 }
 0x12f   : > { %v614_v29 = vadd.f32 %v1963_v27, %v340_v24  ;;  %v565_v30 = vpop.f32.mrb[17].mxu0 }
 0x130   : > { %v612_v32 = vadd.f32 %v565_v30, %v338_v26  ;;  %v1964_v33 = vpop.f32.mrb[18].mxu0  ;;  %v658_v34 = vld [vmem:[#allocation2 + $0x70] sm:$0xff]  ;;  %v1993_v39 = vpop.f32.mrb[16].mxu1 }
 0x131   : > { %638 = vst.msk [vmem:[#allocation2 + $0x90] sm:$0xff] %vm263_vm0, %v614_v29  ;;  %v615_v35 = vadd.f32 %v1964_v33, %v341_v28  ;;  %v890_v36 = vadd.f32 %v1989_v15, %v658_v34  ;;  %v568_v37 = vpop.f32.mrb[19].mxu0  ;;  %v656_v38 = vld [vmem:[#allocation2 + $0x60] sm:$0xff]  ;;  %v845_v43 = vpop.f32.mrb[17].mxu1  ;;  %v930_v29 = vld [vmem:[#allocation2 + $0x30] sm:$0xff] }
 0x132   : > { %636 = vst.msk [vmem:[#allocation2 + $0x80] sm:$0xff] %vm263_vm0, %v612_v32  ;;  %v613_v40 = vadd.f32 %v568_v37, %v339_v31  ;;  %v888_v41 = vadd.f32 %v829_v19, %v656_v38  ;;  %v659_v42 = vld [vmem:[#allocation2 + $0x78] sm:$0xff]  ;;  %v1994_v46 = vpop.f32.mrb[18].mxu1  ;;  %v928_v32 = vld [vmem:[#allocation2 + $0x20] sm:$0xff] }
 0x133   : > { %639 = vst.msk [vmem:[#allocation2 + $0x98] sm:$0xff] %vm263_vm0, %v615_v35  ;;  %914 = vst.msk [vmem:[#allocation2 + $0x70] sm:$0xff] %vm263_vm0, %v890_v36  ;;  %v891_v44 = vadd.f32 %v1990_v22, %v659_v42  ;;  %v657_v45 = vld [vmem:[#allocation2 + $0x68] sm:$0xff]  ;;  %v848_v49 = vpop.f32.mrb[19].mxu1  ;;  %v2606_v34 = vld [vmem:[#allocation3] ss:$0 sm:$0xff] }
 0x134   : > { %637 = vst.msk [vmem:[#allocation2 + $0x88] sm:$0xff] %vm263_vm0, %v613_v40  ;;  %912 = vst.msk [vmem:[#allocation2 + $0x60] sm:$0xff] %vm263_vm0, %v888_v41  ;;  %v889_v47 = vadd.f32 %v832_v25, %v657_v45  ;;  %v931_v36 = vld [vmem:[#allocation2 + $0x38] sm:$0xff]  ;;  %v929_v40 = vld [vmem:[#allocation2 + $0x28] sm:$0xff] }
 0x135   : > { %915 = vst.msk [vmem:[#allocation2 + $0x78] sm:$0xff] %vm263_vm0, %v891_v44 }
 0x136   : > { %913 = vst.msk [vmem:[#allocation2 + $0x68] sm:$0xff] %vm263_vm0, %v889_v47  ;;  %v1967_v51 = vpop.f32.mrb[20].mxu0 }
 0x137   : > { %v618_v53 = vadd.f32 %v1967_v51, %v344_v48  ;;  %v581_v54 = vpop.f32.mrb[21].mxu0  ;;  %v934_v51 = vld [vmem:[#allocation2 + $0x50] sm:$0xff] }
 0x138   : > { %v616_v56 = vadd.f32 %v581_v54, %v342_v50  ;;  %v1968_v57 = vpop.f32.mrb[22].mxu0  ;;  %v662_v58 = vld [vmem:[#allocation2 + $0x90] sm:$0xff]  ;;  %v1997_v63 = vpop.f32.mrb[20].mxu1 }
 0x139   : > { %642 = vst.msk [vmem:[#allocation2 + $0xb0] sm:$0xff] %vm263_vm0, %v618_v53  ;;  %v619_v59 = vadd.f32 %v1968_v57, %v345_v52  ;;  %v894_v60 = vadd.f32 %v1993_v39, %v662_v58  ;;  %v584_v61 = vpop.f32.mrb[23].mxu0  ;;  %v660_v62 = vld [vmem:[#allocation2 + $0x80] sm:$0xff]  ;;  %v861_v3 = vpop.f32.mrb[21].mxu1 }
 0x13a   : > { %640 = vst.msk [vmem:[#allocation2 + $0xa0] sm:$0xff] %vm263_vm0, %v616_v56  ;;  %v617_v0 = vadd.f32 %v584_v61, %v343_v55  ;;  %v892_v1 = vadd.f32 %v845_v43, %v660_v62  ;;  %v663_v2 = vld [vmem:[#allocation2 + $0x98] sm:$0xff]  ;;  %v1998_v6 = vpop.f32.mrb[22].mxu1  ;;  %v932_v56 = vld [vmem:[#allocation2 + $0x40] sm:$0xff] }
 0x13b   : > { %643 = vst.msk [vmem:[#allocation2 + $0xb8] sm:$0xff] %vm263_vm0, %v619_v59  ;;  %918 = vst.msk [vmem:[#allocation2 + $0x90] sm:$0xff] %vm263_vm0, %v894_v60  ;;  %v895_v4 = vadd.f32 %v1994_v46, %v663_v2  ;;  %v661_v5 = vld [vmem:[#allocation2 + $0x88] sm:$0xff]  ;;  %v864_v8 = vpop.f32.mrb[23].mxu1  ;;  %v935_v60 = vld [vmem:[#allocation2 + $0x58] sm:$0xff] }
 0x13c   : > { %641 = vst.msk [vmem:[#allocation2 + $0xa8] sm:$0xff] %vm263_vm0, %v617_v0  ;;  %916 = vst.msk [vmem:[#allocation2 + $0x80] sm:$0xff] %vm263_vm0, %v892_v1  ;;  %v893_v7 = vadd.f32 %v848_v49, %v661_v5  ;;  %v933_v1 = vld [vmem:[#allocation2 + $0x48] sm:$0xff] }
 0x13d   : > { %919 = vst.msk [vmem:[#allocation2 + $0x98] sm:$0xff] %vm263_vm0, %v895_v4 }
 0x13e   : > { %917 = vst.msk [vmem:[#allocation2 + $0x88] sm:$0xff] %vm263_vm0, %v893_v7  ;;  %v2007_v10 = vpop.f32.mrb[24].mxu0 }
 0x13f   : > { %v1122_v11 = vadd.f32 %v2007_v10, %v926_v9  ;;  %v1025_v13 = vpop.f32.mrb[25].mxu0 }
 0x140   : > { %v1120_v14 = vadd.f32 %v1025_v13, %v924_v12  ;;  %v666_v15 = vld [vmem:[#allocation2 + $0xb0] sm:$0xff]  ;;  %v2008_v17 = vpop.f32.mrb[26].mxu0 }
 0x141   : > { %1146 = vst.msk [vmem:[#allocation2 + $0x10] sm:$0xff] %vm263_vm0, %v1122_v11  ;;  %v898_v18 = vadd.f32 %v1997_v63, %v666_v15  ;;  %v1123_v19 = vadd.f32 %v2008_v17, %v927_v16  ;;  %v664_v20 = vld [vmem:[#allocation2 + $0xa0] sm:$0xff]  ;;  %v1028_v22 = vpop.f32.mrb[27].mxu0  ;;  %v938_v13 = vld [vmem:[#allocation2 + $0x70] sm:$0xff] }
 0x142   : > { %1144 = vst.msk [vmem:[#allocation2] sm:$0xff] %vm263_vm0, %v1120_v14  ;;  %v896_v23 = vadd.f32 %v861_v3, %v664_v20  ;;  %v1121_v24 = vadd.f32 %v1028_v22, %v925_v21  ;;  %v667_v25 = vld [vmem:[#allocation2 + $0xb8] sm:$0xff] }
 0x143   : > { %922 = vst.msk [vmem:[#allocation2 + $0xb0] sm:$0xff] %vm263_vm0, %v898_v18  ;;  %1147 = vst.msk [vmem:[#allocation2 + $0x18] sm:$0xff] %vm263_vm0, %v1123_v19  ;;  %v899_v26 = vadd.f32 %v1998_v6, %v667_v25  ;;  %v665_v27 = vld [vmem:[#allocation2 + $0xa8] sm:$0xff]  ;;  %v936_v18 = vld [vmem:[#allocation2 + $0x60] sm:$0xff] }
 0x144   : > { %920 = vst.msk [vmem:[#allocation2 + $0xa0] sm:$0xff] %vm263_vm0, %v896_v23  ;;  %1145 = vst.msk [vmem:[#allocation2 + $0x8] sm:$0xff] %vm263_vm0, %v1121_v24  ;;  %v897_v28 = vadd.f32 %v864_v8, %v665_v27  ;;  %v939_v22 = vld [vmem:[#allocation2 + $0x78] sm:$0xff]  ;;  %v937_v27 = vld [vmem:[#allocation2 + $0x68] sm:$0xff] }
 0x145   : > { %923 = vst.msk [vmem:[#allocation2 + $0xb8] sm:$0xff] %vm263_vm0, %v899_v26 }
 0x146   : > { %921 = vst.msk [vmem:[#allocation2 + $0xa8] sm:$0xff] %vm263_vm0, %v897_v28  ;;  %v2011_v30 = vpop.f32.mrb[28].mxu0 }
 0x147   : > { %v1126_v31 = vadd.f32 %v2011_v30, %v930_v29  ;;  %v1041_v33 = vpop.f32.mrb[29].mxu0 }
 0x148   : > { %v1124_v35 = vadd.f32 %v1041_v33, %v928_v32  ;;  %v2012_v37 = vpop.f32.mrb[30].mxu0  ;;  %v1170_v38 = vld [vmem:[#allocation2 + $0x10] sm:$0xff] }
 0x149   : > { %1150 = vst.msk [vmem:[#allocation2 + $0x30] sm:$0xff] %vm263_vm0, %v1126_v31  ;;  %v1127_v39 = vadd.f32 %v2012_v37, %v931_v36  ;;  %v1044_v41 = vpop.f32.mrb[31].mxu0  ;;  %v1168_v42 = vld [vmem:[#allocation2] sm:$0xff]  ;;  %v1201_v47 = vadd.f32 %v2606_v34, %v1170_v38 }
 0x14a   : > { %1148 = vst.msk [vmem:[#allocation2 + $0x20] sm:$0xff] %vm263_vm0, %v1124_v35  ;;  %v1125_v43 = vadd.f32 %v1044_v41, %v929_v40  ;;  %v1199_v44 = vadd.f32 %v2606_v34, %v1168_v42  ;;  %v1171_v45 = vld [vmem:[#allocation2 + $0x18] sm:$0xff]  ;;  %v942_v40 = vld [vmem:[#allocation2 + $0x90] sm:$0xff] }
 0x14b   : > { %1151 = vst.msk [vmem:[#allocation2 + $0x38] sm:$0xff] %vm263_vm0, %v1127_v39  ;;  %v1169_v46 = vld [vmem:[#allocation2 + $0x8] sm:$0xff]  ;;  %v1202_v48 = vadd.f32 %v2606_v34, %v1171_v45  ;;  %v1225_v58 = vmax.f32 %v1201_v47, 0.0  ;;  %v940_v45 = vld [vmem:[#allocation2 + $0x80] sm:$0xff] }
 0x14c   : > { %1149 = vst.msk [vmem:[#allocation2 + $0x28] sm:$0xff] %vm263_vm0, %v1125_v43  ;;  %v1200_v49 = vadd.f32 %v2606_v34, %v1169_v46  ;;  %v1223_v53 = vmax.f32 %v1199_v44, 0.0 }
 0x14d   : > { %v1226_v50 = vmax.f32 %v1202_v48, 0.0 }
 0x14e   : > { %v2015_v52 = vpop.f32.mrb[32].mxu0  ;;  %v1224_v54 = vmax.f32 %v1200_v49, 0.0  ;;  %v943_v49 = vld [vmem:[#allocation2 + $0x98] sm:$0xff] }
 0x14f   : > { %v1130_v55 = vadd.f32 %v2015_v52, %v934_v51  ;;  %v1057_v57 = vpop.f32.mrb[33].mxu0  ;;  %v1248_v3 = vpack.c.bf16 %v1226_v50, %v1225_v58 }
 0x150   : > { %v1128_v59 = vadd.f32 %v1057_v57, %v932_v56  ;;  %v2016_v61 = vpop.f32.mrb[34].mxu0  ;;  %v1247_v62 = vpack.c.bf16 %v1224_v54, %v1223_v53  ;;  %v1174_v63 = vld [vmem:[#allocation2 + $0x30] sm:$0xff]  ;;  %v941_v54 = vld [vmem:[#allocation2 + $0x88] sm:$0xff] }
 0x151   : > { %1154 = vst.msk [vmem:[#allocation2 + $0x50] sm:$0xff] %vm263_vm0, %v1130_v55  ;;  %v1131_v0 = vadd.f32 %v2016_v61, %v935_v60  ;;  %v1060_v2 = vpop.f32.mrb[35].mxu0  ;;  %v1172_v4 = vld [vmem:[#allocation2 + $0x20] sm:$0xff]  ;;  %v1205_v9 = vadd.f32 %v2606_v34, %v1174_v63 }
 0x152   : > { %1152 = vst.msk [vmem:[#allocation2 + $0x40] sm:$0xff] %vm263_vm0, %v1128_v59  ;;  %v1129_v5 = vadd.f32 %v1060_v2, %v933_v1  ;;  %2033 = vmatprep.mubr.msk.bf16.mxu1 %vm263_vm0, %v1247_v62  ;;  %v1203_v6 = vadd.f32 %v2606_v34, %v1172_v4  ;;  %v1175_v7 = vld [vmem:[#allocation2 + $0x38] sm:$0xff]  ;;  %v946_v2 = vld [vmem:[#allocation2 + $0xb0] sm:$0xff] }
 0x153   : > { %1155 = vst.msk [vmem:[#allocation2 + $0x58] sm:$0xff] %vm263_vm0, %v1131_v0  ;;  %2034 = vmatmul.mubr.msk.bf16.vlgmr.msra.gmra.mrb[24].mxu1 %vm263_vm0, %v1248_v3  ;;  %v1173_v8 = vld [vmem:[#allocation2 + $0x28] sm:$0xff]  ;;  %v1206_v10 = vadd.f32 %v2606_v34, %v1175_v7  ;;  %v1229_v20 = vmax.f32 %v1205_v9, 0.0  ;;  %v944_v7 = vld [vmem:[#allocation2 + $0xa0] sm:$0xff] }
 0x154   : > { %1153 = vst.msk [vmem:[#allocation2 + $0x48] sm:$0xff] %vm263_vm0, %v1129_v5  ;;  %v1204_v11 = vadd.f32 %v2606_v34, %v1173_v8  ;;  %v1227_v15 = vmax.f32 %v1203_v6, 0.0 }
 0x155   : > { %v1230_v12 = vmax.f32 %v1206_v10, 0.0 }
 0x156   : > { %v2019_v14 = vpop.f32.mrb[36].mxu0  ;;  %v1228_v16 = vmax.f32 %v1204_v11, 0.0  ;;  %v947_v11 = vld [vmem:[#allocation2 + $0xb8] sm:$0xff] }
 0x157   : > { %v1134_v17 = vadd.f32 %v2019_v14, %v938_v13  ;;  %v1073_v19 = vpop.f32.mrb[37].mxu0  ;;  %v1250_v29 = vpack.c.bf16 %v1230_v12, %v1229_v20 }
 0x158   : > { %v1132_v21 = vadd.f32 %v1073_v19, %v936_v18  ;;  %v2020_v23 = vpop.f32.mrb[38].mxu0  ;;  %v1249_v24 = vpack.c.bf16 %v1228_v16, %v1227_v15  ;;  %v1178_v25 = vld [vmem:[#allocation2 + $0x50] sm:$0xff]  ;;  %v945_v16 = vld [vmem:[#allocation2 + $0xa8] sm:$0xff] }
 0x159   : > { %1158 = vst.msk [vmem:[#allocation2 + $0x70] sm:$0xff] %vm263_vm0, %v1134_v17  ;;  %v1135_v26 = vadd.f32 %v2020_v23, %v939_v22  ;;  %v1076_v28 = vpop.f32.mrb[39].mxu0  ;;  %v1176_v30 = vld [vmem:[#allocation2 + $0x40] sm:$0xff]  ;;  %v1209_v36 = vadd.f32 %v2606_v34, %v1178_v25 }
 0x15a   : > { %1156 = vst.msk [vmem:[#allocation2 + $0x60] sm:$0xff] %vm263_vm0, %v1132_v21  ;;  %v1133_v31 = vadd.f32 %v1076_v28, %v937_v27  ;;  %2037 = vmatprep.mubr.msk.bf16.mxu1 %vm263_vm0, %v1249_v24  ;;  %v1207_v32 = vadd.f32 %v2606_v34, %v1176_v30  ;;  %v1179_v33 = vld [vmem:[#allocation2 + $0x58] sm:$0xff] }
 0x15b   : > { %1159 = vst.msk [vmem:[#allocation2 + $0x78] sm:$0xff] %vm263_vm0, %v1135_v26  ;;  %2038 = vmatmul.mubr.msk.bf16.gmra.mrb[28].mxu1 %vm263_vm0, %v1250_v29  ;;  %v1177_v35 = vld [vmem:[#allocation2 + $0x48] sm:$0xff]  ;;  %v1210_v37 = vadd.f32 %v2606_v34, %v1179_v33  ;;  %v1233_v47 = vmax.f32 %v1209_v36, 0.0 }
 0x15c   : > { %1157 = vst.msk [vmem:[#allocation2 + $0x68] sm:$0xff] %vm263_vm0, %v1133_v31  ;;  %v1208_v38 = vadd.f32 %v2606_v34, %v1177_v35  ;;  %v1231_v42 = vmax.f32 %v1207_v32, 0.0 }
 0x15d   : > { %v1234_v39 = vmax.f32 %v1210_v37, 0.0 }
 0x15e   : > { %v2023_v41 = vpop.f32.mrb[40].mxu0  ;;  %v1232_v43 = vmax.f32 %v1208_v38, 0.0 }
 0x15f   : > { %v1138_v44 = vadd.f32 %v2023_v41, %v942_v40  ;;  %v1089_v46 = vpop.f32.mrb[41].mxu0  ;;  %v1252_v56 = vpack.c.bf16 %v1234_v39, %v1233_v47 }
 0x160   : > { %v1136_v48 = vadd.f32 %v1089_v46, %v940_v45  ;;  %v2024_v50 = vpop.f32.mrb[42].mxu0  ;;  %v1251_v51 = vpack.c.bf16 %v1232_v43, %v1231_v42  ;;  %v1182_v52 = vld [vmem:[#allocation2 + $0x70] sm:$0xff] }
 0x161   : > { %1162 = vst.msk [vmem:[#allocation2 + $0x90] sm:$0xff] %vm263_vm0, %v1138_v44  ;;  %v1139_v53 = vadd.f32 %v2024_v50, %v943_v49  ;;  %v1092_v55 = vpop.f32.mrb[43].mxu0  ;;  %v1180_v57 = vld [vmem:[#allocation2 + $0x60] sm:$0xff]  ;;  %v1213_v62 = vadd.f32 %v2606_v34, %v1182_v52 }
 0x162   : > { %1160 = vst.msk [vmem:[#allocation2 + $0x80] sm:$0xff] %vm263_vm0, %v1136_v48  ;;  %v1137_v58 = vadd.f32 %v1092_v55, %v941_v54  ;;  %2041 = vmatprep.mubr.msk.bf16.mxu1 %vm263_vm0, %v1251_v51  ;;  %v1211_v59 = vadd.f32 %v2606_v34, %v1180_v57  ;;  %v1183_v60 = vld [vmem:[#allocation2 + $0x78] sm:$0xff]  ;;  %v1447_v48 = vlaneseq  ;;  %v2667_v50 = vld [vmem:[%s2952_s4] ss:$0 sm:$0xff] }
 0x163   : > { %1163 = vst.msk [vmem:[#allocation2 + $0x98] sm:$0xff] %vm263_vm0, %v1139_v53  ;;  %2042 = vmatmul.mubr.msk.bf16.gmra.mrb[32].mxu1 %vm263_vm0, %v1252_v56  ;;  %v1181_v61 = vld [vmem:[#allocation2 + $0x68] sm:$0xff]  ;;  %v1214_v63 = vadd.f32 %v2606_v34, %v1183_v60  ;;  %v1237_v9 = vmax.f32 %v1213_v62, 0.0 }
 0x164   : > { %1161 = vst.msk [vmem:[#allocation2 + $0x88] sm:$0xff] %vm263_vm0, %v1137_v58  ;;  %v1212_v0 = vadd.f32 %v2606_v34, %v1181_v61  ;;  %v1235_v4 = vmax.f32 %v1211_v59, 0.0  ;;  %v1448_v49 = vand.u32 127, %v1447_v48 }
 0x165   : > { %v1238_v1 = vmax.f32 %v1214_v63, 0.0 }
 0x166   : > { %v2027_v3 = vpop.f32.mrb[44].mxu0  ;;  %v1236_v5 = vmax.f32 %v1212_v0, 0.0  ;;  %vm1449_vm2 = vcmp.ge.s32.totalorder %v1448_v49, 54  ;;  %vm1450_vm3 = vcmp.lt.s32.totalorder %v1448_v49, 63 }
 0x167   : > { %v1142_v6 = vadd.f32 %v2027_v3, %v946_v2  ;;  %v1105_v8 = vpop.f32.mrb[45].mxu0  ;;  %v1254_v18 = vpack.c.bf16 %v1238_v1, %v1237_v9  ;;  %vm2669_vm4 = vmand %vm1449_vm2, %vm1450_vm3 }
 0x168   : > { %v1140_v10 = vadd.f32 %v1105_v8, %v944_v7  ;;  %v2028_v12 = vpop.f32.mrb[46].mxu0  ;;  %v1253_v13 = vpack.c.bf16 %v1236_v5, %v1235_v4  ;;  %v1186_v14 = vld [vmem:[#allocation2 + $0x90] sm:$0xff] }
 0x169   : > { %1166 = vst.msk [vmem:[#allocation2 + $0xb0] sm:$0xff] %vm263_vm0, %v1142_v6  ;;  %v1143_v15 = vadd.f32 %v2028_v12, %v947_v11  ;;  %v1108_v17 = vpop.f32.mrb[47].mxu0  ;;  %v1184_v19 = vld [vmem:[#allocation2 + $0x80] sm:$0xff]  ;;  %v1217_v24 = vadd.f32 %v2606_v34, %v1186_v14 }
 0x16a   : > { %1164 = vst.msk [vmem:[#allocation2 + $0xa0] sm:$0xff] %vm263_vm0, %v1140_v10  ;;  %v1141_v20 = vadd.f32 %v1108_v17, %v945_v16  ;;  %2045 = vmatprep.mubr.msk.bf16.mxu1 %vm263_vm0, %v1253_v13  ;;  %v1215_v21 = vadd.f32 %v2606_v34, %v1184_v19  ;;  %v1187_v22 = vld [vmem:[#allocation2 + $0x98] sm:$0xff] }
 0x16b   : > { %1167 = vst.msk [vmem:[#allocation2 + $0xb8] sm:$0xff] %vm263_vm0, %v1143_v15  ;;  %2046 = vmatmul.mubr.msk.bf16.gmra.mrb[36].mxu1 %vm263_vm0, %v1254_v18  ;;  %v1185_v23 = vld [vmem:[#allocation2 + $0x88] sm:$0xff]  ;;  %v1218_v25 = vadd.f32 %v2606_v34, %v1187_v22  ;;  %v1241_v30 = vmax.f32 %v1217_v24, 0.0 }
 0x16c   : > { %1165 = vst.msk [vmem:[#allocation2 + $0xa8] sm:$0xff] %vm263_vm0, %v1141_v20  ;;  %v1216_v26 = vadd.f32 %v2606_v34, %v1185_v23  ;;  %v1239_v28 = vmax.f32 %v1215_v21, 0.0 }
 0x16d   : > { %v1242_v27 = vmax.f32 %v1218_v25, 0.0 }
 0x16e   : > { %v1240_v29 = vmax.f32 %v1216_v26, 0.0 }
 0x16f   : > { %v1256_v33 = vpack.c.bf16 %v1242_v27, %v1241_v30 }
 0x170   : > { %v1255_v31 = vpack.c.bf16 %v1240_v29, %v1239_v28  ;;  %v1190_v32 = vld [vmem:[#allocation2 + $0xb0] sm:$0xff] }
 0x171   : > { %v1188_v35 = vld [vmem:[#allocation2 + $0xa0] sm:$0xff]  ;;  %v1221_v39 = vadd.f32 %v2606_v34, %v1190_v32 }
 0x172   : > { %2049 = vmatprep.mubr.msk.bf16.mxu1 %vm263_vm0, %v1255_v31  ;;  %v1219_v36 = vadd.f32 %v2606_v34, %v1188_v35  ;;  %v1191_v37 = vld [vmem:[#allocation2 + $0xb8] sm:$0xff] }
 0x173   : > { %2050 = vmatmul.mubr.msk.bf16.gmra.mrb[40].mxu1 %vm263_vm0, %v1256_v33  ;;  %v1189_v38 = vld [vmem:[#allocation2 + $0xa8] sm:$0xff]  ;;  %v1222_v40 = vadd.f32 %v2606_v34, %v1191_v37  ;;  %v1245_v45 = vmax.f32 %v1221_v39, 0.0 }
 0x174   : > { %v1220_v41 = vadd.f32 %v2606_v34, %v1189_v38  ;;  %v1243_v43 = vmax.f32 %v1219_v36, 0.0 }
 0x175   : > { %v1246_v42 = vmax.f32 %v1222_v40, 0.0 }
 0x176   : > { %v1244_v44 = vmax.f32 %v1220_v41, 0.0 }
 0x177   : > { %v1258_v47 = vpack.c.bf16 %v1246_v42, %v1245_v45 }
 0x178   : > { %v1257_v46 = vpack.c.bf16 %v1244_v44, %v1243_v43 }
 0x17a   : > { %2053 = vmatprep.mubr.msk.bf16.mxu1 %vm263_vm0, %v1257_v46 }
 0x17b   : > { %2054 = vmatmul.mubr.msk.bf16.gmra.mrb[44].mxu1 %vm263_vm0, %v1258_v47 }
 0x226   : > { %v2035_v34 = vpop.f32.mrb[24].mxu1 }
 0x227   : > { %v2674_v52 = vadd.f32 %v2035_v34, %v2667_v50  ;;  %v1352_v53 = vpop.f32.mrb[25].mxu1 }
 0x228   : > { %v2677_v54 = vadd.f32 %v2667_v50, %v1352_v53  ;;  %v2036_v55 = vpop.f32.mrb[26].mxu1 }
 0x229   : > { %v1456_v56 = vsel %vm2669_vm4, %v2674_v52, 0.0  ;;  %v2683_v57 = vadd.f32 %v2036_v55, %v2667_v50  ;;  %v1355_v58 = vpop.f32.mrb[27].mxu1 }
 0x22a   : > { %v1480_v59 = vsub.f32 0.0, %v1456_v56  ;;  %v1454_v60 = vsel %vm2669_vm4, %v2677_v54, 0.0  ;;  %v2689_v61 = vadd.f32 %v2667_v50, %v1355_v58 }
 0x22b   : > { %v1478_v62 = vsub.f32 0.0, %v1454_v60  ;;  %v1457_v63 = vsel %vm2669_vm4, %v2683_v57, 0.0 }
 0x22c   : > { %v1506_v0 = vmul.f32 1.442695, %v1480_v59  ;;  %v1481_v1 = vsub.f32 0.0, %v1457_v63  ;;  %v1455_v2 = vsel %vm2669_vm4, %v2689_v61, 0.0 }
 0x22d   : > { %v1502_v3 = vmul.f32 1.442695, %v1478_v62  ;;  %v1479_v4 = vsub.f32 0.0, %v1455_v2 }
 0x22e   : > { %2149 = vpow2.f32 %v1506_v0  ;;  %v1508_v5 = vmul.f32 1.442695, %v1481_v1  ;;  %v2039_v6 = vpop.f32.mrb[28].mxu1 }
 0x22f   : > { %2151 = vpow2.f32 %v1502_v3  ;;  %v1504_v7 = vmul.f32 1.442695, %v1479_v4  ;;  %v2698_v8 = vadd.f32 %v2039_v6, %v2667_v50  ;;  %v1368_v9 = vpop.f32.mrb[29].mxu1 }
 0x230   : > { %2153 = vpow2.f32 %v1508_v5  ;;  %v2701_v10 = vadd.f32 %v2667_v50, %v1368_v9  ;;  %v2040_v11 = vpop.f32.mrb[30].mxu1 }
 0x231   : > { %2155 = vpow2.f32 %v1504_v7  ;;  %v1460_v12 = vsel %vm2669_vm4, %v2698_v8, 0.0  ;;  %v2707_v13 = vadd.f32 %v2040_v11, %v2667_v50  ;;  %v1371_v14 = vpop.f32.mrb[31].mxu1 }
 0x232   : > { %v1484_v15 = vsub.f32 0.0, %v1460_v12  ;;  %v1458_v16 = vsel %vm2669_vm4, %v2701_v10, 0.0  ;;  %v2714_v17 = vadd.f32 %v2667_v50, %v1371_v14 }
 0x233   : > { %v1482_v18 = vsub.f32 0.0, %v1458_v16  ;;  %v1461_v19 = vsel %vm2669_vm4, %v2707_v13, 0.0 }
 0x234   : > { %v1514_v20 = vmul.f32 1.442695, %v1484_v15  ;;  %v1485_v21 = vsub.f32 0.0, %v1461_v19  ;;  %v1459_v22 = vsel %vm2669_vm4, %v2714_v17, 0.0 }
 0x235   : > { %v1510_v23 = vmul.f32 1.442695, %v1482_v18  ;;  %v1483_v24 = vsub.f32 0.0, %v1459_v22 }
 0x236   : > { %2157 = vpow2.f32 %v1514_v20  ;;  %v1516_v25 = vmul.f32 1.442695, %v1485_v21  ;;  %v2043_v26 = vpop.f32.mrb[32].mxu1 }
 0x237   : > { %2159 = vpow2.f32 %v1510_v23  ;;  %v1512_v27 = vmul.f32 1.442695, %v1483_v24  ;;  %v2729_v28 = vadd.f32 %v2043_v26, %v2667_v50  ;;  %v1384_v29 = vpop.f32.mrb[33].mxu1 }
 0x238   : > { %v2150_v30 = vpop.eup %2149  ;;  %2161 = vpow2.f32 %v1516_v25  ;;  %v2732_v31 = vadd.f32 %v2667_v50, %v1384_v29  ;;  %v2044_v32 = vpop.f32.mrb[34].mxu1 }
 0x239   : > { %v2152_v33 = vpop.eup %2151  ;;  %v1552_v35 = vadd.f32 1.0, %v2150_v30  ;;  %2163 = vpow2.f32 %v1512_v27  ;;  %v1464_v36 = vsel %vm2669_vm4, %v2729_v28, 0.0  ;;  %v2739_v37 = vadd.f32 %v2044_v32, %v2667_v50  ;;  %v1387_v38 = vpop.f32.mrb[35].mxu1 }
 0x23a   : > { %v2154_v39 = vpop.eup %2153  ;;  %v1550_v40 = vadd.f32 1.0, %v2152_v33  ;;  %v1488_v41 = vsub.f32 0.0, %v1464_v36  ;;  %v1462_v42 = vsel %vm2669_vm4, %v2732_v31, 0.0  ;;  %v2749_v43 = vadd.f32 %v2667_v50, %v1387_v38 }
 0x23b   : > { %v2156_v44 = vpop.eup %2155  ;;  %2165 = vrcp.f32 %v1552_v35  ;;  %v1553_v45 = vadd.f32 1.0, %v2154_v39  ;;  %v1486_v46 = vsub.f32 0.0, %v1462_v42  ;;  %v1465_v47 = vsel %vm2669_vm4, %v2739_v37, 0.0 }
 0x23c   : > { %2167 = vrcp.f32 %v1550_v40  ;;  %v1551_v48 = vadd.f32 1.0, %v2156_v44  ;;  %v1522_v49 = vmul.f32 1.442695, %v1488_v41  ;;  %v1489_v34 = vsub.f32 0.0, %v1465_v47 }
 0x23d   : > { %2169 = vrcp.f32 %v1553_v45  ;;  %v1518_v53 = vmul.f32 1.442695, %v1486_v46  ;;  %v1463_v55 = vsel %vm2669_vm4, %v2749_v43, 0.0 }
 0x23e   : > { %2171 = vrcp.f32 %v1551_v48  ;;  %v1524_v56 = vmul.f32 1.442695, %v1489_v34  ;;  %v1487_v58 = vsub.f32 0.0, %v1463_v55  ;;  %v2047_v59 = vpop.f32.mrb[36].mxu1 }
 0x23f   : > { %2173 = vpow2.f32 %v1522_v49  ;;  %v2760_v60 = vadd.f32 %v2047_v59, %v2667_v50  ;;  %v1400_v62 = vpop.f32.mrb[37].mxu1 }
 0x240   : > { %v2158_v63 = vpop.eup %2157  ;;  %2175 = vpow2.f32 %v1518_v53  ;;  %v1520_v0 = vmul.f32 1.442695, %v1487_v58  ;;  %v2763_v1 = vadd.f32 %v2667_v50, %v1400_v62  ;;  %v2048_v2 = vpop.f32.mrb[38].mxu1 }
 0x241   : > { %v2160_v3 = vpop.eup %2159  ;;  %v1556_v4 = vadd.f32 1.0, %v2158_v63  ;;  %2177 = vpow2.f32 %v1524_v56  ;;  %v1468_v5 = vsel %vm2669_vm4, %v2760_v60, 0.0  ;;  %v2770_v6 = vadd.f32 %v2048_v2, %v2667_v50  ;;  %v1403_v7 = vpop.f32.mrb[39].mxu1 }
 0x242   : > { %v2162_v9 = vpop.eup %2161  ;;  %v1554_v11 = vadd.f32 1.0, %v2160_v3  ;;  %2179 = vpow2.f32 %v1520_v0  ;;  %v1492_v12 = vsub.f32 0.0, %v1468_v5  ;;  %v1466_v14 = vsel %vm2669_vm4, %v2763_v1, 0.0 }
 0x243   : > { %v2164_v15 = vpop.eup %2163  ;;  %2181 = vrcp.f32 %v1556_v4  ;;  %v1557_v16 = vadd.f32 1.0, %v2162_v9  ;;  %v1490_v18 = vsub.f32 0.0, %v1466_v14  ;;  %v1469_v19 = vsel %vm2669_vm4, %v2770_v6, 0.0 }
 0x244   : > { %2183 = vrcp.f32 %v1554_v11  ;;  %v1555_v20 = vadd.f32 1.0, %v2164_v15  ;;  %v1530_v21 = vmul.f32 1.442695, %v1492_v12  ;;  %v1493_v22 = vsub.f32 0.0, %v1469_v19 }
 0x245   : > { %v2166_v23 = vpop.eup %2165  ;;  %2185 = vrcp.f32 %v1557_v16  ;;  %v1526_v24 = vmul.f32 1.442695, %v1490_v18  ;;  %v2784_v25 = vadd.f32 %v2667_v50, %v1403_v7 }
 0x246   : > { %v2168_v26 = vpop.eup %2167  ;;  %v1624_v27 = vsel %vm2669_vm4, %v2166_v23, %v2674_v52  ;;  %2187 = vrcp.f32 %v1555_v20  ;;  %v1532_v29 = vmul.f32 1.442695, %v1493_v22  ;;  %v2051_v30 = vpop.f32.mrb[40].mxu1 }
 0x247   : > { %v2170_v32 = vpop.eup %2169  ;;  %1648 = vst [vmem:[%s2781_s23 + $0x10] sm:$0xff] %v1624_v27  ;;  %v1622_v33 = vsel %vm2669_vm4, %v2168_v26, %v2677_v54  ;;  %2189 = vpow2.f32 %v1530_v21  ;;  %v1467_v35 = vsel %vm2669_vm4, %v2784_v25, 0.0  ;;  %v2797_v36 = vadd.f32 %v2051_v30, %v2667_v50  ;;  %v1416_v38 = vpop.f32.mrb[41].mxu1 }
 0x248   : > { %v2172_v52 = vpop.eup %2171  ;;  %1646 = vst [vmem:[%s2781_s23] sm:$0xff] %v1622_v33  ;;  %v1625_v39 = vsel %vm2669_vm4, %v2170_v32, %v2683_v57  ;;  %2191 = vpow2.f32 %v1526_v24  ;;  %v1491_v40 = vsub.f32 0.0, %v1467_v35  ;;  %v2804_v54 = vadd.f32 %v2667_v50, %v1416_v38  ;;  %v2052_v41 = vpop.f32.mrb[42].mxu1 }
 0x249   : > { %v2174_v42 = vpop.eup %2173  ;;  %1649 = vst [vmem:[%s2781_s23 + $0x18] sm:$0xff] %v1625_v39  ;;  %v1623_v44 = vsel %vm2669_vm4, %v2172_v52, %v2689_v61  ;;  %2193 = vpow2.f32 %v1532_v29  ;;  %v1472_v45 = vsel %vm2669_vm4, %v2797_v36, 0.0  ;;  %v2814_v46 = vadd.f32 %v2052_v41, %v2667_v50  ;;  %v1419_v57 = vpop.f32.mrb[43].mxu1 }
 0x24a   : > { %v2176_v47 = vpop.eup %2175  ;;  %1647 = vst [vmem:[%s2781_s23 + $0x8] sm:$0xff] %v1623_v44  ;;  %v1560_v48 = vadd.f32 1.0, %v2174_v42  ;;  %v1496_v49 = vsub.f32 0.0, %v1472_v45  ;;  %v1470_v34 = vsel %vm2669_vm4, %v2804_v54, 0.0  ;;  %v2824_v58 = vadd.f32 %v2667_v50, %v1419_v57 }
 0x24b   : > { %v2178_v53 = vpop.eup %2177  ;;  %v1558_v55 = vadd.f32 1.0, %v2176_v47  ;;  %v1494_v61 = vsub.f32 0.0, %v1470_v34  ;;  %v1473_v56 = vsel %vm2669_vm4, %v2814_v46, 0.0  ;;  %v1528_v63 = vmul.f32 1.442695, %v1491_v40 }
 0x24c   : > { %v2180_v59 = vpop.eup %2179  ;;  %2195 = vrcp.f32 %v1560_v48  ;;  %v1561_v62 = vadd.f32 1.0, %v2178_v53  ;;  %v1497_v0 = vsub.f32 0.0, %v1473_v56  ;;  %v1538_v4 = vmul.f32 1.442695, %v1496_v49 }
 0x24d   : > { %v2182_v2 = vpop.eup %2181  ;;  %2197 = vrcp.f32 %v1558_v55  ;;  %v1559_v3 = vadd.f32 1.0, %v2180_v59  ;;  %v1471_v5 = vsel %vm2669_vm4, %v2824_v58, 0.0  ;;  %v1534_v11 = vmul.f32 1.442695, %v1494_v61 }
 0x24e   : > { %v2184_v7 = vpop.eup %2183  ;;  %v1628_v9 = vsel %vm2669_vm4, %v2182_v2, %v2698_v8  ;;  %2199 = vrcp.f32 %v1561_v62  ;;  %v1495_v12 = vsub.f32 0.0, %v1471_v5  ;;  %v2055_v14 = vpop.f32.mrb[44].mxu1  ;;  %v1540_v18 = vmul.f32 1.442695, %v1497_v0 }
 0x24f   : > { %v2186_v15 = vpop.eup %2185  ;;  %1652 = vst [vmem:[%s2781_s23 + $0x30] sm:$0xff] %v1628_v9  ;;  %v1626_v16 = vsel %vm2669_vm4, %v2184_v7, %v2701_v10  ;;  %2201 = vrcp.f32 %v1559_v3  ;;  %v2837_v19 = vadd.f32 %v2055_v14, %v2667_v50  ;;  %v1432_v20 = vpop.f32.mrb[45].mxu1 }
 0x250   : > { %v2188_v21 = vpop.eup %2187  ;;  %1650 = vst [vmem:[%s2781_s23 + $0x20] sm:$0xff] %v1626_v16  ;;  %v1629_v8 = vsel %vm2669_vm4, %v2186_v15, %v2707_v13  ;;  %2203 = vpow2.f32 %v1528_v63  ;;  %v1536_v22 = vmul.f32 1.442695, %v1495_v12  ;;  %v2844_v23 = vadd.f32 %v2667_v50, %v1432_v20  ;;  %v2056_v24 = vpop.f32.mrb[46].mxu1 }
 0x251   : > { %v2190_v10 = vpop.eup %2189  ;;  %1653 = vst [vmem:[%s2781_s23 + $0x38] sm:$0xff] %v1629_v8  ;;  %v1627_v26 = vsel %vm2669_vm4, %v2188_v21, %v2714_v17  ;;  %2205 = vpow2.f32 %v1538_v4  ;;  %v1476_v27 = vsel %vm2669_vm4, %v2837_v19, 0.0  ;;  %v2854_v29 = vadd.f32 %v2056_v24, %v2667_v50  ;;  %v1435_v13 = vpop.f32.mrb[47].mxu1 }
 0x252   : > { %v2192_v30 = vpop.eup %2191  ;;  %1651 = vst [vmem:[%s2781_s23 + $0x28] sm:$0xff] %v1627_v26  ;;  %v1564_v32 = vadd.f32 1.0, %v2190_v10  ;;  %2207 = vpow2.f32 %v1534_v11  ;;  %v1500_v33 = vsub.f32 0.0, %v1476_v27  ;;  %v1474_v35 = vsel %vm2669_vm4, %v2844_v23, 0.0 }
 0x253   : > { %v2194_v38 = vpop.eup %2193  ;;  %v1562_v17 = vadd.f32 1.0, %v2192_v30  ;;  %2209 = vpow2.f32 %v1540_v18  ;;  %v1498_v52 = vsub.f32 0.0, %v1474_v35  ;;  %v1477_v39 = vsel %vm2669_vm4, %v2854_v29, 0.0 }
 0x254   : > { %2211 = vrcp.f32 %v1564_v32  ;;  %v1565_v40 = vadd.f32 1.0, %v2194_v38  ;;  %v1546_v41 = vmul.f32 1.442695, %v1500_v33  ;;  %v1501_v42 = vsub.f32 0.0, %v1477_v39 }
 0x255   : > { %2213 = vrcp.f32 %v1562_v17  ;;  %v1542_v44 = vmul.f32 1.442695, %v1498_v52  ;;  %v2864_v45 = vadd.f32 %v2667_v50, %v1435_v13 }
 0x256   : > { %v2196_v57 = vpop.eup %2195  ;;  %2215 = vrcp.f32 %v1565_v40  ;;  %v1548_v47 = vmul.f32 1.442695, %v1501_v42 }
 0x257   : > { %v2198_v48 = vpop.eup %2197  ;;  %v1632_v49 = vsel %vm2669_vm4, %v2196_v57, %v2729_v28  ;;  %2217 = vpow2.f32 %v1536_v22  ;;  %v1475_v34 = vsel %vm2669_vm4, %v2864_v45, 0.0 }
 0x258   : > { %v2200_v53 = vpop.eup %2199  ;;  %1656 = vst [vmem:[%s2781_s23 + $0x50] sm:$0xff] %v1632_v49  ;;  %v1630_v50 = vsel %vm2669_vm4, %v2198_v48, %v2732_v31  ;;  %2219 = vpow2.f32 %v1546_v41  ;;  %v1499_v55 = vsub.f32 0.0, %v1475_v34 }
 0x259   : > { %v2202_v61 = vpop.eup %2201  ;;  %1654 = vst [vmem:[%s2781_s23 + $0x40] sm:$0xff] %v1630_v50  ;;  %v1633_v28 = vsel %vm2669_vm4, %v2200_v53, %v2739_v37  ;;  %2221 = vpow2.f32 %v1542_v44 }
 0x25a   : > { %v2204_v56 = vpop.eup %2203  ;;  %1657 = vst [vmem:[%s2781_s23 + $0x58] sm:$0xff] %v1633_v28  ;;  %v1631_v59 = vsel %vm2669_vm4, %v2202_v61, %v2749_v43  ;;  %2223 = vpow2.f32 %v1548_v47  ;;  %v1544_v62 = vmul.f32 1.442695, %v1499_v55 }
 0x25b   : > { %v2206_v63 = vpop.eup %2205  ;;  %1655 = vst [vmem:[%s2781_s23 + $0x48] sm:$0xff] %v1631_v59  ;;  %v1563_v31 = vadd.f32 1.0, %v2204_v56 }
 0x25c   : > { %v2208_v0 = vpop.eup %2207  ;;  %v1568_v2 = vadd.f32 1.0, %v2206_v63  ;;  %2225 = vpow2.f32 %v1544_v62 }
 0x25d   : > { %v2210_v3 = vpop.eup %2209  ;;  %2227 = vrcp.f32 %v1563_v31  ;;  %v1566_v37 = vadd.f32 1.0, %v2208_v0 }
 0x25e   : > { %v2212_v4 = vpop.eup %2211  ;;  %2229 = vrcp.f32 %v1568_v2  ;;  %v1569_v5 = vadd.f32 1.0, %v2210_v3 }
 0x25f   : > { %v2214_v7 = vpop.eup %2213  ;;  %v1636_v43 = vsel %vm2669_vm4, %v2212_v4, %v2760_v60  ;;  %2231 = vrcp.f32 %v1566_v37 }
 0x260   : > { %v2216_v9 = vpop.eup %2215  ;;  %1660 = vst [vmem:[%s2781_s23 + $0x70] sm:$0xff] %v1636_v43  ;;  %v1634_v11 = vsel %vm2669_vm4, %v2214_v7, %v2763_v1  ;;  %2233 = vrcp.f32 %v1569_v5 }
 0x261   : > { %v2218_v12 = vpop.eup %2217  ;;  %1658 = vst [vmem:[%s2781_s23 + $0x60] sm:$0xff] %v1634_v11  ;;  %v1637_v14 = vsel %vm2669_vm4, %v2216_v9, %v2770_v6 }
 0x262   : > { %v2220_v15 = vpop.eup %2219  ;;  %1661 = vst [vmem:[%s2781_s23 + $0x78] sm:$0xff] %v1637_v14  ;;  %v1567_v16 = vadd.f32 1.0, %v2218_v12 }
 0x263   : > { %v2222_v18 = vpop.eup %2221  ;;  %v1572_v60 = vadd.f32 1.0, %v2220_v15 }
 0x264   : > { %v2224_v20 = vpop.eup %2223  ;;  %2235 = vrcp.f32 %v1567_v16  ;;  %v1570_v21 = vadd.f32 1.0, %v2222_v18 }
 0x265   : > { %2237 = vrcp.f32 %v1572_v60  ;;  %v1573_v1 = vadd.f32 1.0, %v2224_v20 }
 0x266   : > { %v2226_v8 = vpop.eup %2225  ;;  %2239 = vrcp.f32 %v1570_v21 }
 0x267   : > { %v2228_v22 = vpop.eup %2227  ;;  %2241 = vrcp.f32 %v1573_v1  ;;  %v1571_v24 = vadd.f32 1.0, %v2226_v8 }
 0x268   : > { %v2230_v6 = vpop.eup %2229  ;;  %v1635_v10 = vsel %vm2669_vm4, %v2228_v22, %v2784_v25 }
 0x269   : > { %v2232_v26 = vpop.eup %2231  ;;  %1659 = vst [vmem:[%s2781_s23 + $0x68] sm:$0xff] %v1635_v10  ;;  %v1640_v27 = vsel %vm2669_vm4, %v2230_v6, %v2797_v36  ;;  %2243 = vrcp.f32 %v1571_v24 }
 0x26a   : > { %v2234_v13 = vpop.eup %2233  ;;  %1664 = vst [vmem:[%s2781_s23 + $0x90] sm:$0xff] %v1640_v27  ;;  %v1638_v30 = vsel %vm2669_vm4, %v2232_v26, %v2804_v54 }
 0x26b   : > { %1662 = vst [vmem:[%s2781_s23 + $0x80] sm:$0xff] %v1638_v30  ;;  %v1641_v25 = vsel %vm2669_vm4, %v2234_v13, %v2814_v46 }
 0x26c   : > { %1665 = vst [vmem:[%s2781_s23 + $0x98] sm:$0xff] %v1641_v25 }
 0x26e   : > { %v2236_v32 = vpop.eup %2235 }
 0x26f   : > { %v2238_v33 = vpop.eup %2237  ;;  %v1639_v36 = vsel %vm2669_vm4, %v2236_v32, %v2824_v58 }
 0x270   : > { %v2240_v35 = vpop.eup %2239  ;;  %1663 = vst [vmem:[%s2781_s23 + $0x88] sm:$0xff] %v1639_v36  ;;  %v1644_v54 = vsel %vm2669_vm4, %v2238_v33, %v2837_v19 }
 0x271   : > { %v2242_v38 = vpop.eup %2241  ;;  %1668 = vst [vmem:[%s2781_s23 + $0xb0] sm:$0xff] %v1644_v54  ;;  %v1642_v46 = vsel %vm2669_vm4, %v2240_v35, %v2844_v23 }
 0x272   : > { %1666 = vst [vmem:[%s2781_s23 + $0xa0] sm:$0xff] %v1642_v46  ;;  %v1645_v17 = vsel %vm2669_vm4, %v2242_v38, %v2854_v29 }
 0x273   : > { %v2244_v52 = vpop.eup %2243  ;;  %1669 = vst [vmem:[%s2781_s23 + $0xb8] sm:$0xff] %v1645_v17 }
 0x274   : > { %v1643_v58 = vsel %vm2669_vm4, %v2244_v52, %v2864_v45 }
 0x275   : > { %1667 = vst [vmem:[%s2781_s23 + $0xa8] sm:$0xff] %v1643_v58 }
 0x276 PF: > { %s16_s22 = sadd.s32 1, %s2315_s22   ;;  %s2965_s18 = smov %s2307_s20 }
 0x277   : > { %p13_p7 = scmp.ge.s32.totalorder %s16_s22, 6   ;;  %s2966_s19 = smov %s2311_s21 }
 0x278   : > { %s2967_s20 = smov %s2970_s24  ;;  %s2968_s21 = smov %s2974_s25 }
 0x279   :  { %15 = sbr.rel (!%p13_p7) target bundleno = 3 (0x3), region = 78 }
 0x280   :  { %1700 = vsyncpa [#allocation4], 1 }
 0x281   :  { %1702 = vsyncpa [#allocation4 + $0x1], 1 }

</bundles_post_ra>
